<compile_context>
chip_gen: v7x
topology: tpu7x:2x2x1
jax: 0.10.0
libtpu: 0.0.40
codegen_flags: <defaults>
</compile_context>

<pallas_src>
import functools
import math

import jax
import jax.numpy as jnp
from jax import lax
from jax.experimental import pallas as pl
from jax.experimental.pallas import tpu as pltpu


# ---------------------------------------------------------------------------
# Parameter packing: one flat f32[258] slab, read as scalars from SMEM.
# Weights are stored transposed, i.e. (in_features, out_features); biases are
# (out_features,).  Layout is fixed for the module defaults
# (input_size=2, l4_nodes=5, l5_nodes=5).
# ---------------------------------------------------------------------------
_PARAM_LAYOUT = [
    ("v_raw", (2,)), ("v_ripe", (2,)), ("gamma", (1,)),
    ("l4_w", (5, 5)), ("l4_b", (5,)),
    ("l5_w", (5, 5)), ("l5_b", (5,)),
    ("g1_w", (3, 10)), ("g1_b", (10,)),
    ("g2_w", (10, 5)), ("g2_b", (5,)),
    ("l6_w", (5, 5)), ("l6_b", (5,)),
    ("l7_w", (5, 4)), ("l7_b", (4,)),
    ("l8_w", (4, 3)), ("l8_b", (3,)),
    ("l9_w", (3, 2)), ("l9_b", (2,)),
    ("l10_w", (2, 1)), ("l10_b", (1,)),
    ("next_w", (2, 2)), ("next_b", (2,)),
    ("prev_w", (2, 2)), ("prev_b", (2,)),
    ("abs_w", (2, 2)), ("abs_b", (2,)),
]
_PARAM_SHAPES = dict(_PARAM_LAYOUT)
_PARAM_OFFSETS = {}
_off = 0
for _name, _shape in _PARAM_LAYOUT:
    _PARAM_OFFSETS[_name] = _off
    _off += math.prod(_shape)
_NUM_PARAMS = _off  # 258

_LANE = 128
_SUB = 8            # sublanes per inner chunk -> 1 vreg per intermediate


def pack_params(params):
    parts = []
    for name, shape in _PARAM_LAYOUT:
        a = jnp.asarray(params[name], jnp.float32)
        assert a.shape == shape, (name, a.shape, shape)
        parts.append(a.reshape(-1))
    return jnp.concatenate(parts)


# ---------------------------------------------------------------------------
# Kernel
# ---------------------------------------------------------------------------
def _iai_ips_kernel(params_ref, x_ref, out_ref):
    # --- scalar parameter access (static SMEM offsets) ----------------------
    def pscalar(name, *idx):
        shape = _PARAM_SHAPES[name]
        flat = 0
        for d, i in zip(shape, idx):
            flat = flat * d + i
        return params_ref[_PARAM_OFFSETS[name] + flat]

    # --- tiny dense layer as rank-1 scalar-broadcast MACs on the VPU --------
    def dense(h, wname, bname, act=None):
        k_in, n_out = _PARAM_SHAPES[wname]
        outs = []
        for j in range(n_out):
            acc = h[0] * pscalar(wname, 0, j)
            for k in range(1, k_in):
                acc = acc + h[k] * pscalar(wname, k, j)
            acc = acc + pscalar(bname, j)
            outs.append(act(acc) if act is not None else acc)
        return outs

    def sig(v):
        # exp + approx reciprocal -> both map to the EUP slot, not VALU.
        return pl.reciprocal(1.0 + jnp.exp(-v), approx=True)

    def relu(v):
        return jnp.maximum(v, 0.0)

    # hoisted loop-invariant scalars
    gamma = jnp.maximum(pscalar("gamma", 0), 0.0) + 1e-6
    vr0 = pscalar("v_raw", 0)
    vr1 = pscalar("v_raw", 1)
    vp0 = pscalar("v_ripe", 0)
    vp1 = pscalar("v_ripe", 1)

    tile_rows = x_ref.shape[1]
    n_chunks = tile_rows // _SUB

    def chunk_body(c, carry):
        r = pl.multiple_of(c * _SUB, _SUB)
        x0 = x_ref[0, pl.ds(r, _SUB), :]            # (8, 128)
        x1 = x_ref[1, pl.ds(r, _SUB), :]            # (8, 128)

        # ---- Layer2_OpposingAspects (RBF; sqrt dropped, it is re-squared) --
        d2_raw = (x0 - vr0) ** 2 + (x1 - vr1) ** 2
        d2_ripe = (x0 - vp0) ** 2 + (x1 - vp1) ** 2
        a_raw = jnp.exp(-gamma * d2_raw)
        a_ripe = jnp.exp(-gamma * d2_ripe)

        # ---- Layer3_Contradictions -----------------------------------------
        a_int = 1.0 - jnp.abs(a_raw - a_ripe)
        a_ext = 1.0 - a_ripe
        a_intext = a_int * a_ext

        l23 = [a_raw, a_ripe, a_int, a_ext, a_intext]    # cat([l2, l3])
        l3 = [a_int, a_ext, a_intext]

        # ---- l4, l5 ----------------------------------------------------------
        l4 = dense(l23, "l4_w", "l4_b", sig)
        l5 = dense(l4, "l5_w", "l5_b", sig)

        # ---- core_node_gate --------------------------------------------------
        g_hidden = dense(l3, "g1_w", "g1_b", relu)
        gate = dense(g_hidden, "g2_w", "g2_b", sig)
        adj = [a * g for a, g in zip(l5, gate)]

        # ---- l6 .. l9 --------------------------------------------------------
        l6 = dense(adj, "l6_w", "l6_b", sig)
        l7 = dense(l6, "l7_w", "l7_b", sig)
        l8 = dense(l7, "l8_w", "l8_b", sig)
        l9 = dense(l8, "l9_w", "l9_b", sig)

        # ---- heads -----------------------------------------------------------
        outcome = dense(l9, "l10_w", "l10_b", sig)       # 1 row
        nxt = dense(l9, "next_w", "next_b", jnp.tanh)    # 2 rows
        prv = dense(l9, "prev_w", "prev_b", jnp.tanh)    # 2 rows
        abst = dense(l9, "abs_w", "abs_b", None)         # 2 rows

        # ---- merged lane-dense output rows -----------------------------------
        out_ref[0, pl.ds(r, _SUB), :] = outcome[0]
        out_ref[1, pl.ds(r, _SUB), :] = abst[0]
        out_ref[2, pl.ds(r, _SUB), :] = abst[1]
        out_ref[3, pl.ds(r, _SUB), :] = nxt[0]
        out_ref[4, pl.ds(r, _SUB), :] = nxt[1]
        out_ref[5, pl.ds(r, _SUB), :] = prv[0]
        out_ref[6, pl.ds(r, _SUB), :] = prv[1]
        out_ref[7, pl.ds(r, _SUB), :] = a_int
        out_ref[8, pl.ds(r, _SUB), :] = a_ext
        out_ref[9, pl.ds(r, _SUB), :] = a_intext
        return carry

    unroll = 2 if (n_chunks >= 2 and n_chunks % 2 == 0) else 1
    lax.fori_loop(0, n_chunks, chunk_body, 0, unroll=unroll)


# ---------------------------------------------------------------------------
# Wrapper
# ---------------------------------------------------------------------------
def _iai_ips_unit_impl(x, params, tile_rows=256):
    """Forward pass of IAI_IPS_Unit (input_size == 2 branch).

    x: (B, 2) float32.  Returns the 5 outputs of the PyTorch module.
    tile_rows * 128 batch rows are processed per grid step.
    """
    B, F = x.shape
    assert F == 2, "kernel implements the input_size == 2 branch"

    rows_b = -(-B // _LANE)                      # 128-lane rows needed
    rows_b8 = -(-rows_b // _SUB) * _SUB          # sublane-aligned

    tr = max(_SUB, (int(tile_rows) // _SUB) * _SUB)
    if tr >= rows_b8:
        # Keep >= 2 grid steps whenever there is enough work so the
        # "parallel" batch axis can be split across both v7x TensorCores.
        if rows_b8 >= 2 * _SUB:
            tr = -(-(rows_b8 // 2) // _SUB) * _SUB
        else:
            tr = rows_b8
    n_steps = -(-rows_b8 // tr)
    rows_pad = n_steps * tr
    B_pad = rows_pad * _LANE

    # batch-on-lanes layout: (2, rows_pad, 128); batch b -> (b // 128, b % 128)
    x_pad = jnp.pad(x.astype(jnp.float32), ((0, B_pad - B), (0, 0)))
    x_t = x_pad.T.reshape(2, rows_pad, _LANE)

    params_flat = pack_params(params)            # f32[258] -> SMEM (prefetch)

    out = pl.pallas_call(
        _iai_ips_kernel,
        out_shape=jax.ShapeDtypeStruct((10, rows_pad, _LANE), jnp.float32),
        grid_spec=pltpu.PrefetchScalarGridSpec(
            num_scalar_prefetch=1,               # params slab, DMA'd once
            grid=(n_steps,),
            in_specs=[
                pl.BlockSpec((2, tr, _LANE), lambda i, p: (0, i, 0)),
            ],
            out_specs=pl.BlockSpec((10, tr, _LANE), lambda i, p: (0, i, 0)),
        ),
        compiler_params=pltpu.CompilerParams(
            dimension_semantics=("parallel",),
        ),
    )(params_flat, x_t)

    # rows: [outcome | abstraction(2) | next(2) | prev(2) | contradiction(3)]
    out = out.reshape(10, B_pad)[:, :B].T        # (B, 10), fused in this jit
    predicted_outcome = out[:, 0:1]
    output_abstraction = out[:, 1:3]
    predicted_next_state = out[:, 3:5]
    predicted_previous_state = out[:, 5:7]
    contradiction_vector = out[:, 7:10]
    return (predicted_outcome, output_abstraction, predicted_next_state,
            predicted_previous_state, contradiction_vector)


iai_ips_unit = jax.jit(_iai_ips_unit_impl, static_argnames=("tile_rows",))


# ---------------------------------------------------------------------------
# Synthetic parameters + pure-JAX reference
# ---------------------------------------------------------------------------
def init_params(key, input_size=2, l4_nodes=5, l5_nodes=5):
    assert input_size == 2 and l4_nodes == 5 and l5_nodes == 5

    def linear(k, fan_in, fan_out):
        k1, k2 = jax.random.split(k)
        bound = 1.0 / float(fan_in) ** 0.5
        w = jax.random.uniform(k1, (fan_in, fan_out), jnp.float32, -bound, bound)
        b = jax.random.uniform(k2, (fan_out,), jnp.float32, -bound, bound)
        return w, b

    specs = [("l4", 5, 5), ("l5", 5, 5), ("g1", 3, 10), ("g2", 10, 5),
             ("l6", 5, 5), ("l7", 5, 4), ("l8", 4, 3), ("l9", 3, 2),
             ("l10", 2, 1), ("next", 2, 2), ("prev", 2, 2), ("abs", 2, 2)]
    keys = jax.random.split(key, len(specs))
    p = {
        "v_raw": jnp.array([0.1, 0.1], jnp.float32),
        "v_ripe": jnp.array([0.9, 0.9], jnp.float32),
        "gamma": jnp.array([2.0], jnp.float32),
    }
    for (name, fi, fo), k in zip(specs, keys):
        w, b = linear(k, fi, fo)
        p[name + "_w"] = w
        p[name + "_b"] = b
    return p


def iai_ips_unit_ref(x, p):
    """Pure-JAX reference of the PyTorch forward (input_size == 2 branch)."""
    gamma = jnp.maximum(p["gamma"][0], 0.0) + 1e-6
    d2_raw = jnp.sum((x - p["v_raw"]) ** 2, -1, keepdims=True)
    d2_ripe = jnp.sum((x - p["v_ripe"]) ** 2, -1, keepdims=True)
    a_raw = jnp.exp(-gamma * d2_raw)
    a_ripe = jnp.exp(-gamma * d2_ripe)
    a_int = 1.0 - jnp.abs(a_raw - a_ripe)
    a_ext = 1.0 - a_ripe
    l3 = jnp.concatenate([a_int, a_ext, a_int * a_ext], axis=1)
    l23 = jnp.concatenate([a_raw, a_ripe, a_int, a_ext, a_int * a_ext], axis=1)

    def lin(h, n):
        return h @ p[n + "_w"] + p[n + "_b"]

    sig = jax.nn.sigmoid
    l4 = sig(lin(l23, "l4"))
    l5 = sig(lin(l4, "l5"))
    gate = sig(lin(jnp.maximum(lin(l3, "g1"), 0.0), "g2"))
    h = l5 * gate
    for n in ["l6", "l7", "l8", "l9"]:
        h = sig(lin(h, n))
    return (sig(lin(h, "l10")), lin(h, "abs"),
            jnp.tanh(lin(h, "next")), jnp.tanh(lin(h, "prev")), l3)


if __name__ == "__main__":
    key = jax.random.PRNGKey(0)
    k_params, k_x = jax.random.split(key)
    params = init_params(k_params)

    # B=64  : single grid step, tail padding, 1 inner chunk
    # B=8000: 2 "parallel" grid steps, multi-chunk inner loop (unroll=2), padding
    for B in (64, 8000):
        x = jax.random.normal(jax.random.fold_in(k_x, B), (B, 2), dtype=jnp.float32)
        outs = jax.block_until_ready(iai_ips_unit(x, params, tile_rows=256))
        refs = iai_ips_unit_ref(x, params)
        for o, r in zip(outs, refs):
            assert o.shape == r.shape, (o.shape, r.shape)
            # 2e-3 tolerance: approx-reciprocal sigmoid (EUP vrcp) vs exact ref.
            assert jnp.allclose(o, r, rtol=2e-3, atol=2e-3), "mismatch vs reference"

    print("KERNEL_OK")
</pallas_src>

<mosaic_0001>
module attributes {stable_mosaic.version = 11 : i64} {
  func.func @_iai_ips_kernel(%arg0: i32, %arg1: memref<258xf32, #tpu.memory_space<smem>>, %arg2: memref<2x8x128xf32, #tpu.memory_space<vmem>>, %arg3: memref<10x8x128xf32, #tpu.memory_space<vmem>>) attributes {dimension_semantics = [#tpu.dimension_semantics<parallel>], iteration_bounds = array<i64: 1>, scalar_prefetch = 1 : i64, scratch_operands = 0 : i64, tpu.core_type = #tpu.core_type<tc>, window_params = [{transform_indices = @transform_0, window_bounds = array<i64: 2, 8, 128>}, {transform_indices = @transform_1, window_bounds = array<i64: 10, 8, 128>}]} {
    %c4 = arith.constant 4 : index
    %0 = memref.load %arg1[%c4] : memref<258xf32, #tpu.memory_space<smem>>
    %cst = arith.constant 0.000000e+00 : f32
    %1 = arith.maximumf %0, %cst : f32
    %cst_0 = arith.constant 9.99999997E-7 : f32
    %2 = arith.addf %1, %cst_0 : f32
    %c0 = arith.constant 0 : index
    %3 = memref.load %arg1[%c0] : memref<258xf32, #tpu.memory_space<smem>>
    %c1 = arith.constant 1 : index
    %4 = memref.load %arg1[%c1] : memref<258xf32, #tpu.memory_space<smem>>
    %c2 = arith.constant 2 : index
    %5 = memref.load %arg1[%c2] : memref<258xf32, #tpu.memory_space<smem>>
    %c3 = arith.constant 3 : index
    %6 = memref.load %arg1[%c3] : memref<258xf32, #tpu.memory_space<smem>>
    %c0_i32 = arith.constant 0 : i32
    %c8_i32 = arith.constant 8 : i32
    %7 = arith.muli %c0_i32, %c8_i32 : i32
    %8 = tpu.assume_multiple %7, 8 : i32
    %c0_1 = arith.constant 0 : index
    %9 = arith.index_cast %8 : i32 to index
    %c0_2 = arith.constant 0 : index
    %10 = vector.load %arg2[%c0_1, %9, %c0_2] : memref<2x8x128xf32, #tpu.memory_space<vmem>>, vector<1x8x128xf32>
    %11 = vector.shape_cast %10 : vector<1x8x128xf32> to vector<8x128xf32>
    %c1_3 = arith.constant 1 : index
    %12 = arith.index_cast %8 : i32 to index
    %c0_4 = arith.constant 0 : index
    %13 = vector.load %arg2[%c1_3, %12, %c0_4] : memref<2x8x128xf32, #tpu.memory_space<vmem>>, vector<1x8x128xf32>
    %14 = vector.shape_cast %13 : vector<1x8x128xf32> to vector<8x128xf32>
    %15 = vector.broadcast %3 : f32 to vector<8x128xf32>
    %16 = arith.subf %11, %15 : vector<8x128xf32>
    %17 = arith.mulf %16, %16 : vector<8x128xf32>
    %18 = vector.broadcast %4 : f32 to vector<8x128xf32>
    %19 = arith.subf %14, %18 : vector<8x128xf32>
    %20 = arith.mulf %19, %19 : vector<8x128xf32>
    %21 = arith.addf %17, %20 : vector<8x128xf32>
    %22 = vector.broadcast %5 : f32 to vector<8x128xf32>
    %23 = arith.subf %11, %22 : vector<8x128xf32>
    %24 = arith.mulf %23, %23 : vector<8x128xf32>
    %25 = vector.broadcast %6 : f32 to vector<8x128xf32>
    %26 = arith.subf %14, %25 : vector<8x128xf32>
    %27 = arith.mulf %26, %26 : vector<8x128xf32>
    %28 = arith.addf %24, %27 : vector<8x128xf32>
    %cst_5 = arith.constant 0.000000e+00 : f32
    %29 = arith.subf %cst_5, %2 : f32
    %30 = vector.broadcast %29 : f32 to vector<8x128xf32>
    %31 = arith.mulf %30, %21 : vector<8x128xf32>
    %32 = math.exp %31 : vector<8x128xf32>
    %cst_6 = arith.constant 0.000000e+00 : f32
    %33 = arith.subf %cst_6, %2 : f32
    %34 = vector.broadcast %33 : f32 to vector<8x128xf32>
    %35 = arith.mulf %34, %28 : vector<8x128xf32>
    %36 = math.exp %35 : vector<8x128xf32>
    %37 = arith.subf %32, %36 : vector<8x128xf32>
    %38 = math.absf %37 : vector<8x128xf32>
    %cst_7 = arith.constant 1.000000e+00 : f32
    %39 = vector.broadcast %cst_7 : f32 to vector<8x128xf32>
    %40 = arith.subf %39, %38 : vector<8x128xf32>
    %cst_8 = arith.constant 1.000000e+00 : f32
    %41 = vector.broadcast %cst_8 : f32 to vector<8x128xf32>
    %42 = arith.subf %41, %36 : vector<8x128xf32>
    %43 = arith.mulf %40, %42 : vector<8x128xf32>
    %c5 = arith.constant 5 : index
    %44 = memref.load %arg1[%c5] : memref<258xf32, #tpu.memory_space<smem>>
    %45 = vector.broadcast %44 : f32 to vector<8x128xf32>
    %46 = arith.mulf %32, %45 : vector<8x128xf32>
    %c10 = arith.constant 10 : index
    %47 = memref.load %arg1[%c10] : memref<258xf32, #tpu.memory_space<smem>>
    %48 = vector.broadcast %47 : f32 to vector<8x128xf32>
    %49 = arith.mulf %36, %48 : vector<8x128xf32>
    %50 = arith.addf %46, %49 : vector<8x128xf32>
    %c15 = arith.constant 15 : index
    %51 = memref.load %arg1[%c15] : memref<258xf32, #tpu.memory_space<smem>>
    %52 = vector.broadcast %51 : f32 to vector<8x128xf32>
    %53 = arith.mulf %40, %52 : vector<8x128xf32>
    %54 = arith.addf %50, %53 : vector<8x128xf32>
    %c20 = arith.constant 20 : index
    %55 = memref.load %arg1[%c20] : memref<258xf32, #tpu.memory_space<smem>>
    %56 = vector.broadcast %55 : f32 to vector<8x128xf32>
    %57 = arith.mulf %42, %56 : vector<8x128xf32>
    %58 = arith.addf %54, %57 : vector<8x128xf32>
    %c25 = arith.constant 25 : index
    %59 = memref.load %arg1[%c25] : memref<258xf32, #tpu.memory_space<smem>>
    %60 = vector.broadcast %59 : f32 to vector<8x128xf32>
    %61 = arith.mulf %43, %60 : vector<8x128xf32>
    %62 = arith.addf %58, %61 : vector<8x128xf32>
    %c30 = arith.constant 30 : index
    %63 = memref.load %arg1[%c30] : memref<258xf32, #tpu.memory_space<smem>>
    %64 = vector.broadcast %63 : f32 to vector<8x128xf32>
    %65 = arith.addf %62, %64 : vector<8x128xf32>
    %cst_9 = arith.constant 0.000000e+00 : f32
    %66 = vector.broadcast %cst_9 : f32 to vector<8x128xf32>
    %67 = arith.subf %66, %65 : vector<8x128xf32>
    %68 = math.exp %67 : vector<8x128xf32>
    %cst_10 = arith.constant 1.000000e+00 : f32
    %69 = vector.broadcast %cst_10 : f32 to vector<8x128xf32>
    %70 = arith.addf %69, %68 : vector<8x128xf32>
    %71 = tpu.reciprocal %70 {approx = true} : vector<8x128xf32> -> vector<8x128xf32>
    %c6 = arith.constant 6 : index
    %72 = memref.load %arg1[%c6] : memref<258xf32, #tpu.memory_space<smem>>
    %73 = vector.broadcast %72 : f32 to vector<8x128xf32>
    %74 = arith.mulf %32, %73 : vector<8x128xf32>
    %c11 = arith.constant 11 : index
    %75 = memref.load %arg1[%c11] : memref<258xf32, #tpu.memory_space<smem>>
    %76 = vector.broadcast %75 : f32 to vector<8x128xf32>
    %77 = arith.mulf %36, %76 : vector<8x128xf32>
    %78 = arith.addf %74, %77 : vector<8x128xf32>
    %c16 = arith.constant 16 : index
    %79 = memref.load %arg1[%c16] : memref<258xf32, #tpu.memory_space<smem>>
    %80 = vector.broadcast %79 : f32 to vector<8x128xf32>
    %81 = arith.mulf %40, %80 : vector<8x128xf32>
    %82 = arith.addf %78, %81 : vector<8x128xf32>
    %c21 = arith.constant 21 : index
    %83 = memref.load %arg1[%c21] : memref<258xf32, #tpu.memory_space<smem>>
    %84 = vector.broadcast %83 : f32 to vector<8x128xf32>
    %85 = arith.mulf %42, %84 : vector<8x128xf32>
    %86 = arith.addf %82, %85 : vector<8x128xf32>
    %c26 = arith.constant 26 : index
    %87 = memref.load %arg1[%c26] : memref<258xf32, #tpu.memory_space<smem>>
    %88 = vector.broadcast %87 : f32 to vector<8x128xf32>
    %89 = arith.mulf %43, %88 : vector<8x128xf32>
    %90 = arith.addf %86, %89 : vector<8x128xf32>
    %c31 = arith.constant 31 : index
    %91 = memref.load %arg1[%c31] : memref<258xf32, #tpu.memory_space<smem>>
    %92 = vector.broadcast %91 : f32 to vector<8x128xf32>
    %93 = arith.addf %90, %92 : vector<8x128xf32>
    %cst_11 = arith.constant 0.000000e+00 : f32
    %94 = vector.broadcast %cst_11 : f32 to vector<8x128xf32>
    %95 = arith.subf %94, %93 : vector<8x128xf32>
    %96 = math.exp %95 : vector<8x128xf32>
    %cst_12 = arith.constant 1.000000e+00 : f32
    %97 = vector.broadcast %cst_12 : f32 to vector<8x128xf32>
    %98 = arith.addf %97, %96 : vector<8x128xf32>
    %99 = tpu.reciprocal %98 {approx = true} : vector<8x128xf32> -> vector<8x128xf32>
    %c7 = arith.constant 7 : index
    %100 = memref.load %arg1[%c7] : memref<258xf32, #tpu.memory_space<smem>>
    %101 = vector.broadcast %100 : f32 to vector<8x128xf32>
    %102 = arith.mulf %32, %101 : vector<8x128xf32>
    %c12 = arith.constant 12 : index
    %103 = memref.load %arg1[%c12] : memref<258xf32, #tpu.memory_space<smem>>
    %104 = vector.broadcast %103 : f32 to vector<8x128xf32>
    %105 = arith.mulf %36, %104 : vector<8x128xf32>
    %106 = arith.addf %102, %105 : vector<8x128xf32>
    %c17 = arith.constant 17 : index
    %107 = memref.load %arg1[%c17] : memref<258xf32, #tpu.memory_space<smem>>
    %108 = vector.broadcast %107 : f32 to vector<8x128xf32>
    %109 = arith.mulf %40, %108 : vector<8x128xf32>
    %110 = arith.addf %106, %109 : vector<8x128xf32>
    %c22 = arith.constant 22 : index
    %111 = memref.load %arg1[%c22] : memref<258xf32, #tpu.memory_space<smem>>
    %112 = vector.broadcast %111 : f32 to vector<8x128xf32>
    %113 = arith.mulf %42, %112 : vector<8x128xf32>
    %114 = arith.addf %110, %113 : vector<8x128xf32>
    %c27 = arith.constant 27 : index
    %115 = memref.load %arg1[%c27] : memref<258xf32, #tpu.memory_space<smem>>
    %116 = vector.broadcast %115 : f32 to vector<8x128xf32>
    %117 = arith.mulf %43, %116 : vector<8x128xf32>
    %118 = arith.addf %114, %117 : vector<8x128xf32>
    %c32 = arith.constant 32 : index
    %119 = memref.load %arg1[%c32] : memref<258xf32, #tpu.memory_space<smem>>
    %120 = vector.broadcast %119 : f32 to vector<8x128xf32>
    %121 = arith.addf %118, %120 : vector<8x128xf32>
    %cst_13 = arith.constant 0.000000e+00 : f32
    %122 = vector.broadcast %cst_13 : f32 to vector<8x128xf32>
    %123 = arith.subf %122, %121 : vector<8x128xf32>
    %124 = math.exp %123 : vector<8x128xf32>
    %cst_14 = arith.constant 1.000000e+00 : f32
    %125 = vector.broadcast %cst_14 : f32 to vector<8x128xf32>
    %126 = arith.addf %125, %124 : vector<8x128xf32>
    %127 = tpu.reciprocal %126 {approx = true} : vector<8x128xf32> -> vector<8x128xf32>
    %c8 = arith.constant 8 : index
    %128 = memref.load %arg1[%c8] : memref<258xf32, #tpu.memory_space<smem>>
    %129 = vector.broadcast %128 : f32 to vector<8x128xf32>
    %130 = arith.mulf %32, %129 : vector<8x128xf32>
    %c13 = arith.constant 13 : index
    %131 = memref.load %arg1[%c13] : memref<258xf32, #tpu.memory_space<smem>>
    %132 = vector.broadcast %131 : f32 to vector<8x128xf32>
    %133 = arith.mulf %36, %132 : vector<8x128xf32>
    %134 = arith.addf %130, %133 : vector<8x128xf32>
    %c18 = arith.constant 18 : index
    %135 = memref.load %arg1[%c18] : memref<258xf32, #tpu.memory_space<smem>>
    %136 = vector.broadcast %135 : f32 to vector<8x128xf32>
    %137 = arith.mulf %40, %136 : vector<8x128xf32>
    %138 = arith.addf %134, %137 : vector<8x128xf32>
    %c23 = arith.constant 23 : index
    %139 = memref.load %arg1[%c23] : memref<258xf32, #tpu.memory_space<smem>>
    %140 = vector.broadcast %139 : f32 to vector<8x128xf32>
    %141 = arith.mulf %42, %140 : vector<8x128xf32>
    %142 = arith.addf %138, %141 : vector<8x128xf32>
    %c28 = arith.constant 28 : index
    %143 = memref.load %arg1[%c28] : memref<258xf32, #tpu.memory_space<smem>>
    %144 = vector.broadcast %143 : f32 to vector<8x128xf32>
    %145 = arith.mulf %43, %144 : vector<8x128xf32>
    %146 = arith.addf %142, %145 : vector<8x128xf32>
    %c33 = arith.constant 33 : index
    %147 = memref.load %arg1[%c33] : memref<258xf32, #tpu.memory_space<smem>>
    %148 = vector.broadcast %147 : f32 to vector<8x128xf32>
    %149 = arith.addf %146, %148 : vector<8x128xf32>
    %cst_15 = arith.constant 0.000000e+00 : f32
    %150 = vector.broadcast %cst_15 : f32 to vector<8x128xf32>
    %151 = arith.subf %150, %149 : vector<8x128xf32>
    %152 = math.exp %151 : vector<8x128xf32>
    %cst_16 = arith.constant 1.000000e+00 : f32
    %153 = vector.broadcast %cst_16 : f32 to vector<8x128xf32>
    %154 = arith.addf %153, %152 : vector<8x128xf32>
    %155 = tpu.reciprocal %154 {approx = true} : vector<8x128xf32> -> vector<8x128xf32>
    %c9 = arith.constant 9 : index
    %156 = memref.load %arg1[%c9] : memref<258xf32, #tpu.memory_space<smem>>
    %157 = vector.broadcast %156 : f32 to vector<8x128xf32>
    %158 = arith.mulf %32, %157 : vector<8x128xf32>
    %c14 = arith.constant 14 : index
    %159 = memref.load %arg1[%c14] : memref<258xf32, #tpu.memory_space<smem>>
    %160 = vector.broadcast %159 : f32 to vector<8x128xf32>
    %161 = arith.mulf %36, %160 : vector<8x128xf32>
    %162 = arith.addf %158, %161 : vector<8x128xf32>
    %c19 = arith.constant 19 : index
    %163 = memref.load %arg1[%c19] : memref<258xf32, #tpu.memory_space<smem>>
    %164 = vector.broadcast %163 : f32 to vector<8x128xf32>
    %165 = arith.mulf %40, %164 : vector<8x128xf32>
    %166 = arith.addf %162, %165 : vector<8x128xf32>
    %c24 = arith.constant 24 : index
    %167 = memref.load %arg1[%c24] : memref<258xf32, #tpu.memory_space<smem>>
    %168 = vector.broadcast %167 : f32 to vector<8x128xf32>
    %169 = arith.mulf %42, %168 : vector<8x128xf32>
    %170 = arith.addf %166, %169 : vector<8x128xf32>
    %c29 = arith.constant 29 : index
    %171 = memref.load %arg1[%c29] : memref<258xf32, #tpu.memory_space<smem>>
    %172 = vector.broadcast %171 : f32 to vector<8x128xf32>
    %173 = arith.mulf %43, %172 : vector<8x128xf32>
    %174 = arith.addf %170, %173 : vector<8x128xf32>
    %c34 = arith.constant 34 : index
    %175 = memref.load %arg1[%c34] : memref<258xf32, #tpu.memory_space<smem>>
    %176 = vector.broadcast %175 : f32 to vector<8x128xf32>
    %177 = arith.addf %174, %176 : vector<8x128xf32>
    %cst_17 = arith.constant 0.000000e+00 : f32
    %178 = vector.broadcast %cst_17 : f32 to vector<8x128xf32>
    %179 = arith.subf %178, %177 : vector<8x128xf32>
    %180 = math.exp %179 : vector<8x128xf32>
    %cst_18 = arith.constant 1.000000e+00 : f32
    %181 = vector.broadcast %cst_18 : f32 to vector<8x128xf32>
    %182 = arith.addf %181, %180 : vector<8x128xf32>
    %183 = tpu.reciprocal %182 {approx = true} : vector<8x128xf32> -> vector<8x128xf32>
    %c35 = arith.constant 35 : index
    %184 = memref.load %arg1[%c35] : memref<258xf32, #tpu.memory_space<smem>>
    %185 = vector.broadcast %184 : f32 to vector<8x128xf32>
    %186 = arith.mulf %71, %185 : vector<8x128xf32>
    %c40 = arith.constant 40 : index
    %187 = memref.load %arg1[%c40] : memref<258xf32, #tpu.memory_space<smem>>
    %188 = vector.broadcast %187 : f32 to vector<8x128xf32>
    %189 = arith.mulf %99, %188 : vector<8x128xf32>
    %190 = arith.addf %186, %189 : vector<8x128xf32>
    %c45 = arith.constant 45 : index
    %191 = memref.load %arg1[%c45] : memref<258xf32, #tpu.memory_space<smem>>
    %192 = vector.broadcast %191 : f32 to vector<8x128xf32>
    %193 = arith.mulf %127, %192 : vector<8x128xf32>
    %194 = arith.addf %190, %193 : vector<8x128xf32>
    %c50 = arith.constant 50 : index
    %195 = memref.load %arg1[%c50] : memref<258xf32, #tpu.memory_space<smem>>
    %196 = vector.broadcast %195 : f32 to vector<8x128xf32>
    %197 = arith.mulf %155, %196 : vector<8x128xf32>
    %198 = arith.addf %194, %197 : vector<8x128xf32>
    %c55 = arith.constant 55 : index
    %199 = memref.load %arg1[%c55] : memref<258xf32, #tpu.memory_space<smem>>
    %200 = vector.broadcast %199 : f32 to vector<8x128xf32>
    %201 = arith.mulf %183, %200 : vector<8x128xf32>
    %202 = arith.addf %198, %201 : vector<8x128xf32>
    %c60 = arith.constant 60 : index
    %203 = memref.load %arg1[%c60] : memref<258xf32, #tpu.memory_space<smem>>
    %204 = vector.broadcast %203 : f32 to vector<8x128xf32>
    %205 = arith.addf %202, %204 : vector<8x128xf32>
    %cst_19 = arith.constant 0.000000e+00 : f32
    %206 = vector.broadcast %cst_19 : f32 to vector<8x128xf32>
    %207 = arith.subf %206, %205 : vector<8x128xf32>
    %208 = math.exp %207 : vector<8x128xf32>
    %cst_20 = arith.constant 1.000000e+00 : f32
    %209 = vector.broadcast %cst_20 : f32 to vector<8x128xf32>
    %210 = arith.addf %209, %208 : vector<8x128xf32>
    %211 = tpu.reciprocal %210 {approx = true} : vector<8x128xf32> -> vector<8x128xf32>
    %c36 = arith.constant 36 : index
    %212 = memref.load %arg1[%c36] : memref<258xf32, #tpu.memory_space<smem>>
    %213 = vector.broadcast %212 : f32 to vector<8x128xf32>
    %214 = arith.mulf %71, %213 : vector<8x128xf32>
    %c41 = arith.constant 41 : index
    %215 = memref.load %arg1[%c41] : memref<258xf32, #tpu.memory_space<smem>>
    %216 = vector.broadcast %215 : f32 to vector<8x128xf32>
    %217 = arith.mulf %99, %216 : vector<8x128xf32>
    %218 = arith.addf %214, %217 : vector<8x128xf32>
    %c46 = arith.constant 46 : index
    %219 = memref.load %arg1[%c46] : memref<258xf32, #tpu.memory_space<smem>>
    %220 = vector.broadcast %219 : f32 to vector<8x128xf32>
    %221 = arith.mulf %127, %220 : vector<8x128xf32>
    %222 = arith.addf %218, %221 : vector<8x128xf32>
    %c51 = arith.constant 51 : index
    %223 = memref.load %arg1[%c51] : memref<258xf32, #tpu.memory_space<smem>>
    %224 = vector.broadcast %223 : f32 to vector<8x128xf32>
    %225 = arith.mulf %155, %224 : vector<8x128xf32>
    %226 = arith.addf %222, %225 : vector<8x128xf32>
    %c56 = arith.constant 56 : index
    %227 = memref.load %arg1[%c56] : memref<258xf32, #tpu.memory_space<smem>>
    %228 = vector.broadcast %227 : f32 to vector<8x128xf32>
    %229 = arith.mulf %183, %228 : vector<8x128xf32>
    %230 = arith.addf %226, %229 : vector<8x128xf32>
    %c61 = arith.constant 61 : index
    %231 = memref.load %arg1[%c61] : memref<258xf32, #tpu.memory_space<smem>>
    %232 = vector.broadcast %231 : f32 to vector<8x128xf32>
    %233 = arith.addf %230, %232 : vector<8x128xf32>
    %cst_21 = arith.constant 0.000000e+00 : f32
    %234 = vector.broadcast %cst_21 : f32 to vector<8x128xf32>
    %235 = arith.subf %234, %233 : vector<8x128xf32>
    %236 = math.exp %235 : vector<8x128xf32>
    %cst_22 = arith.constant 1.000000e+00 : f32
    %237 = vector.broadcast %cst_22 : f32 to vector<8x128xf32>
    %238 = arith.addf %237, %236 : vector<8x128xf32>
    %239 = tpu.reciprocal %238 {approx = true} : vector<8x128xf32> -> vector<8x128xf32>
    %c37 = arith.constant 37 : index
    %240 = memref.load %arg1[%c37] : memref<258xf32, #tpu.memory_space<smem>>
    %241 = vector.broadcast %240 : f32 to vector<8x128xf32>
    %242 = arith.mulf %71, %241 : vector<8x128xf32>
    %c42 = arith.constant 42 : index
    %243 = memref.load %arg1[%c42] : memref<258xf32, #tpu.memory_space<smem>>
    %244 = vector.broadcast %243 : f32 to vector<8x128xf32>
    %245 = arith.mulf %99, %244 : vector<8x128xf32>
    %246 = arith.addf %242, %245 : vector<8x128xf32>
    %c47 = arith.constant 47 : index
    %247 = memref.load %arg1[%c47] : memref<258xf32, #tpu.memory_space<smem>>
    %248 = vector.broadcast %247 : f32 to vector<8x128xf32>
    %249 = arith.mulf %127, %248 : vector<8x128xf32>
    %250 = arith.addf %246, %249 : vector<8x128xf32>
    %c52 = arith.constant 52 : index
    %251 = memref.load %arg1[%c52] : memref<258xf32, #tpu.memory_space<smem>>
    %252 = vector.broadcast %251 : f32 to vector<8x128xf32>
    %253 = arith.mulf %155, %252 : vector<8x128xf32>
    %254 = arith.addf %250, %253 : vector<8x128xf32>
    %c57 = arith.constant 57 : index
    %255 = memref.load %arg1[%c57] : memref<258xf32, #tpu.memory_space<smem>>
    %256 = vector.broadcast %255 : f32 to vector<8x128xf32>
    %257 = arith.mulf %183, %256 : vector<8x128xf32>
    %258 = arith.addf %254, %257 : vector<8x128xf32>
    %c62 = arith.constant 62 : index
    %259 = memref.load %arg1[%c62] : memref<258xf32, #tpu.memory_space<smem>>
    %260 = vector.broadcast %259 : f32 to vector<8x128xf32>
    %261 = arith.addf %258, %260 : vector<8x128xf32>
    %cst_23 = arith.constant 0.000000e+00 : f32
    %262 = vector.broadcast %cst_23 : f32 to vector<8x128xf32>
    %263 = arith.subf %262, %261 : vector<8x128xf32>
    %264 = math.exp %263 : vector<8x128xf32>
    %cst_24 = arith.constant 1.000000e+00 : f32
    %265 = vector.broadcast %cst_24 : f32 to vector<8x128xf32>
    %266 = arith.addf %265, %264 : vector<8x128xf32>
    %267 = tpu.reciprocal %266 {approx = true} : vector<8x128xf32> -> vector<8x128xf32>
    %c38 = arith.constant 38 : index
    %268 = memref.load %arg1[%c38] : memref<258xf32, #tpu.memory_space<smem>>
    %269 = vector.broadcast %268 : f32 to vector<8x128xf32>
    %270 = arith.mulf %71, %269 : vector<8x128xf32>
    %c43 = arith.constant 43 : index
    %271 = memref.load %arg1[%c43] : memref<258xf32, #tpu.memory_space<smem>>
    %272 = vector.broadcast %271 : f32 to vector<8x128xf32>
    %273 = arith.mulf %99, %272 : vector<8x128xf32>
    %274 = arith.addf %270, %273 : vector<8x128xf32>
    %c48 = arith.constant 48 : index
    %275 = memref.load %arg1[%c48] : memref<258xf32, #tpu.memory_space<smem>>
    %276 = vector.broadcast %275 : f32 to vector<8x128xf32>
    %277 = arith.mulf %127, %276 : vector<8x128xf32>
    %278 = arith.addf %274, %277 : vector<8x128xf32>
    %c53 = arith.constant 53 : index
    %279 = memref.load %arg1[%c53] : memref<258xf32, #tpu.memory_space<smem>>
    %280 = vector.broadcast %279 : f32 to vector<8x128xf32>
    %281 = arith.mulf %155, %280 : vector<8x128xf32>
    %282 = arith.addf %278, %281 : vector<8x128xf32>
    %c58 = arith.constant 58 : index
    %283 = memref.load %arg1[%c58] : memref<258xf32, #tpu.memory_space<smem>>
    %284 = vector.broadcast %283 : f32 to vector<8x128xf32>
    %285 = arith.mulf %183, %284 : vector<8x128xf32>
    %286 = arith.addf %282, %285 : vector<8x128xf32>
    %c63 = arith.constant 63 : index
    %287 = memref.load %arg1[%c63] : memref<258xf32, #tpu.memory_space<smem>>
    %288 = vector.broadcast %287 : f32 to vector<8x128xf32>
    %289 = arith.addf %286, %288 : vector<8x128xf32>
    %cst_25 = arith.constant 0.000000e+00 : f32
    %290 = vector.broadcast %cst_25 : f32 to vector<8x128xf32>
    %291 = arith.subf %290, %289 : vector<8x128xf32>
    %292 = math.exp %291 : vector<8x128xf32>
    %cst_26 = arith.constant 1.000000e+00 : f32
    %293 = vector.broadcast %cst_26 : f32 to vector<8x128xf32>
    %294 = arith.addf %293, %292 : vector<8x128xf32>
    %295 = tpu.reciprocal %294 {approx = true} : vector<8x128xf32> -> vector<8x128xf32>
    %c39 = arith.constant 39 : index
    %296 = memref.load %arg1[%c39] : memref<258xf32, #tpu.memory_space<smem>>
    %297 = vector.broadcast %296 : f32 to vector<8x128xf32>
    %298 = arith.mulf %71, %297 : vector<8x128xf32>
    %c44 = arith.constant 44 : index
    %299 = memref.load %arg1[%c44] : memref<258xf32, #tpu.memory_space<smem>>
    %300 = vector.broadcast %299 : f32 to vector<8x128xf32>
    %301 = arith.mulf %99, %300 : vector<8x128xf32>
    %302 = arith.addf %298, %301 : vector<8x128xf32>
    %c49 = arith.constant 49 : index
    %303 = memref.load %arg1[%c49] : memref<258xf32, #tpu.memory_space<smem>>
    %304 = vector.broadcast %303 : f32 to vector<8x128xf32>
    %305 = arith.mulf %127, %304 : vector<8x128xf32>
    %306 = arith.addf %302, %305 : vector<8x128xf32>
    %c54 = arith.constant 54 : index
    %307 = memref.load %arg1[%c54] : memref<258xf32, #tpu.memory_space<smem>>
    %308 = vector.broadcast %307 : f32 to vector<8x128xf32>
    %309 = arith.mulf %155, %308 : vector<8x128xf32>
    %310 = arith.addf %306, %309 : vector<8x128xf32>
    %c59 = arith.constant 59 : index
    %311 = memref.load %arg1[%c59] : memref<258xf32, #tpu.memory_space<smem>>
    %312 = vector.broadcast %311 : f32 to vector<8x128xf32>
    %313 = arith.mulf %183, %312 : vector<8x128xf32>
    %314 = arith.addf %310, %313 : vector<8x128xf32>
    %c64 = arith.constant 64 : index
    %315 = memref.load %arg1[%c64] : memref<258xf32, #tpu.memory_space<smem>>
    %316 = vector.broadcast %315 : f32 to vector<8x128xf32>
    %317 = arith.addf %314, %316 : vector<8x128xf32>
    %cst_27 = arith.constant 0.000000e+00 : f32
    %318 = vector.broadcast %cst_27 : f32 to vector<8x128xf32>
    %319 = arith.subf %318, %317 : vector<8x128xf32>
    %320 = math.exp %319 : vector<8x128xf32>
    %cst_28 = arith.constant 1.000000e+00 : f32
    %321 = vector.broadcast %cst_28 : f32 to vector<8x128xf32>
    %322 = arith.addf %321, %320 : vector<8x128xf32>
    %323 = tpu.reciprocal %322 {approx = true} : vector<8x128xf32> -> vector<8x128xf32>
    %c65 = arith.constant 65 : index
    %324 = memref.load %arg1[%c65] : memref<258xf32, #tpu.memory_space<smem>>
    %325 = vector.broadcast %324 : f32 to vector<8x128xf32>
    %326 = arith.mulf %40, %325 : vector<8x128xf32>
    %c75 = arith.constant 75 : index
    %327 = memref.load %arg1[%c75] : memref<258xf32, #tpu.memory_space<smem>>
    %328 = vector.broadcast %327 : f32 to vector<8x128xf32>
    %329 = arith.mulf %42, %328 : vector<8x128xf32>
    %330 = arith.addf %326, %329 : vector<8x128xf32>
    %c85 = arith.constant 85 : index
    %331 = memref.load %arg1[%c85] : memref<258xf32, #tpu.memory_space<smem>>
    %332 = vector.broadcast %331 : f32 to vector<8x128xf32>
    %333 = arith.mulf %43, %332 : vector<8x128xf32>
    %334 = arith.addf %330, %333 : vector<8x128xf32>
    %c95 = arith.constant 95 : index
    %335 = memref.load %arg1[%c95] : memref<258xf32, #tpu.memory_space<smem>>
    %336 = vector.broadcast %335 : f32 to vector<8x128xf32>
    %337 = arith.addf %334, %336 : vector<8x128xf32>
    %cst_29 = arith.constant 0.000000e+00 : f32
    %338 = vector.broadcast %cst_29 : f32 to vector<8x128xf32>
    %339 = arith.maximumf %337, %338 : vector<8x128xf32>
    %c66 = arith.constant 66 : index
    %340 = memref.load %arg1[%c66] : memref<258xf32, #tpu.memory_space<smem>>
    %341 = vector.broadcast %340 : f32 to vector<8x128xf32>
    %342 = arith.mulf %40, %341 : vector<8x128xf32>
    %c76 = arith.constant 76 : index
    %343 = memref.load %arg1[%c76] : memref<258xf32, #tpu.memory_space<smem>>
    %344 = vector.broadcast %343 : f32 to vector<8x128xf32>
    %345 = arith.mulf %42, %344 : vector<8x128xf32>
    %346 = arith.addf %342, %345 : vector<8x128xf32>
    %c86 = arith.constant 86 : index
    %347 = memref.load %arg1[%c86] : memref<258xf32, #tpu.memory_space<smem>>
    %348 = vector.broadcast %347 : f32 to vector<8x128xf32>
    %349 = arith.mulf %43, %348 : vector<8x128xf32>
    %350 = arith.addf %346, %349 : vector<8x128xf32>
    %c96 = arith.constant 96 : index
    %351 = memref.load %arg1[%c96] : memref<258xf32, #tpu.memory_space<smem>>
    %352 = vector.broadcast %351 : f32 to vector<8x128xf32>
    %353 = arith.addf %350, %352 : vector<8x128xf32>
    %cst_30 = arith.constant 0.000000e+00 : f32
    %354 = vector.broadcast %cst_30 : f32 to vector<8x128xf32>
    %355 = arith.maximumf %353, %354 : vector<8x128xf32>
    %c67 = arith.constant 67 : index
    %356 = memref.load %arg1[%c67] : memref<258xf32, #tpu.memory_space<smem>>
    %357 = vector.broadcast %356 : f32 to vector<8x128xf32>
    %358 = arith.mulf %40, %357 : vector<8x128xf32>
    %c77 = arith.constant 77 : index
    %359 = memref.load %arg1[%c77] : memref<258xf32, #tpu.memory_space<smem>>
    %360 = vector.broadcast %359 : f32 to vector<8x128xf32>
    %361 = arith.mulf %42, %360 : vector<8x128xf32>
    %362 = arith.addf %358, %361 : vector<8x128xf32>
    %c87 = arith.constant 87 : index
    %363 = memref.load %arg1[%c87] : memref<258xf32, #tpu.memory_space<smem>>
    %364 = vector.broadcast %363 : f32 to vector<8x128xf32>
    %365 = arith.mulf %43, %364 : vector<8x128xf32>
    %366 = arith.addf %362, %365 : vector<8x128xf32>
    %c97 = arith.constant 97 : index
    %367 = memref.load %arg1[%c97] : memref<258xf32, #tpu.memory_space<smem>>
    %368 = vector.broadcast %367 : f32 to vector<8x128xf32>
    %369 = arith.addf %366, %368 : vector<8x128xf32>
    %cst_31 = arith.constant 0.000000e+00 : f32
    %370 = vector.broadcast %cst_31 : f32 to vector<8x128xf32>
    %371 = arith.maximumf %369, %370 : vector<8x128xf32>
    %c68 = arith.constant 68 : index
    %372 = memref.load %arg1[%c68] : memref<258xf32, #tpu.memory_space<smem>>
    %373 = vector.broadcast %372 : f32 to vector<8x128xf32>
    %374 = arith.mulf %40, %373 : vector<8x128xf32>
    %c78 = arith.constant 78 : index
    %375 = memref.load %arg1[%c78] : memref<258xf32, #tpu.memory_space<smem>>
    %376 = vector.broadcast %375 : f32 to vector<8x128xf32>
    %377 = arith.mulf %42, %376 : vector<8x128xf32>
    %378 = arith.addf %374, %377 : vector<8x128xf32>
    %c88 = arith.constant 88 : index
    %379 = memref.load %arg1[%c88] : memref<258xf32, #tpu.memory_space<smem>>
    %380 = vector.broadcast %379 : f32 to vector<8x128xf32>
    %381 = arith.mulf %43, %380 : vector<8x128xf32>
    %382 = arith.addf %378, %381 : vector<8x128xf32>
    %c98 = arith.constant 98 : index
    %383 = memref.load %arg1[%c98] : memref<258xf32, #tpu.memory_space<smem>>
    %384 = vector.broadcast %383 : f32 to vector<8x128xf32>
    %385 = arith.addf %382, %384 : vector<8x128xf32>
    %cst_32 = arith.constant 0.000000e+00 : f32
    %386 = vector.broadcast %cst_32 : f32 to vector<8x128xf32>
    %387 = arith.maximumf %385, %386 : vector<8x128xf32>
    %c69 = arith.constant 69 : index
    %388 = memref.load %arg1[%c69] : memref<258xf32, #tpu.memory_space<smem>>
    %389 = vector.broadcast %388 : f32 to vector<8x128xf32>
    %390 = arith.mulf %40, %389 : vector<8x128xf32>
    %c79 = arith.constant 79 : index
    %391 = memref.load %arg1[%c79] : memref<258xf32, #tpu.memory_space<smem>>
    %392 = vector.broadcast %391 : f32 to vector<8x128xf32>
    %393 = arith.mulf %42, %392 : vector<8x128xf32>
    %394 = arith.addf %390, %393 : vector<8x128xf32>
    %c89 = arith.constant 89 : index
    %395 = memref.load %arg1[%c89] : memref<258xf32, #tpu.memory_space<smem>>
    %396 = vector.broadcast %395 : f32 to vector<8x128xf32>
    %397 = arith.mulf %43, %396 : vector<8x128xf32>
    %398 = arith.addf %394, %397 : vector<8x128xf32>
    %c99 = arith.constant 99 : index
    %399 = memref.load %arg1[%c99] : memref<258xf32, #tpu.memory_space<smem>>
    %400 = vector.broadcast %399 : f32 to vector<8x128xf32>
    %401 = arith.addf %398, %400 : vector<8x128xf32>
    %cst_33 = arith.constant 0.000000e+00 : f32
    %402 = vector.broadcast %cst_33 : f32 to vector<8x128xf32>
    %403 = arith.maximumf %401, %402 : vector<8x128xf32>
    %c70 = arith.constant 70 : index
    %404 = memref.load %arg1[%c70] : memref<258xf32, #tpu.memory_space<smem>>
    %405 = vector.broadcast %404 : f32 to vector<8x128xf32>
    %406 = arith.mulf %40, %405 : vector<8x128xf32>
    %c80 = arith.constant 80 : index
    %407 = memref.load %arg1[%c80] : memref<258xf32, #tpu.memory_space<smem>>
    %408 = vector.broadcast %407 : f32 to vector<8x128xf32>
    %409 = arith.mulf %42, %408 : vector<8x128xf32>
    %410 = arith.addf %406, %409 : vector<8x128xf32>
    %c90 = arith.constant 90 : index
    %411 = memref.load %arg1[%c90] : memref<258xf32, #tpu.memory_space<smem>>
    %412 = vector.broadcast %411 : f32 to vector<8x128xf32>
    %413 = arith.mulf %43, %412 : vector<8x128xf32>
    %414 = arith.addf %410, %413 : vector<8x128xf32>
    %c100 = arith.constant 100 : index
    %415 = memref.load %arg1[%c100] : memref<258xf32, #tpu.memory_space<smem>>
    %416 = vector.broadcast %415 : f32 to vector<8x128xf32>
    %417 = arith.addf %414, %416 : vector<8x128xf32>
    %cst_34 = arith.constant 0.000000e+00 : f32
    %418 = vector.broadcast %cst_34 : f32 to vector<8x128xf32>
    %419 = arith.maximumf %417, %418 : vector<8x128xf32>
    %c71 = arith.constant 71 : index
    %420 = memref.load %arg1[%c71] : memref<258xf32, #tpu.memory_space<smem>>
    %421 = vector.broadcast %420 : f32 to vector<8x128xf32>
    %422 = arith.mulf %40, %421 : vector<8x128xf32>
    %c81 = arith.constant 81 : index
    %423 = memref.load %arg1[%c81] : memref<258xf32, #tpu.memory_space<smem>>
    %424 = vector.broadcast %423 : f32 to vector<8x128xf32>
    %425 = arith.mulf %42, %424 : vector<8x128xf32>
    %426 = arith.addf %422, %425 : vector<8x128xf32>
    %c91 = arith.constant 91 : index
    %427 = memref.load %arg1[%c91] : memref<258xf32, #tpu.memory_space<smem>>
    %428 = vector.broadcast %427 : f32 to vector<8x128xf32>
    %429 = arith.mulf %43, %428 : vector<8x128xf32>
    %430 = arith.addf %426, %429 : vector<8x128xf32>
    %c101 = arith.constant 101 : index
    %431 = memref.load %arg1[%c101] : memref<258xf32, #tpu.memory_space<smem>>
    %432 = vector.broadcast %431 : f32 to vector<8x128xf32>
    %433 = arith.addf %430, %432 : vector<8x128xf32>
    %cst_35 = arith.constant 0.000000e+00 : f32
    %434 = vector.broadcast %cst_35 : f32 to vector<8x128xf32>
    %435 = arith.maximumf %433, %434 : vector<8x128xf32>
    %c72 = arith.constant 72 : index
    %436 = memref.load %arg1[%c72] : memref<258xf32, #tpu.memory_space<smem>>
    %437 = vector.broadcast %436 : f32 to vector<8x128xf32>
    %438 = arith.mulf %40, %437 : vector<8x128xf32>
    %c82 = arith.constant 82 : index
    %439 = memref.load %arg1[%c82] : memref<258xf32, #tpu.memory_space<smem>>
    %440 = vector.broadcast %439 : f32 to vector<8x128xf32>
    %441 = arith.mulf %42, %440 : vector<8x128xf32>
    %442 = arith.addf %438, %441 : vector<8x128xf32>
    %c92 = arith.constant 92 : index
    %443 = memref.load %arg1[%c92] : memref<258xf32, #tpu.memory_space<smem>>
    %444 = vector.broadcast %443 : f32 to vector<8x128xf32>
    %445 = arith.mulf %43, %444 : vector<8x128xf32>
    %446 = arith.addf %442, %445 : vector<8x128xf32>
    %c102 = arith.constant 102 : index
    %447 = memref.load %arg1[%c102] : memref<258xf32, #tpu.memory_space<smem>>
    %448 = vector.broadcast %447 : f32 to vector<8x128xf32>
    %449 = arith.addf %446, %448 : vector<8x128xf32>
    %cst_36 = arith.constant 0.000000e+00 : f32
    %450 = vector.broadcast %cst_36 : f32 to vector<8x128xf32>
    %451 = arith.maximumf %449, %450 : vector<8x128xf32>
    %c73 = arith.constant 73 : index
    %452 = memref.load %arg1[%c73] : memref<258xf32, #tpu.memory_space<smem>>
    %453 = vector.broadcast %452 : f32 to vector<8x128xf32>
    %454 = arith.mulf %40, %453 : vector<8x128xf32>
    %c83 = arith.constant 83 : index
    %455 = memref.load %arg1[%c83] : memref<258xf32, #tpu.memory_space<smem>>
    %456 = vector.broadcast %455 : f32 to vector<8x128xf32>
    %457 = arith.mulf %42, %456 : vector<8x128xf32>
    %458 = arith.addf %454, %457 : vector<8x128xf32>
    %c93 = arith.constant 93 : index
    %459 = memref.load %arg1[%c93] : memref<258xf32, #tpu.memory_space<smem>>
    %460 = vector.broadcast %459 : f32 to vector<8x128xf32>
    %461 = arith.mulf %43, %460 : vector<8x128xf32>
    %462 = arith.addf %458, %461 : vector<8x128xf32>
    %c103 = arith.constant 103 : index
    %463 = memref.load %arg1[%c103] : memref<258xf32, #tpu.memory_space<smem>>
    %464 = vector.broadcast %463 : f32 to vector<8x128xf32>
    %465 = arith.addf %462, %464 : vector<8x128xf32>
    %cst_37 = arith.constant 0.000000e+00 : f32
    %466 = vector.broadcast %cst_37 : f32 to vector<8x128xf32>
    %467 = arith.maximumf %465, %466 : vector<8x128xf32>
    %c74 = arith.constant 74 : index
    %468 = memref.load %arg1[%c74] : memref<258xf32, #tpu.memory_space<smem>>
    %469 = vector.broadcast %468 : f32 to vector<8x128xf32>
    %470 = arith.mulf %40, %469 : vector<8x128xf32>
    %c84 = arith.constant 84 : index
    %471 = memref.load %arg1[%c84] : memref<258xf32, #tpu.memory_space<smem>>
    %472 = vector.broadcast %471 : f32 to vector<8x128xf32>
    %473 = arith.mulf %42, %472 : vector<8x128xf32>
    %474 = arith.addf %470, %473 : vector<8x128xf32>
    %c94 = arith.constant 94 : index
    %475 = memref.load %arg1[%c94] : memref<258xf32, #tpu.memory_space<smem>>
    %476 = vector.broadcast %475 : f32 to vector<8x128xf32>
    %477 = arith.mulf %43, %476 : vector<8x128xf32>
    %478 = arith.addf %474, %477 : vector<8x128xf32>
    %c104 = arith.constant 104 : index
    %479 = memref.load %arg1[%c104] : memref<258xf32, #tpu.memory_space<smem>>
    %480 = vector.broadcast %479 : f32 to vector<8x128xf32>
    %481 = arith.addf %478, %480 : vector<8x128xf32>
    %cst_38 = arith.constant 0.000000e+00 : f32
    %482 = vector.broadcast %cst_38 : f32 to vector<8x128xf32>
    %483 = arith.maximumf %481, %482 : vector<8x128xf32>
    %c105 = arith.constant 105 : index
    %484 = memref.load %arg1[%c105] : memref<258xf32, #tpu.memory_space<smem>>
    %485 = vector.broadcast %484 : f32 to vector<8x128xf32>
    %486 = arith.mulf %339, %485 : vector<8x128xf32>
    %c110 = arith.constant 110 : index
    %487 = memref.load %arg1[%c110] : memref<258xf32, #tpu.memory_space<smem>>
    %488 = vector.broadcast %487 : f32 to vector<8x128xf32>
    %489 = arith.mulf %355, %488 : vector<8x128xf32>
    %490 = arith.addf %486, %489 : vector<8x128xf32>
    %c115 = arith.constant 115 : index
    %491 = memref.load %arg1[%c115] : memref<258xf32, #tpu.memory_space<smem>>
    %492 = vector.broadcast %491 : f32 to vector<8x128xf32>
    %493 = arith.mulf %371, %492 : vector<8x128xf32>
    %494 = arith.addf %490, %493 : vector<8x128xf32>
    %c120 = arith.constant 120 : index
    %495 = memref.load %arg1[%c120] : memref<258xf32, #tpu.memory_space<smem>>
    %496 = vector.broadcast %495 : f32 to vector<8x128xf32>
    %497 = arith.mulf %387, %496 : vector<8x128xf32>
    %498 = arith.addf %494, %497 : vector<8x128xf32>
    %c125 = arith.constant 125 : index
    %499 = memref.load %arg1[%c125] : memref<258xf32, #tpu.memory_space<smem>>
    %500 = vector.broadcast %499 : f32 to vector<8x128xf32>
    %501 = arith.mulf %403, %500 : vector<8x128xf32>
    %502 = arith.addf %498, %501 : vector<8x128xf32>
    %c130 = arith.constant 130 : index
    %503 = memref.load %arg1[%c130] : memref<258xf32, #tpu.memory_space<smem>>
    %504 = vector.broadcast %503 : f32 to vector<8x128xf32>
    %505 = arith.mulf %419, %504 : vector<8x128xf32>
    %506 = arith.addf %502, %505 : vector<8x128xf32>
    %c135 = arith.constant 135 : index
    %507 = memref.load %arg1[%c135] : memref<258xf32, #tpu.memory_space<smem>>
    %508 = vector.broadcast %507 : f32 to vector<8x128xf32>
    %509 = arith.mulf %435, %508 : vector<8x128xf32>
    %510 = arith.addf %506, %509 : vector<8x128xf32>
    %c140 = arith.constant 140 : index
    %511 = memref.load %arg1[%c140] : memref<258xf32, #tpu.memory_space<smem>>
    %512 = vector.broadcast %511 : f32 to vector<8x128xf32>
    %513 = arith.mulf %451, %512 : vector<8x128xf32>
    %514 = arith.addf %510, %513 : vector<8x128xf32>
    %c145 = arith.constant 145 : index
    %515 = memref.load %arg1[%c145] : memref<258xf32, #tpu.memory_space<smem>>
    %516 = vector.broadcast %515 : f32 to vector<8x128xf32>
    %517 = arith.mulf %467, %516 : vector<8x128xf32>
    %518 = arith.addf %514, %517 : vector<8x128xf32>
    %c150 = arith.constant 150 : index
    %519 = memref.load %arg1[%c150] : memref<258xf32, #tpu.memory_space<smem>>
    %520 = vector.broadcast %519 : f32 to vector<8x128xf32>
    %521 = arith.mulf %483, %520 : vector<8x128xf32>
    %522 = arith.addf %518, %521 : vector<8x128xf32>
    %c155 = arith.constant 155 : index
    %523 = memref.load %arg1[%c155] : memref<258xf32, #tpu.memory_space<smem>>
    %524 = vector.broadcast %523 : f32 to vector<8x128xf32>
    %525 = arith.addf %522, %524 : vector<8x128xf32>
    %cst_39 = arith.constant 0.000000e+00 : f32
    %526 = vector.broadcast %cst_39 : f32 to vector<8x128xf32>
    %527 = arith.subf %526, %525 : vector<8x128xf32>
    %528 = math.exp %527 : vector<8x128xf32>
    %cst_40 = arith.constant 1.000000e+00 : f32
    %529 = vector.broadcast %cst_40 : f32 to vector<8x128xf32>
    %530 = arith.addf %529, %528 : vector<8x128xf32>
    %531 = tpu.reciprocal %530 {approx = true} : vector<8x128xf32> -> vector<8x128xf32>
    %c106 = arith.constant 106 : index
    %532 = memref.load %arg1[%c106] : memref<258xf32, #tpu.memory_space<smem>>
    %533 = vector.broadcast %532 : f32 to vector<8x128xf32>
    %534 = arith.mulf %339, %533 : vector<8x128xf32>
    %c111 = arith.constant 111 : index
    %535 = memref.load %arg1[%c111] : memref<258xf32, #tpu.memory_space<smem>>
    %536 = vector.broadcast %535 : f32 to vector<8x128xf32>
    %537 = arith.mulf %355, %536 : vector<8x128xf32>
    %538 = arith.addf %534, %537 : vector<8x128xf32>
    %c116 = arith.constant 116 : index
    %539 = memref.load %arg1[%c116] : memref<258xf32, #tpu.memory_space<smem>>
    %540 = vector.broadcast %539 : f32 to vector<8x128xf32>
    %541 = arith.mulf %371, %540 : vector<8x128xf32>
    %542 = arith.addf %538, %541 : vector<8x128xf32>
    %c121 = arith.constant 121 : index
    %543 = memref.load %arg1[%c121] : memref<258xf32, #tpu.memory_space<smem>>
    %544 = vector.broadcast %543 : f32 to vector<8x128xf32>
    %545 = arith.mulf %387, %544 : vector<8x128xf32>
    %546 = arith.addf %542, %545 : vector<8x128xf32>
    %c126 = arith.constant 126 : index
    %547 = memref.load %arg1[%c126] : memref<258xf32, #tpu.memory_space<smem>>
    %548 = vector.broadcast %547 : f32 to vector<8x128xf32>
    %549 = arith.mulf %403, %548 : vector<8x128xf32>
    %550 = arith.addf %546, %549 : vector<8x128xf32>
    %c131 = arith.constant 131 : index
    %551 = memref.load %arg1[%c131] : memref<258xf32, #tpu.memory_space<smem>>
    %552 = vector.broadcast %551 : f32 to vector<8x128xf32>
    %553 = arith.mulf %419, %552 : vector<8x128xf32>
    %554 = arith.addf %550, %553 : vector<8x128xf32>
    %c136 = arith.constant 136 : index
    %555 = memref.load %arg1[%c136] : memref<258xf32, #tpu.memory_space<smem>>
    %556 = vector.broadcast %555 : f32 to vector<8x128xf32>
    %557 = arith.mulf %435, %556 : vector<8x128xf32>
    %558 = arith.addf %554, %557 : vector<8x128xf32>
    %c141 = arith.constant 141 : index
    %559 = memref.load %arg1[%c141] : memref<258xf32, #tpu.memory_space<smem>>
    %560 = vector.broadcast %559 : f32 to vector<8x128xf32>
    %561 = arith.mulf %451, %560 : vector<8x128xf32>
    %562 = arith.addf %558, %561 : vector<8x128xf32>
    %c146 = arith.constant 146 : index
    %563 = memref.load %arg1[%c146] : memref<258xf32, #tpu.memory_space<smem>>
    %564 = vector.broadcast %563 : f32 to vector<8x128xf32>
    %565 = arith.mulf %467, %564 : vector<8x128xf32>
    %566 = arith.addf %562, %565 : vector<8x128xf32>
    %c151 = arith.constant 151 : index
    %567 = memref.load %arg1[%c151] : memref<258xf32, #tpu.memory_space<smem>>
    %568 = vector.broadcast %567 : f32 to vector<8x128xf32>
    %569 = arith.mulf %483, %568 : vector<8x128xf32>
    %570 = arith.addf %566, %569 : vector<8x128xf32>
    %c156 = arith.constant 156 : index
    %571 = memref.load %arg1[%c156] : memref<258xf32, #tpu.memory_space<smem>>
    %572 = vector.broadcast %571 : f32 to vector<8x128xf32>
    %573 = arith.addf %570, %572 : vector<8x128xf32>
    %cst_41 = arith.constant 0.000000e+00 : f32
    %574 = vector.broadcast %cst_41 : f32 to vector<8x128xf32>
    %575 = arith.subf %574, %573 : vector<8x128xf32>
    %576 = math.exp %575 : vector<8x128xf32>
    %cst_42 = arith.constant 1.000000e+00 : f32
    %577 = vector.broadcast %cst_42 : f32 to vector<8x128xf32>
    %578 = arith.addf %577, %576 : vector<8x128xf32>
    %579 = tpu.reciprocal %578 {approx = true} : vector<8x128xf32> -> vector<8x128xf32>
    %c107 = arith.constant 107 : index
    %580 = memref.load %arg1[%c107] : memref<258xf32, #tpu.memory_space<smem>>
    %581 = vector.broadcast %580 : f32 to vector<8x128xf32>
    %582 = arith.mulf %339, %581 : vector<8x128xf32>
    %c112 = arith.constant 112 : index
    %583 = memref.load %arg1[%c112] : memref<258xf32, #tpu.memory_space<smem>>
    %584 = vector.broadcast %583 : f32 to vector<8x128xf32>
    %585 = arith.mulf %355, %584 : vector<8x128xf32>
    %586 = arith.addf %582, %585 : vector<8x128xf32>
    %c117 = arith.constant 117 : index
    %587 = memref.load %arg1[%c117] : memref<258xf32, #tpu.memory_space<smem>>
    %588 = vector.broadcast %587 : f32 to vector<8x128xf32>
    %589 = arith.mulf %371, %588 : vector<8x128xf32>
    %590 = arith.addf %586, %589 : vector<8x128xf32>
    %c122 = arith.constant 122 : index
    %591 = memref.load %arg1[%c122] : memref<258xf32, #tpu.memory_space<smem>>
    %592 = vector.broadcast %591 : f32 to vector<8x128xf32>
    %593 = arith.mulf %387, %592 : vector<8x128xf32>
    %594 = arith.addf %590, %593 : vector<8x128xf32>
    %c127 = arith.constant 127 : index
    %595 = memref.load %arg1[%c127] : memref<258xf32, #tpu.memory_space<smem>>
    %596 = vector.broadcast %595 : f32 to vector<8x128xf32>
    %597 = arith.mulf %403, %596 : vector<8x128xf32>
    %598 = arith.addf %594, %597 : vector<8x128xf32>
    %c132 = arith.constant 132 : index
    %599 = memref.load %arg1[%c132] : memref<258xf32, #tpu.memory_space<smem>>
    %600 = vector.broadcast %599 : f32 to vector<8x128xf32>
    %601 = arith.mulf %419, %600 : vector<8x128xf32>
    %602 = arith.addf %598, %601 : vector<8x128xf32>
    %c137 = arith.constant 137 : index
    %603 = memref.load %arg1[%c137] : memref<258xf32, #tpu.memory_space<smem>>
    %604 = vector.broadcast %603 : f32 to vector<8x128xf32>
    %605 = arith.mulf %435, %604 : vector<8x128xf32>
    %606 = arith.addf %602, %605 : vector<8x128xf32>
    %c142 = arith.constant 142 : index
    %607 = memref.load %arg1[%c142] : memref<258xf32, #tpu.memory_space<smem>>
    %608 = vector.broadcast %607 : f32 to vector<8x128xf32>
    %609 = arith.mulf %451, %608 : vector<8x128xf32>
    %610 = arith.addf %606, %609 : vector<8x128xf32>
    %c147 = arith.constant 147 : index
    %611 = memref.load %arg1[%c147] : memref<258xf32, #tpu.memory_space<smem>>
    %612 = vector.broadcast %611 : f32 to vector<8x128xf32>
    %613 = arith.mulf %467, %612 : vector<8x128xf32>
    %614 = arith.addf %610, %613 : vector<8x128xf32>
    %c152 = arith.constant 152 : index
    %615 = memref.load %arg1[%c152] : memref<258xf32, #tpu.memory_space<smem>>
    %616 = vector.broadcast %615 : f32 to vector<8x128xf32>
    %617 = arith.mulf %483, %616 : vector<8x128xf32>
    %618 = arith.addf %614, %617 : vector<8x128xf32>
    %c157 = arith.constant 157 : index
    %619 = memref.load %arg1[%c157] : memref<258xf32, #tpu.memory_space<smem>>
    %620 = vector.broadcast %619 : f32 to vector<8x128xf32>
    %621 = arith.addf %618, %620 : vector<8x128xf32>
    %cst_43 = arith.constant 0.000000e+00 : f32
    %622 = vector.broadcast %cst_43 : f32 to vector<8x128xf32>
    %623 = arith.subf %622, %621 : vector<8x128xf32>
    %624 = math.exp %623 : vector<8x128xf32>
    %cst_44 = arith.constant 1.000000e+00 : f32
    %625 = vector.broadcast %cst_44 : f32 to vector<8x128xf32>
    %626 = arith.addf %625, %624 : vector<8x128xf32>
    %627 = tpu.reciprocal %626 {approx = true} : vector<8x128xf32> -> vector<8x128xf32>
    %c108 = arith.constant 108 : index
    %628 = memref.load %arg1[%c108] : memref<258xf32, #tpu.memory_space<smem>>
    %629 = vector.broadcast %628 : f32 to vector<8x128xf32>
    %630 = arith.mulf %339, %629 : vector<8x128xf32>
    %c113 = arith.constant 113 : index
    %631 = memref.load %arg1[%c113] : memref<258xf32, #tpu.memory_space<smem>>
    %632 = vector.broadcast %631 : f32 to vector<8x128xf32>
    %633 = arith.mulf %355, %632 : vector<8x128xf32>
    %634 = arith.addf %630, %633 : vector<8x128xf32>
    %c118 = arith.constant 118 : index
    %635 = memref.load %arg1[%c118] : memref<258xf32, #tpu.memory_space<smem>>
    %636 = vector.broadcast %635 : f32 to vector<8x128xf32>
    %637 = arith.mulf %371, %636 : vector<8x128xf32>
    %638 = arith.addf %634, %637 : vector<8x128xf32>
    %c123 = arith.constant 123 : index
    %639 = memref.load %arg1[%c123] : memref<258xf32, #tpu.memory_space<smem>>
    %640 = vector.broadcast %639 : f32 to vector<8x128xf32>
    %641 = arith.mulf %387, %640 : vector<8x128xf32>
    %642 = arith.addf %638, %641 : vector<8x128xf32>
    %c128 = arith.constant 128 : index
    %643 = memref.load %arg1[%c128] : memref<258xf32, #tpu.memory_space<smem>>
    %644 = vector.broadcast %643 : f32 to vector<8x128xf32>
    %645 = arith.mulf %403, %644 : vector<8x128xf32>
    %646 = arith.addf %642, %645 : vector<8x128xf32>
    %c133 = arith.constant 133 : index
    %647 = memref.load %arg1[%c133] : memref<258xf32, #tpu.memory_space<smem>>
    %648 = vector.broadcast %647 : f32 to vector<8x128xf32>
    %649 = arith.mulf %419, %648 : vector<8x128xf32>
    %650 = arith.addf %646, %649 : vector<8x128xf32>
    %c138 = arith.constant 138 : index
    %651 = memref.load %arg1[%c138] : memref<258xf32, #tpu.memory_space<smem>>
    %652 = vector.broadcast %651 : f32 to vector<8x128xf32>
    %653 = arith.mulf %435, %652 : vector<8x128xf32>
    %654 = arith.addf %650, %653 : vector<8x128xf32>
    %c143 = arith.constant 143 : index
    %655 = memref.load %arg1[%c143] : memref<258xf32, #tpu.memory_space<smem>>
    %656 = vector.broadcast %655 : f32 to vector<8x128xf32>
    %657 = arith.mulf %451, %656 : vector<8x128xf32>
    %658 = arith.addf %654, %657 : vector<8x128xf32>
    %c148 = arith.constant 148 : index
    %659 = memref.load %arg1[%c148] : memref<258xf32, #tpu.memory_space<smem>>
    %660 = vector.broadcast %659 : f32 to vector<8x128xf32>
    %661 = arith.mulf %467, %660 : vector<8x128xf32>
    %662 = arith.addf %658, %661 : vector<8x128xf32>
    %c153 = arith.constant 153 : index
    %663 = memref.load %arg1[%c153] : memref<258xf32, #tpu.memory_space<smem>>
    %664 = vector.broadcast %663 : f32 to vector<8x128xf32>
    %665 = arith.mulf %483, %664 : vector<8x128xf32>
    %666 = arith.addf %662, %665 : vector<8x128xf32>
    %c158 = arith.constant 158 : index
    %667 = memref.load %arg1[%c158] : memref<258xf32, #tpu.memory_space<smem>>
    %668 = vector.broadcast %667 : f32 to vector<8x128xf32>
    %669 = arith.addf %666, %668 : vector<8x128xf32>
    %cst_45 = arith.constant 0.000000e+00 : f32
    %670 = vector.broadcast %cst_45 : f32 to vector<8x128xf32>
    %671 = arith.subf %670, %669 : vector<8x128xf32>
    %672 = math.exp %671 : vector<8x128xf32>
    %cst_46 = arith.constant 1.000000e+00 : f32
    %673 = vector.broadcast %cst_46 : f32 to vector<8x128xf32>
    %674 = arith.addf %673, %672 : vector<8x128xf32>
    %675 = tpu.reciprocal %674 {approx = true} : vector<8x128xf32> -> vector<8x128xf32>
    %c109 = arith.constant 109 : index
    %676 = memref.load %arg1[%c109] : memref<258xf32, #tpu.memory_space<smem>>
    %677 = vector.broadcast %676 : f32 to vector<8x128xf32>
    %678 = arith.mulf %339, %677 : vector<8x128xf32>
    %c114 = arith.constant 114 : index
    %679 = memref.load %arg1[%c114] : memref<258xf32, #tpu.memory_space<smem>>
    %680 = vector.broadcast %679 : f32 to vector<8x128xf32>
    %681 = arith.mulf %355, %680 : vector<8x128xf32>
    %682 = arith.addf %678, %681 : vector<8x128xf32>
    %c119 = arith.constant 119 : index
    %683 = memref.load %arg1[%c119] : memref<258xf32, #tpu.memory_space<smem>>
    %684 = vector.broadcast %683 : f32 to vector<8x128xf32>
    %685 = arith.mulf %371, %684 : vector<8x128xf32>
    %686 = arith.addf %682, %685 : vector<8x128xf32>
    %c124 = arith.constant 124 : index
    %687 = memref.load %arg1[%c124] : memref<258xf32, #tpu.memory_space<smem>>
    %688 = vector.broadcast %687 : f32 to vector<8x128xf32>
    %689 = arith.mulf %387, %688 : vector<8x128xf32>
    %690 = arith.addf %686, %689 : vector<8x128xf32>
    %c129 = arith.constant 129 : index
    %691 = memref.load %arg1[%c129] : memref<258xf32, #tpu.memory_space<smem>>
    %692 = vector.broadcast %691 : f32 to vector<8x128xf32>
    %693 = arith.mulf %403, %692 : vector<8x128xf32>
    %694 = arith.addf %690, %693 : vector<8x128xf32>
    %c134 = arith.constant 134 : index
    %695 = memref.load %arg1[%c134] : memref<258xf32, #tpu.memory_space<smem>>
    %696 = vector.broadcast %695 : f32 to vector<8x128xf32>
    %697 = arith.mulf %419, %696 : vector<8x128xf32>
    %698 = arith.addf %694, %697 : vector<8x128xf32>
    %c139 = arith.constant 139 : index
    %699 = memref.load %arg1[%c139] : memref<258xf32, #tpu.memory_space<smem>>
    %700 = vector.broadcast %699 : f32 to vector<8x128xf32>
    %701 = arith.mulf %435, %700 : vector<8x128xf32>
    %702 = arith.addf %698, %701 : vector<8x128xf32>
    %c144 = arith.constant 144 : index
    %703 = memref.load %arg1[%c144] : memref<258xf32, #tpu.memory_space<smem>>
    %704 = vector.broadcast %703 : f32 to vector<8x128xf32>
    %705 = arith.mulf %451, %704 : vector<8x128xf32>
    %706 = arith.addf %702, %705 : vector<8x128xf32>
    %c149 = arith.constant 149 : index
    %707 = memref.load %arg1[%c149] : memref<258xf32, #tpu.memory_space<smem>>
    %708 = vector.broadcast %707 : f32 to vector<8x128xf32>
    %709 = arith.mulf %467, %708 : vector<8x128xf32>
    %710 = arith.addf %706, %709 : vector<8x128xf32>
    %c154 = arith.constant 154 : index
    %711 = memref.load %arg1[%c154] : memref<258xf32, #tpu.memory_space<smem>>
    %712 = vector.broadcast %711 : f32 to vector<8x128xf32>
    %713 = arith.mulf %483, %712 : vector<8x128xf32>
    %714 = arith.addf %710, %713 : vector<8x128xf32>
    %c159 = arith.constant 159 : index
    %715 = memref.load %arg1[%c159] : memref<258xf32, #tpu.memory_space<smem>>
    %716 = vector.broadcast %715 : f32 to vector<8x128xf32>
    %717 = arith.addf %714, %716 : vector<8x128xf32>
    %cst_47 = arith.constant 0.000000e+00 : f32
    %718 = vector.broadcast %cst_47 : f32 to vector<8x128xf32>
    %719 = arith.subf %718, %717 : vector<8x128xf32>
    %720 = math.exp %719 : vector<8x128xf32>
    %cst_48 = arith.constant 1.000000e+00 : f32
    %721 = vector.broadcast %cst_48 : f32 to vector<8x128xf32>
    %722 = arith.addf %721, %720 : vector<8x128xf32>
    %723 = tpu.reciprocal %722 {approx = true} : vector<8x128xf32> -> vector<8x128xf32>
    %724 = arith.mulf %211, %531 : vector<8x128xf32>
    %725 = arith.mulf %239, %579 : vector<8x128xf32>
    %726 = arith.mulf %267, %627 : vector<8x128xf32>
    %727 = arith.mulf %295, %675 : vector<8x128xf32>
    %728 = arith.mulf %323, %723 : vector<8x128xf32>
    %c160 = arith.constant 160 : index
    %729 = memref.load %arg1[%c160] : memref<258xf32, #tpu.memory_space<smem>>
    %730 = vector.broadcast %729 : f32 to vector<8x128xf32>
    %731 = arith.mulf %724, %730 : vector<8x128xf32>
    %c165 = arith.constant 165 : index
    %732 = memref.load %arg1[%c165] : memref<258xf32, #tpu.memory_space<smem>>
    %733 = vector.broadcast %732 : f32 to vector<8x128xf32>
    %734 = arith.mulf %725, %733 : vector<8x128xf32>
    %735 = arith.addf %731, %734 : vector<8x128xf32>
    %c170 = arith.constant 170 : index
    %736 = memref.load %arg1[%c170] : memref<258xf32, #tpu.memory_space<smem>>
    %737 = vector.broadcast %736 : f32 to vector<8x128xf32>
    %738 = arith.mulf %726, %737 : vector<8x128xf32>
    %739 = arith.addf %735, %738 : vector<8x128xf32>
    %c175 = arith.constant 175 : index
    %740 = memref.load %arg1[%c175] : memref<258xf32, #tpu.memory_space<smem>>
    %741 = vector.broadcast %740 : f32 to vector<8x128xf32>
    %742 = arith.mulf %727, %741 : vector<8x128xf32>
    %743 = arith.addf %739, %742 : vector<8x128xf32>
    %c180 = arith.constant 180 : index
    %744 = memref.load %arg1[%c180] : memref<258xf32, #tpu.memory_space<smem>>
    %745 = vector.broadcast %744 : f32 to vector<8x128xf32>
    %746 = arith.mulf %728, %745 : vector<8x128xf32>
    %747 = arith.addf %743, %746 : vector<8x128xf32>
    %c185 = arith.constant 185 : index
    %748 = memref.load %arg1[%c185] : memref<258xf32, #tpu.memory_space<smem>>
    %749 = vector.broadcast %748 : f32 to vector<8x128xf32>
    %750 = arith.addf %747, %749 : vector<8x128xf32>
    %cst_49 = arith.constant 0.000000e+00 : f32
    %751 = vector.broadcast %cst_49 : f32 to vector<8x128xf32>
    %752 = arith.subf %751, %750 : vector<8x128xf32>
    %753 = math.exp %752 : vector<8x128xf32>
    %cst_50 = arith.constant 1.000000e+00 : f32
    %754 = vector.broadcast %cst_50 : f32 to vector<8x128xf32>
    %755 = arith.addf %754, %753 : vector<8x128xf32>
    %756 = tpu.reciprocal %755 {approx = true} : vector<8x128xf32> -> vector<8x128xf32>
    %c161 = arith.constant 161 : index
    %757 = memref.load %arg1[%c161] : memref<258xf32, #tpu.memory_space<smem>>
    %758 = vector.broadcast %757 : f32 to vector<8x128xf32>
    %759 = arith.mulf %724, %758 : vector<8x128xf32>
    %c166 = arith.constant 166 : index
    %760 = memref.load %arg1[%c166] : memref<258xf32, #tpu.memory_space<smem>>
    %761 = vector.broadcast %760 : f32 to vector<8x128xf32>
    %762 = arith.mulf %725, %761 : vector<8x128xf32>
    %763 = arith.addf %759, %762 : vector<8x128xf32>
    %c171 = arith.constant 171 : index
    %764 = memref.load %arg1[%c171] : memref<258xf32, #tpu.memory_space<smem>>
    %765 = vector.broadcast %764 : f32 to vector<8x128xf32>
    %766 = arith.mulf %726, %765 : vector<8x128xf32>
    %767 = arith.addf %763, %766 : vector<8x128xf32>
    %c176 = arith.constant 176 : index
    %768 = memref.load %arg1[%c176] : memref<258xf32, #tpu.memory_space<smem>>
    %769 = vector.broadcast %768 : f32 to vector<8x128xf32>
    %770 = arith.mulf %727, %769 : vector<8x128xf32>
    %771 = arith.addf %767, %770 : vector<8x128xf32>
    %c181 = arith.constant 181 : index
    %772 = memref.load %arg1[%c181] : memref<258xf32, #tpu.memory_space<smem>>
    %773 = vector.broadcast %772 : f32 to vector<8x128xf32>
    %774 = arith.mulf %728, %773 : vector<8x128xf32>
    %775 = arith.addf %771, %774 : vector<8x128xf32>
    %c186 = arith.constant 186 : index
    %776 = memref.load %arg1[%c186] : memref<258xf32, #tpu.memory_space<smem>>
    %777 = vector.broadcast %776 : f32 to vector<8x128xf32>
    %778 = arith.addf %775, %777 : vector<8x128xf32>
    %cst_51 = arith.constant 0.000000e+00 : f32
    %779 = vector.broadcast %cst_51 : f32 to vector<8x128xf32>
    %780 = arith.subf %779, %778 : vector<8x128xf32>
    %781 = math.exp %780 : vector<8x128xf32>
    %cst_52 = arith.constant 1.000000e+00 : f32
    %782 = vector.broadcast %cst_52 : f32 to vector<8x128xf32>
    %783 = arith.addf %782, %781 : vector<8x128xf32>
    %784 = tpu.reciprocal %783 {approx = true} : vector<8x128xf32> -> vector<8x128xf32>
    %c162 = arith.constant 162 : index
    %785 = memref.load %arg1[%c162] : memref<258xf32, #tpu.memory_space<smem>>
    %786 = vector.broadcast %785 : f32 to vector<8x128xf32>
    %787 = arith.mulf %724, %786 : vector<8x128xf32>
    %c167 = arith.constant 167 : index
    %788 = memref.load %arg1[%c167] : memref<258xf32, #tpu.memory_space<smem>>
    %789 = vector.broadcast %788 : f32 to vector<8x128xf32>
    %790 = arith.mulf %725, %789 : vector<8x128xf32>
    %791 = arith.addf %787, %790 : vector<8x128xf32>
    %c172 = arith.constant 172 : index
    %792 = memref.load %arg1[%c172] : memref<258xf32, #tpu.memory_space<smem>>
    %793 = vector.broadcast %792 : f32 to vector<8x128xf32>
    %794 = arith.mulf %726, %793 : vector<8x128xf32>
    %795 = arith.addf %791, %794 : vector<8x128xf32>
    %c177 = arith.constant 177 : index
    %796 = memref.load %arg1[%c177] : memref<258xf32, #tpu.memory_space<smem>>
    %797 = vector.broadcast %796 : f32 to vector<8x128xf32>
    %798 = arith.mulf %727, %797 : vector<8x128xf32>
    %799 = arith.addf %795, %798 : vector<8x128xf32>
    %c182 = arith.constant 182 : index
    %800 = memref.load %arg1[%c182] : memref<258xf32, #tpu.memory_space<smem>>
    %801 = vector.broadcast %800 : f32 to vector<8x128xf32>
    %802 = arith.mulf %728, %801 : vector<8x128xf32>
    %803 = arith.addf %799, %802 : vector<8x128xf32>
    %c187 = arith.constant 187 : index
    %804 = memref.load %arg1[%c187] : memref<258xf32, #tpu.memory_space<smem>>
    %805 = vector.broadcast %804 : f32 to vector<8x128xf32>
    %806 = arith.addf %803, %805 : vector<8x128xf32>
    %cst_53 = arith.constant 0.000000e+00 : f32
    %807 = vector.broadcast %cst_53 : f32 to vector<8x128xf32>
    %808 = arith.subf %807, %806 : vector<8x128xf32>
    %809 = math.exp %808 : vector<8x128xf32>
    %cst_54 = arith.constant 1.000000e+00 : f32
    %810 = vector.broadcast %cst_54 : f32 to vector<8x128xf32>
    %811 = arith.addf %810, %809 : vector<8x128xf32>
    %812 = tpu.reciprocal %811 {approx = true} : vector<8x128xf32> -> vector<8x128xf32>
    %c163 = arith.constant 163 : index
    %813 = memref.load %arg1[%c163] : memref<258xf32, #tpu.memory_space<smem>>
    %814 = vector.broadcast %813 : f32 to vector<8x128xf32>
    %815 = arith.mulf %724, %814 : vector<8x128xf32>
    %c168 = arith.constant 168 : index
    %816 = memref.load %arg1[%c168] : memref<258xf32, #tpu.memory_space<smem>>
    %817 = vector.broadcast %816 : f32 to vector<8x128xf32>
    %818 = arith.mulf %725, %817 : vector<8x128xf32>
    %819 = arith.addf %815, %818 : vector<8x128xf32>
    %c173 = arith.constant 173 : index
    %820 = memref.load %arg1[%c173] : memref<258xf32, #tpu.memory_space<smem>>
    %821 = vector.broadcast %820 : f32 to vector<8x128xf32>
    %822 = arith.mulf %726, %821 : vector<8x128xf32>
    %823 = arith.addf %819, %822 : vector<8x128xf32>
    %c178 = arith.constant 178 : index
    %824 = memref.load %arg1[%c178] : memref<258xf32, #tpu.memory_space<smem>>
    %825 = vector.broadcast %824 : f32 to vector<8x128xf32>
    %826 = arith.mulf %727, %825 : vector<8x128xf32>
    %827 = arith.addf %823, %826 : vector<8x128xf32>
    %c183 = arith.constant 183 : index
    %828 = memref.load %arg1[%c183] : memref<258xf32, #tpu.memory_space<smem>>
    %829 = vector.broadcast %828 : f32 to vector<8x128xf32>
    %830 = arith.mulf %728, %829 : vector<8x128xf32>
    %831 = arith.addf %827, %830 : vector<8x128xf32>
    %c188 = arith.constant 188 : index
    %832 = memref.load %arg1[%c188] : memref<258xf32, #tpu.memory_space<smem>>
    %833 = vector.broadcast %832 : f32 to vector<8x128xf32>
    %834 = arith.addf %831, %833 : vector<8x128xf32>
    %cst_55 = arith.constant 0.000000e+00 : f32
    %835 = vector.broadcast %cst_55 : f32 to vector<8x128xf32>
    %836 = arith.subf %835, %834 : vector<8x128xf32>
    %837 = math.exp %836 : vector<8x128xf32>
    %cst_56 = arith.constant 1.000000e+00 : f32
    %838 = vector.broadcast %cst_56 : f32 to vector<8x128xf32>
    %839 = arith.addf %838, %837 : vector<8x128xf32>
    %840 = tpu.reciprocal %839 {approx = true} : vector<8x128xf32> -> vector<8x128xf32>
    %c164 = arith.constant 164 : index
    %841 = memref.load %arg1[%c164] : memref<258xf32, #tpu.memory_space<smem>>
    %842 = vector.broadcast %841 : f32 to vector<8x128xf32>
    %843 = arith.mulf %724, %842 : vector<8x128xf32>
    %c169 = arith.constant 169 : index
    %844 = memref.load %arg1[%c169] : memref<258xf32, #tpu.memory_space<smem>>
    %845 = vector.broadcast %844 : f32 to vector<8x128xf32>
    %846 = arith.mulf %725, %845 : vector<8x128xf32>
    %847 = arith.addf %843, %846 : vector<8x128xf32>
    %c174 = arith.constant 174 : index
    %848 = memref.load %arg1[%c174] : memref<258xf32, #tpu.memory_space<smem>>
    %849 = vector.broadcast %848 : f32 to vector<8x128xf32>
    %850 = arith.mulf %726, %849 : vector<8x128xf32>
    %851 = arith.addf %847, %850 : vector<8x128xf32>
    %c179 = arith.constant 179 : index
    %852 = memref.load %arg1[%c179] : memref<258xf32, #tpu.memory_space<smem>>
    %853 = vector.broadcast %852 : f32 to vector<8x128xf32>
    %854 = arith.mulf %727, %853 : vector<8x128xf32>
    %855 = arith.addf %851, %854 : vector<8x128xf32>
    %c184 = arith.constant 184 : index
    %856 = memref.load %arg1[%c184] : memref<258xf32, #tpu.memory_space<smem>>
    %857 = vector.broadcast %856 : f32 to vector<8x128xf32>
    %858 = arith.mulf %728, %857 : vector<8x128xf32>
    %859 = arith.addf %855, %858 : vector<8x128xf32>
    %c189 = arith.constant 189 : index
    %860 = memref.load %arg1[%c189] : memref<258xf32, #tpu.memory_space<smem>>
    %861 = vector.broadcast %860 : f32 to vector<8x128xf32>
    %862 = arith.addf %859, %861 : vector<8x128xf32>
    %cst_57 = arith.constant 0.000000e+00 : f32
    %863 = vector.broadcast %cst_57 : f32 to vector<8x128xf32>
    %864 = arith.subf %863, %862 : vector<8x128xf32>
    %865 = math.exp %864 : vector<8x128xf32>
    %cst_58 = arith.constant 1.000000e+00 : f32
    %866 = vector.broadcast %cst_58 : f32 to vector<8x128xf32>
    %867 = arith.addf %866, %865 : vector<8x128xf32>
    %868 = tpu.reciprocal %867 {approx = true} : vector<8x128xf32> -> vector<8x128xf32>
    %c190 = arith.constant 190 : index
    %869 = memref.load %arg1[%c190] : memref<258xf32, #tpu.memory_space<smem>>
    %870 = vector.broadcast %869 : f32 to vector<8x128xf32>
    %871 = arith.mulf %756, %870 : vector<8x128xf32>
    %c194 = arith.constant 194 : index
    %872 = memref.load %arg1[%c194] : memref<258xf32, #tpu.memory_space<smem>>
    %873 = vector.broadcast %872 : f32 to vector<8x128xf32>
    %874 = arith.mulf %784, %873 : vector<8x128xf32>
    %875 = arith.addf %871, %874 : vector<8x128xf32>
    %c198 = arith.constant 198 : index
    %876 = memref.load %arg1[%c198] : memref<258xf32, #tpu.memory_space<smem>>
    %877 = vector.broadcast %876 : f32 to vector<8x128xf32>
    %878 = arith.mulf %812, %877 : vector<8x128xf32>
    %879 = arith.addf %875, %878 : vector<8x128xf32>
    %c202 = arith.constant 202 : index
    %880 = memref.load %arg1[%c202] : memref<258xf32, #tpu.memory_space<smem>>
    %881 = vector.broadcast %880 : f32 to vector<8x128xf32>
    %882 = arith.mulf %840, %881 : vector<8x128xf32>
    %883 = arith.addf %879, %882 : vector<8x128xf32>
    %c206 = arith.constant 206 : index
    %884 = memref.load %arg1[%c206] : memref<258xf32, #tpu.memory_space<smem>>
    %885 = vector.broadcast %884 : f32 to vector<8x128xf32>
    %886 = arith.mulf %868, %885 : vector<8x128xf32>
    %887 = arith.addf %883, %886 : vector<8x128xf32>
    %c210 = arith.constant 210 : index
    %888 = memref.load %arg1[%c210] : memref<258xf32, #tpu.memory_space<smem>>
    %889 = vector.broadcast %888 : f32 to vector<8x128xf32>
    %890 = arith.addf %887, %889 : vector<8x128xf32>
    %cst_59 = arith.constant 0.000000e+00 : f32
    %891 = vector.broadcast %cst_59 : f32 to vector<8x128xf32>
    %892 = arith.subf %891, %890 : vector<8x128xf32>
    %893 = math.exp %892 : vector<8x128xf32>
    %cst_60 = arith.constant 1.000000e+00 : f32
    %894 = vector.broadcast %cst_60 : f32 to vector<8x128xf32>
    %895 = arith.addf %894, %893 : vector<8x128xf32>
    %896 = tpu.reciprocal %895 {approx = true} : vector<8x128xf32> -> vector<8x128xf32>
    %c191 = arith.constant 191 : index
    %897 = memref.load %arg1[%c191] : memref<258xf32, #tpu.memory_space<smem>>
    %898 = vector.broadcast %897 : f32 to vector<8x128xf32>
    %899 = arith.mulf %756, %898 : vector<8x128xf32>
    %c195 = arith.constant 195 : index
    %900 = memref.load %arg1[%c195] : memref<258xf32, #tpu.memory_space<smem>>
    %901 = vector.broadcast %900 : f32 to vector<8x128xf32>
    %902 = arith.mulf %784, %901 : vector<8x128xf32>
    %903 = arith.addf %899, %902 : vector<8x128xf32>
    %c199 = arith.constant 199 : index
    %904 = memref.load %arg1[%c199] : memref<258xf32, #tpu.memory_space<smem>>
    %905 = vector.broadcast %904 : f32 to vector<8x128xf32>
    %906 = arith.mulf %812, %905 : vector<8x128xf32>
    %907 = arith.addf %903, %906 : vector<8x128xf32>
    %c203 = arith.constant 203 : index
    %908 = memref.load %arg1[%c203] : memref<258xf32, #tpu.memory_space<smem>>
    %909 = vector.broadcast %908 : f32 to vector<8x128xf32>
    %910 = arith.mulf %840, %909 : vector<8x128xf32>
    %911 = arith.addf %907, %910 : vector<8x128xf32>
    %c207 = arith.constant 207 : index
    %912 = memref.load %arg1[%c207] : memref<258xf32, #tpu.memory_space<smem>>
    %913 = vector.broadcast %912 : f32 to vector<8x128xf32>
    %914 = arith.mulf %868, %913 : vector<8x128xf32>
    %915 = arith.addf %911, %914 : vector<8x128xf32>
    %c211 = arith.constant 211 : index
    %916 = memref.load %arg1[%c211] : memref<258xf32, #tpu.memory_space<smem>>
    %917 = vector.broadcast %916 : f32 to vector<8x128xf32>
    %918 = arith.addf %915, %917 : vector<8x128xf32>
    %cst_61 = arith.constant 0.000000e+00 : f32
    %919 = vector.broadcast %cst_61 : f32 to vector<8x128xf32>
    %920 = arith.subf %919, %918 : vector<8x128xf32>
    %921 = math.exp %920 : vector<8x128xf32>
    %cst_62 = arith.constant 1.000000e+00 : f32
    %922 = vector.broadcast %cst_62 : f32 to vector<8x128xf32>
    %923 = arith.addf %922, %921 : vector<8x128xf32>
    %924 = tpu.reciprocal %923 {approx = true} : vector<8x128xf32> -> vector<8x128xf32>
    %c192 = arith.constant 192 : index
    %925 = memref.load %arg1[%c192] : memref<258xf32, #tpu.memory_space<smem>>
    %926 = vector.broadcast %925 : f32 to vector<8x128xf32>
    %927 = arith.mulf %756, %926 : vector<8x128xf32>
    %c196 = arith.constant 196 : index
    %928 = memref.load %arg1[%c196] : memref<258xf32, #tpu.memory_space<smem>>
    %929 = vector.broadcast %928 : f32 to vector<8x128xf32>
    %930 = arith.mulf %784, %929 : vector<8x128xf32>
    %931 = arith.addf %927, %930 : vector<8x128xf32>
    %c200 = arith.constant 200 : index
    %932 = memref.load %arg1[%c200] : memref<258xf32, #tpu.memory_space<smem>>
    %933 = vector.broadcast %932 : f32 to vector<8x128xf32>
    %934 = arith.mulf %812, %933 : vector<8x128xf32>
    %935 = arith.addf %931, %934 : vector<8x128xf32>
    %c204 = arith.constant 204 : index
    %936 = memref.load %arg1[%c204] : memref<258xf32, #tpu.memory_space<smem>>
    %937 = vector.broadcast %936 : f32 to vector<8x128xf32>
    %938 = arith.mulf %840, %937 : vector<8x128xf32>
    %939 = arith.addf %935, %938 : vector<8x128xf32>
    %c208 = arith.constant 208 : index
    %940 = memref.load %arg1[%c208] : memref<258xf32, #tpu.memory_space<smem>>
    %941 = vector.broadcast %940 : f32 to vector<8x128xf32>
    %942 = arith.mulf %868, %941 : vector<8x128xf32>
    %943 = arith.addf %939, %942 : vector<8x128xf32>
    %c212 = arith.constant 212 : index
    %944 = memref.load %arg1[%c212] : memref<258xf32, #tpu.memory_space<smem>>
    %945 = vector.broadcast %944 : f32 to vector<8x128xf32>
    %946 = arith.addf %943, %945 : vector<8x128xf32>
    %cst_63 = arith.constant 0.000000e+00 : f32
    %947 = vector.broadcast %cst_63 : f32 to vector<8x128xf32>
    %948 = arith.subf %947, %946 : vector<8x128xf32>
    %949 = math.exp %948 : vector<8x128xf32>
    %cst_64 = arith.constant 1.000000e+00 : f32
    %950 = vector.broadcast %cst_64 : f32 to vector<8x128xf32>
    %951 = arith.addf %950, %949 : vector<8x128xf32>
    %952 = tpu.reciprocal %951 {approx = true} : vector<8x128xf32> -> vector<8x128xf32>
    %c193 = arith.constant 193 : index
    %953 = memref.load %arg1[%c193] : memref<258xf32, #tpu.memory_space<smem>>
    %954 = vector.broadcast %953 : f32 to vector<8x128xf32>
    %955 = arith.mulf %756, %954 : vector<8x128xf32>
    %c197 = arith.constant 197 : index
    %956 = memref.load %arg1[%c197] : memref<258xf32, #tpu.memory_space<smem>>
    %957 = vector.broadcast %956 : f32 to vector<8x128xf32>
    %958 = arith.mulf %784, %957 : vector<8x128xf32>
    %959 = arith.addf %955, %958 : vector<8x128xf32>
    %c201 = arith.constant 201 : index
    %960 = memref.load %arg1[%c201] : memref<258xf32, #tpu.memory_space<smem>>
    %961 = vector.broadcast %960 : f32 to vector<8x128xf32>
    %962 = arith.mulf %812, %961 : vector<8x128xf32>
    %963 = arith.addf %959, %962 : vector<8x128xf32>
    %c205 = arith.constant 205 : index
    %964 = memref.load %arg1[%c205] : memref<258xf32, #tpu.memory_space<smem>>
    %965 = vector.broadcast %964 : f32 to vector<8x128xf32>
    %966 = arith.mulf %840, %965 : vector<8x128xf32>
    %967 = arith.addf %963, %966 : vector<8x128xf32>
    %c209 = arith.constant 209 : index
    %968 = memref.load %arg1[%c209] : memref<258xf32, #tpu.memory_space<smem>>
    %969 = vector.broadcast %968 : f32 to vector<8x128xf32>
    %970 = arith.mulf %868, %969 : vector<8x128xf32>
    %971 = arith.addf %967, %970 : vector<8x128xf32>
    %c213 = arith.constant 213 : index
    %972 = memref.load %arg1[%c213] : memref<258xf32, #tpu.memory_space<smem>>
    %973 = vector.broadcast %972 : f32 to vector<8x128xf32>
    %974 = arith.addf %971, %973 : vector<8x128xf32>
    %cst_65 = arith.constant 0.000000e+00 : f32
    %975 = vector.broadcast %cst_65 : f32 to vector<8x128xf32>
    %976 = arith.subf %975, %974 : vector<8x128xf32>
    %977 = math.exp %976 : vector<8x128xf32>
    %cst_66 = arith.constant 1.000000e+00 : f32
    %978 = vector.broadcast %cst_66 : f32 to vector<8x128xf32>
    %979 = arith.addf %978, %977 : vector<8x128xf32>
    %980 = tpu.reciprocal %979 {approx = true} : vector<8x128xf32> -> vector<8x128xf32>
    %c214 = arith.constant 214 : index
    %981 = memref.load %arg1[%c214] : memref<258xf32, #tpu.memory_space<smem>>
    %982 = vector.broadcast %981 : f32 to vector<8x128xf32>
    %983 = arith.mulf %896, %982 : vector<8x128xf32>
    %c217 = arith.constant 217 : index
    %984 = memref.load %arg1[%c217] : memref<258xf32, #tpu.memory_space<smem>>
    %985 = vector.broadcast %984 : f32 to vector<8x128xf32>
    %986 = arith.mulf %924, %985 : vector<8x128xf32>
    %987 = arith.addf %983, %986 : vector<8x128xf32>
    %c220 = arith.constant 220 : index
    %988 = memref.load %arg1[%c220] : memref<258xf32, #tpu.memory_space<smem>>
    %989 = vector.broadcast %988 : f32 to vector<8x128xf32>
    %990 = arith.mulf %952, %989 : vector<8x128xf32>
    %991 = arith.addf %987, %990 : vector<8x128xf32>
    %c223 = arith.constant 223 : index
    %992 = memref.load %arg1[%c223] : memref<258xf32, #tpu.memory_space<smem>>
    %993 = vector.broadcast %992 : f32 to vector<8x128xf32>
    %994 = arith.mulf %980, %993 : vector<8x128xf32>
    %995 = arith.addf %991, %994 : vector<8x128xf32>
    %c226 = arith.constant 226 : index
    %996 = memref.load %arg1[%c226] : memref<258xf32, #tpu.memory_space<smem>>
    %997 = vector.broadcast %996 : f32 to vector<8x128xf32>
    %998 = arith.addf %995, %997 : vector<8x128xf32>
    %cst_67 = arith.constant 0.000000e+00 : f32
    %999 = vector.broadcast %cst_67 : f32 to vector<8x128xf32>
    %1000 = arith.subf %999, %998 : vector<8x128xf32>
    %1001 = math.exp %1000 : vector<8x128xf32>
    %cst_68 = arith.constant 1.000000e+00 : f32
    %1002 = vector.broadcast %cst_68 : f32 to vector<8x128xf32>
    %1003 = arith.addf %1002, %1001 : vector<8x128xf32>
    %1004 = tpu.reciprocal %1003 {approx = true} : vector<8x128xf32> -> vector<8x128xf32>
    %c215 = arith.constant 215 : index
    %1005 = memref.load %arg1[%c215] : memref<258xf32, #tpu.memory_space<smem>>
    %1006 = vector.broadcast %1005 : f32 to vector<8x128xf32>
    %1007 = arith.mulf %896, %1006 : vector<8x128xf32>
    %c218 = arith.constant 218 : index
    %1008 = memref.load %arg1[%c218] : memref<258xf32, #tpu.memory_space<smem>>
    %1009 = vector.broadcast %1008 : f32 to vector<8x128xf32>
    %1010 = arith.mulf %924, %1009 : vector<8x128xf32>
    %1011 = arith.addf %1007, %1010 : vector<8x128xf32>
    %c221 = arith.constant 221 : index
    %1012 = memref.load %arg1[%c221] : memref<258xf32, #tpu.memory_space<smem>>
    %1013 = vector.broadcast %1012 : f32 to vector<8x128xf32>
    %1014 = arith.mulf %952, %1013 : vector<8x128xf32>
    %1015 = arith.addf %1011, %1014 : vector<8x128xf32>
    %c224 = arith.constant 224 : index
    %1016 = memref.load %arg1[%c224] : memref<258xf32, #tpu.memory_space<smem>>
    %1017 = vector.broadcast %1016 : f32 to vector<8x128xf32>
    %1018 = arith.mulf %980, %1017 : vector<8x128xf32>
    %1019 = arith.addf %1015, %1018 : vector<8x128xf32>
    %c227 = arith.constant 227 : index
    %1020 = memref.load %arg1[%c227] : memref<258xf32, #tpu.memory_space<smem>>
    %1021 = vector.broadcast %1020 : f32 to vector<8x128xf32>
    %1022 = arith.addf %1019, %1021 : vector<8x128xf32>
    %cst_69 = arith.constant 0.000000e+00 : f32
    %1023 = vector.broadcast %cst_69 : f32 to vector<8x128xf32>
    %1024 = arith.subf %1023, %1022 : vector<8x128xf32>
    %1025 = math.exp %1024 : vector<8x128xf32>
    %cst_70 = arith.constant 1.000000e+00 : f32
    %1026 = vector.broadcast %cst_70 : f32 to vector<8x128xf32>
    %1027 = arith.addf %1026, %1025 : vector<8x128xf32>
    %1028 = tpu.reciprocal %1027 {approx = true} : vector<8x128xf32> -> vector<8x128xf32>
    %c216 = arith.constant 216 : index
    %1029 = memref.load %arg1[%c216] : memref<258xf32, #tpu.memory_space<smem>>
    %1030 = vector.broadcast %1029 : f32 to vector<8x128xf32>
    %1031 = arith.mulf %896, %1030 : vector<8x128xf32>
    %c219 = arith.constant 219 : index
    %1032 = memref.load %arg1[%c219] : memref<258xf32, #tpu.memory_space<smem>>
    %1033 = vector.broadcast %1032 : f32 to vector<8x128xf32>
    %1034 = arith.mulf %924, %1033 : vector<8x128xf32>
    %1035 = arith.addf %1031, %1034 : vector<8x128xf32>
    %c222 = arith.constant 222 : index
    %1036 = memref.load %arg1[%c222] : memref<258xf32, #tpu.memory_space<smem>>
    %1037 = vector.broadcast %1036 : f32 to vector<8x128xf32>
    %1038 = arith.mulf %952, %1037 : vector<8x128xf32>
    %1039 = arith.addf %1035, %1038 : vector<8x128xf32>
    %c225 = arith.constant 225 : index
    %1040 = memref.load %arg1[%c225] : memref<258xf32, #tpu.memory_space<smem>>
    %1041 = vector.broadcast %1040 : f32 to vector<8x128xf32>
    %1042 = arith.mulf %980, %1041 : vector<8x128xf32>
    %1043 = arith.addf %1039, %1042 : vector<8x128xf32>
    %c228 = arith.constant 228 : index
    %1044 = memref.load %arg1[%c228] : memref<258xf32, #tpu.memory_space<smem>>
    %1045 = vector.broadcast %1044 : f32 to vector<8x128xf32>
    %1046 = arith.addf %1043, %1045 : vector<8x128xf32>
    %cst_71 = arith.constant 0.000000e+00 : f32
    %1047 = vector.broadcast %cst_71 : f32 to vector<8x128xf32>
    %1048 = arith.subf %1047, %1046 : vector<8x128xf32>
    %1049 = math.exp %1048 : vector<8x128xf32>
    %cst_72 = arith.constant 1.000000e+00 : f32
    %1050 = vector.broadcast %cst_72 : f32 to vector<8x128xf32>
    %1051 = arith.addf %1050, %1049 : vector<8x128xf32>
    %1052 = tpu.reciprocal %1051 {approx = true} : vector<8x128xf32> -> vector<8x128xf32>
    %c229 = arith.constant 229 : index
    %1053 = memref.load %arg1[%c229] : memref<258xf32, #tpu.memory_space<smem>>
    %1054 = vector.broadcast %1053 : f32 to vector<8x128xf32>
    %1055 = arith.mulf %1004, %1054 : vector<8x128xf32>
    %c231 = arith.constant 231 : index
    %1056 = memref.load %arg1[%c231] : memref<258xf32, #tpu.memory_space<smem>>
    %1057 = vector.broadcast %1056 : f32 to vector<8x128xf32>
    %1058 = arith.mulf %1028, %1057 : vector<8x128xf32>
    %1059 = arith.addf %1055, %1058 : vector<8x128xf32>
    %c233 = arith.constant 233 : index
    %1060 = memref.load %arg1[%c233] : memref<258xf32, #tpu.memory_space<smem>>
    %1061 = vector.broadcast %1060 : f32 to vector<8x128xf32>
    %1062 = arith.mulf %1052, %1061 : vector<8x128xf32>
    %1063 = arith.addf %1059, %1062 : vector<8x128xf32>
    %c235 = arith.constant 235 : index
    %1064 = memref.load %arg1[%c235] : memref<258xf32, #tpu.memory_space<smem>>
    %1065 = vector.broadcast %1064 : f32 to vector<8x128xf32>
    %1066 = arith.addf %1063, %1065 : vector<8x128xf32>
    %cst_73 = arith.constant 0.000000e+00 : f32
    %1067 = vector.broadcast %cst_73 : f32 to vector<8x128xf32>
    %1068 = arith.subf %1067, %1066 : vector<8x128xf32>
    %1069 = math.exp %1068 : vector<8x128xf32>
    %cst_74 = arith.constant 1.000000e+00 : f32
    %1070 = vector.broadcast %cst_74 : f32 to vector<8x128xf32>
    %1071 = arith.addf %1070, %1069 : vector<8x128xf32>
    %1072 = tpu.reciprocal %1071 {approx = true} : vector<8x128xf32> -> vector<8x128xf32>
    %c230 = arith.constant 230 : index
    %1073 = memref.load %arg1[%c230] : memref<258xf32, #tpu.memory_space<smem>>
    %1074 = vector.broadcast %1073 : f32 to vector<8x128xf32>
    %1075 = arith.mulf %1004, %1074 : vector<8x128xf32>
    %c232 = arith.constant 232 : index
    %1076 = memref.load %arg1[%c232] : memref<258xf32, #tpu.memory_space<smem>>
    %1077 = vector.broadcast %1076 : f32 to vector<8x128xf32>
    %1078 = arith.mulf %1028, %1077 : vector<8x128xf32>
    %1079 = arith.addf %1075, %1078 : vector<8x128xf32>
    %c234 = arith.constant 234 : index
    %1080 = memref.load %arg1[%c234] : memref<258xf32, #tpu.memory_space<smem>>
    %1081 = vector.broadcast %1080 : f32 to vector<8x128xf32>
    %1082 = arith.mulf %1052, %1081 : vector<8x128xf32>
    %1083 = arith.addf %1079, %1082 : vector<8x128xf32>
    %c236 = arith.constant 236 : index
    %1084 = memref.load %arg1[%c236] : memref<258xf32, #tpu.memory_space<smem>>
    %1085 = vector.broadcast %1084 : f32 to vector<8x128xf32>
    %1086 = arith.addf %1083, %1085 : vector<8x128xf32>
    %cst_75 = arith.constant 0.000000e+00 : f32
    %1087 = vector.broadcast %cst_75 : f32 to vector<8x128xf32>
    %1088 = arith.subf %1087, %1086 : vector<8x128xf32>
    %1089 = math.exp %1088 : vector<8x128xf32>
    %cst_76 = arith.constant 1.000000e+00 : f32
    %1090 = vector.broadcast %cst_76 : f32 to vector<8x128xf32>
    %1091 = arith.addf %1090, %1089 : vector<8x128xf32>
    %1092 = tpu.reciprocal %1091 {approx = true} : vector<8x128xf32> -> vector<8x128xf32>
    %c237 = arith.constant 237 : index
    %1093 = memref.load %arg1[%c237] : memref<258xf32, #tpu.memory_space<smem>>
    %1094 = vector.broadcast %1093 : f32 to vector<8x128xf32>
    %1095 = arith.mulf %1072, %1094 : vector<8x128xf32>
    %c238 = arith.constant 238 : index
    %1096 = memref.load %arg1[%c238] : memref<258xf32, #tpu.memory_space<smem>>
    %1097 = vector.broadcast %1096 : f32 to vector<8x128xf32>
    %1098 = arith.mulf %1092, %1097 : vector<8x128xf32>
    %1099 = arith.addf %1095, %1098 : vector<8x128xf32>
    %c239 = arith.constant 239 : index
    %1100 = memref.load %arg1[%c239] : memref<258xf32, #tpu.memory_space<smem>>
    %1101 = vector.broadcast %1100 : f32 to vector<8x128xf32>
    %1102 = arith.addf %1099, %1101 : vector<8x128xf32>
    %cst_77 = arith.constant 0.000000e+00 : f32
    %1103 = vector.broadcast %cst_77 : f32 to vector<8x128xf32>
    %1104 = arith.subf %1103, %1102 : vector<8x128xf32>
    %1105 = math.exp %1104 : vector<8x128xf32>
    %cst_78 = arith.constant 1.000000e+00 : f32
    %1106 = vector.broadcast %cst_78 : f32 to vector<8x128xf32>
    %1107 = arith.addf %1106, %1105 : vector<8x128xf32>
    %1108 = tpu.reciprocal %1107 {approx = true} : vector<8x128xf32> -> vector<8x128xf32>
    %c240 = arith.constant 240 : index
    %1109 = memref.load %arg1[%c240] : memref<258xf32, #tpu.memory_space<smem>>
    %1110 = vector.broadcast %1109 : f32 to vector<8x128xf32>
    %1111 = arith.mulf %1072, %1110 : vector<8x128xf32>
    %c242 = arith.constant 242 : index
    %1112 = memref.load %arg1[%c242] : memref<258xf32, #tpu.memory_space<smem>>
    %1113 = vector.broadcast %1112 : f32 to vector<8x128xf32>
    %1114 = arith.mulf %1092, %1113 : vector<8x128xf32>
    %1115 = arith.addf %1111, %1114 : vector<8x128xf32>
    %c244 = arith.constant 244 : index
    %1116 = memref.load %arg1[%c244] : memref<258xf32, #tpu.memory_space<smem>>
    %1117 = vector.broadcast %1116 : f32 to vector<8x128xf32>
    %1118 = arith.addf %1115, %1117 : vector<8x128xf32>
    %1119 = math.tanh %1118 : vector<8x128xf32>
    %c241 = arith.constant 241 : index
    %1120 = memref.load %arg1[%c241] : memref<258xf32, #tpu.memory_space<smem>>
    %1121 = vector.broadcast %1120 : f32 to vector<8x128xf32>
    %1122 = arith.mulf %1072, %1121 : vector<8x128xf32>
    %c243 = arith.constant 243 : index
    %1123 = memref.load %arg1[%c243] : memref<258xf32, #tpu.memory_space<smem>>
    %1124 = vector.broadcast %1123 : f32 to vector<8x128xf32>
    %1125 = arith.mulf %1092, %1124 : vector<8x128xf32>
    %1126 = arith.addf %1122, %1125 : vector<8x128xf32>
    %c245 = arith.constant 245 : index
    %1127 = memref.load %arg1[%c245] : memref<258xf32, #tpu.memory_space<smem>>
    %1128 = vector.broadcast %1127 : f32 to vector<8x128xf32>
    %1129 = arith.addf %1126, %1128 : vector<8x128xf32>
    %1130 = math.tanh %1129 : vector<8x128xf32>
    %c246 = arith.constant 246 : index
    %1131 = memref.load %arg1[%c246] : memref<258xf32, #tpu.memory_space<smem>>
    %1132 = vector.broadcast %1131 : f32 to vector<8x128xf32>
    %1133 = arith.mulf %1072, %1132 : vector<8x128xf32>
    %c248 = arith.constant 248 : index
    %1134 = memref.load %arg1[%c248] : memref<258xf32, #tpu.memory_space<smem>>
    %1135 = vector.broadcast %1134 : f32 to vector<8x128xf32>
    %1136 = arith.mulf %1092, %1135 : vector<8x128xf32>
    %1137 = arith.addf %1133, %1136 : vector<8x128xf32>
    %c250 = arith.constant 250 : index
    %1138 = memref.load %arg1[%c250] : memref<258xf32, #tpu.memory_space<smem>>
    %1139 = vector.broadcast %1138 : f32 to vector<8x128xf32>
    %1140 = arith.addf %1137, %1139 : vector<8x128xf32>
    %1141 = math.tanh %1140 : vector<8x128xf32>
    %c247 = arith.constant 247 : index
    %1142 = memref.load %arg1[%c247] : memref<258xf32, #tpu.memory_space<smem>>
    %1143 = vector.broadcast %1142 : f32 to vector<8x128xf32>
    %1144 = arith.mulf %1072, %1143 : vector<8x128xf32>
    %c249 = arith.constant 249 : index
    %1145 = memref.load %arg1[%c249] : memref<258xf32, #tpu.memory_space<smem>>
    %1146 = vector.broadcast %1145 : f32 to vector<8x128xf32>
    %1147 = arith.mulf %1092, %1146 : vector<8x128xf32>
    %1148 = arith.addf %1144, %1147 : vector<8x128xf32>
    %c251 = arith.constant 251 : index
    %1149 = memref.load %arg1[%c251] : memref<258xf32, #tpu.memory_space<smem>>
    %1150 = vector.broadcast %1149 : f32 to vector<8x128xf32>
    %1151 = arith.addf %1148, %1150 : vector<8x128xf32>
    %1152 = math.tanh %1151 : vector<8x128xf32>
    %c252 = arith.constant 252 : index
    %1153 = memref.load %arg1[%c252] : memref<258xf32, #tpu.memory_space<smem>>
    %1154 = vector.broadcast %1153 : f32 to vector<8x128xf32>
    %1155 = arith.mulf %1072, %1154 : vector<8x128xf32>
    %c254 = arith.constant 254 : index
    %1156 = memref.load %arg1[%c254] : memref<258xf32, #tpu.memory_space<smem>>
    %1157 = vector.broadcast %1156 : f32 to vector<8x128xf32>
    %1158 = arith.mulf %1092, %1157 : vector<8x128xf32>
    %1159 = arith.addf %1155, %1158 : vector<8x128xf32>
    %c256 = arith.constant 256 : index
    %1160 = memref.load %arg1[%c256] : memref<258xf32, #tpu.memory_space<smem>>
    %1161 = vector.broadcast %1160 : f32 to vector<8x128xf32>
    %1162 = arith.addf %1159, %1161 : vector<8x128xf32>
    %c253 = arith.constant 253 : index
    %1163 = memref.load %arg1[%c253] : memref<258xf32, #tpu.memory_space<smem>>
    %1164 = vector.broadcast %1163 : f32 to vector<8x128xf32>
    %1165 = arith.mulf %1072, %1164 : vector<8x128xf32>
    %c255 = arith.constant 255 : index
    %1166 = memref.load %arg1[%c255] : memref<258xf32, #tpu.memory_space<smem>>
    %1167 = vector.broadcast %1166 : f32 to vector<8x128xf32>
    %1168 = arith.mulf %1092, %1167 : vector<8x128xf32>
    %1169 = arith.addf %1165, %1168 : vector<8x128xf32>
    %c257 = arith.constant 257 : index
    %1170 = memref.load %arg1[%c257] : memref<258xf32, #tpu.memory_space<smem>>
    %1171 = vector.broadcast %1170 : f32 to vector<8x128xf32>
    %1172 = arith.addf %1169, %1171 : vector<8x128xf32>
    %c0_79 = arith.constant 0 : index
    %1173 = arith.index_cast %8 : i32 to index
    %c0_80 = arith.constant 0 : index
    %1174 = vector.load %arg3[%c0_79, %1173, %c0_80] : memref<10x8x128xf32, #tpu.memory_space<vmem>>, vector<1x8x128xf32>
    %1175 = vector.shape_cast %1174 : vector<1x8x128xf32> to vector<8x128xf32>
    %1176 = vector.shape_cast %1108 : vector<8x128xf32> to vector<1x8x128xf32>
    tpu.vector_store %arg3[%c0_79, %1173, %c0_80], %1176 {strides = array<i32>} : memref<10x8x128xf32, #tpu.memory_space<vmem>>, vector<1x8x128xf32>,
    %c1_81 = arith.constant 1 : index
    %1177 = arith.index_cast %8 : i32 to index
    %c0_82 = arith.constant 0 : index
    %1178 = vector.load %arg3[%c1_81, %1177, %c0_82] : memref<10x8x128xf32, #tpu.memory_space<vmem>>, vector<1x8x128xf32>
    %1179 = vector.shape_cast %1178 : vector<1x8x128xf32> to vector<8x128xf32>
    %1180 = vector.shape_cast %1162 : vector<8x128xf32> to vector<1x8x128xf32>
    tpu.vector_store %arg3[%c1_81, %1177, %c0_82], %1180 {strides = array<i32>} : memref<10x8x128xf32, #tpu.memory_space<vmem>>, vector<1x8x128xf32>,
    %c2_83 = arith.constant 2 : index
    %1181 = arith.index_cast %8 : i32 to index
    %c0_84 = arith.constant 0 : index
    %1182 = vector.load %arg3[%c2_83, %1181, %c0_84] : memref<10x8x128xf32, #tpu.memory_space<vmem>>, vector<1x8x128xf32>
    %1183 = vector.shape_cast %1182 : vector<1x8x128xf32> to vector<8x128xf32>
    %1184 = vector.shape_cast %1172 : vector<8x128xf32> to vector<1x8x128xf32>
    tpu.vector_store %arg3[%c2_83, %1181, %c0_84], %1184 {strides = array<i32>} : memref<10x8x128xf32, #tpu.memory_space<vmem>>, vector<1x8x128xf32>,
    %c3_85 = arith.constant 3 : index
    %1185 = arith.index_cast %8 : i32 to index
    %c0_86 = arith.constant 0 : index
    %1186 = vector.load %arg3[%c3_85, %1185, %c0_86] : memref<10x8x128xf32, #tpu.memory_space<vmem>>, vector<1x8x128xf32>
    %1187 = vector.shape_cast %1186 : vector<1x8x128xf32> to vector<8x128xf32>
    %1188 = vector.shape_cast %1119 : vector<8x128xf32> to vector<1x8x128xf32>
    tpu.vector_store %arg3[%c3_85, %1185, %c0_86], %1188 {strides = array<i32>} : memref<10x8x128xf32, #tpu.memory_space<vmem>>, vector<1x8x128xf32>,
    %c4_87 = arith.constant 4 : index
    %1189 = arith.index_cast %8 : i32 to index
    %c0_88 = arith.constant 0 : index
    %1190 = vector.load %arg3[%c4_87, %1189, %c0_88] : memref<10x8x128xf32, #tpu.memory_space<vmem>>, vector<1x8x128xf32>
    %1191 = vector.shape_cast %1190 : vector<1x8x128xf32> to vector<8x128xf32>
    %1192 = vector.shape_cast %1130 : vector<8x128xf32> to vector<1x8x128xf32>
    tpu.vector_store %arg3[%c4_87, %1189, %c0_88], %1192 {strides = array<i32>} : memref<10x8x128xf32, #tpu.memory_space<vmem>>, vector<1x8x128xf32>,
    %c5_89 = arith.constant 5 : index
    %1193 = arith.index_cast %8 : i32 to index
    %c0_90 = arith.constant 0 : index
    %1194 = vector.load %arg3[%c5_89, %1193, %c0_90] : memref<10x8x128xf32, #tpu.memory_space<vmem>>, vector<1x8x128xf32>
    %1195 = vector.shape_cast %1194 : vector<1x8x128xf32> to vector<8x128xf32>
    %1196 = vector.shape_cast %1141 : vector<8x128xf32> to vector<1x8x128xf32>
    tpu.vector_store %arg3[%c5_89, %1193, %c0_90], %1196 {strides = array<i32>} : memref<10x8x128xf32, #tpu.memory_space<vmem>>, vector<1x8x128xf32>,
    %c6_91 = arith.constant 6 : index
    %1197 = arith.index_cast %8 : i32 to index
    %c0_92 = arith.constant 0 : index
    %1198 = vector.load %arg3[%c6_91, %1197, %c0_92] : memref<10x8x128xf32, #tpu.memory_space<vmem>>, vector<1x8x128xf32>
    %1199 = vector.shape_cast %1198 : vector<1x8x128xf32> to vector<8x128xf32>
    %1200 = vector.shape_cast %1152 : vector<8x128xf32> to vector<1x8x128xf32>
    tpu.vector_store %arg3[%c6_91, %1197, %c0_92], %1200 {strides = array<i32>} : memref<10x8x128xf32, #tpu.memory_space<vmem>>, vector<1x8x128xf32>,
    %c7_93 = arith.constant 7 : index
    %1201 = arith.index_cast %8 : i32 to index
    %c0_94 = arith.constant 0 : index
    %1202 = vector.load %arg3[%c7_93, %1201, %c0_94] : memref<10x8x128xf32, #tpu.memory_space<vmem>>, vector<1x8x128xf32>
    %1203 = vector.shape_cast %1202 : vector<1x8x128xf32> to vector<8x128xf32>
    %1204 = vector.shape_cast %40 : vector<8x128xf32> to vector<1x8x128xf32>
    tpu.vector_store %arg3[%c7_93, %1201, %c0_94], %1204 {strides = array<i32>} : memref<10x8x128xf32, #tpu.memory_space<vmem>>, vector<1x8x128xf32>,
    %c8_95 = arith.constant 8 : index
    %1205 = arith.index_cast %8 : i32 to index
    %c0_96 = arith.constant 0 : index
    %1206 = vector.load %arg3[%c8_95, %1205, %c0_96] : memref<10x8x128xf32, #tpu.memory_space<vmem>>, vector<1x8x128xf32>
    %1207 = vector.shape_cast %1206 : vector<1x8x128xf32> to vector<8x128xf32>
    %1208 = vector.shape_cast %42 : vector<8x128xf32> to vector<1x8x128xf32>
    tpu.vector_store %arg3[%c8_95, %1205, %c0_96], %1208 {strides = array<i32>} : memref<10x8x128xf32, #tpu.memory_space<vmem>>, vector<1x8x128xf32>,
    %c9_97 = arith.constant 9 : index
    %1209 = arith.index_cast %8 : i32 to index
    %c0_98 = arith.constant 0 : index
    %1210 = vector.load %arg3[%c9_97, %1209, %c0_98] : memref<10x8x128xf32, #tpu.memory_space<vmem>>, vector<1x8x128xf32>
    %1211 = vector.shape_cast %1210 : vector<1x8x128xf32> to vector<8x128xf32>
    %1212 = vector.shape_cast %43 : vector<8x128xf32> to vector<1x8x128xf32>
    tpu.vector_store %arg3[%c9_97, %1209, %c0_98], %1212 {strides = array<i32>} : memref<10x8x128xf32, #tpu.memory_space<vmem>>, vector<1x8x128xf32>,
    %c1_i32 = arith.constant 1 : i32
    return
  }
  func.func @transform_0(%arg0: i32, %arg1: memref<258xf32, #tpu.memory_space<smem>>) -> (i32, i32, i32) {
    %c0_i32 = arith.constant 0 : i32
    %c0_i32_0 = arith.constant 0 : i32
    %c0_i32_1 = arith.constant 0 : i32
    return %c0_i32, %arg0, %c0_i32_0 : i32, i32, i32
  }
  func.func @transform_1(%arg0: i32, %arg1: memref<258xf32, #tpu.memory_space<smem>>) -> (i32, i32, i32) {
    %c0_i32 = arith.constant 0 : i32
    %c0_i32_0 = arith.constant 0 : i32
    %c0_i32_1 = arith.constant 0 : i32
    return %c0_i32, %arg0, %c0_i32_0 : i32, i32, i32
  }
}

</mosaic_0001>

<bundles_post_ra>
// kernel: _iai_ips_unit_impl.1
= control target key start
LH: loop header
LB: loop body
LE: loop exit
PB: predicated region body
PF: predicated region fallthrough
CT: control target
= control target key end

     0   :  { %s2608_s0 = inlined_call_operand.vmem [shape: f32[258], index: 0, kind: input, shape index: {}]   ;;  %s2609_s1 = inlined_call_operand.vmem [shape: f32[2,8,128], index: 1, kind: input, shape index: {}]   ;;  %s2610_s2 = inlined_call_operand.vmem [shape: f32[10,8,128], index: 2, kind: output, shape index: {}]  }
   0x1   :  { %2622 = sst [smem:[#allocation14_spill]] %s2610_s2  ;;  %s7_s11 = sshll.u32 %s2608_s0, 4  ;;  %s8_s11 = int_to_ptr.vmem [resolvable:$true] %s7_s11 }
   0x2   :  { %s1584_s12 = scalar_lea.vmem %s8_s11, 48  ;;  %s1588_s13 = scalar_lea.vmem %s8_s11, 64 }
   0x3   :  { %p1585_p0 = scmp.ne.s32.totalorder %s8_s11, %s1584_s12  ;;  %p1589_p1 = scmp.lt.s32.totalorder %s8_s11, %s8_s11 }
   0x4   :  { %p1590_p2 = scmp.lt.s32.totalorder %s1588_s13, %s1584_s12 }
   0x6   :  { %p1591_p3 = por %p1590_p2, %p1589_p1 }
   0x8   :  { %p1592_p4 = pnand %p1591_p3, %p1585_p0 }
   0xa   :  { %1595 = shalt.err (!%p1592_p4)  }
   0xb   :  { %s1598_s14 = smov [#allocation3]  }
   0xc   :  { %10 = dma.vmem_to_smem %s8_s11, 48, %s1598_s14, [#allocation2] }
   0xd   :  { %1596 = dma.done.wait [#allocation2], 48 }
   0xe   :  { %1597 = vsyncadd [#allocation2], 4294967248 }
   0xf   :  { %12 = sfence }
  0x10   :  { %s1183_s15 = sld [smem:[#allocation3 + $0x4]]  ;;  %s18_s16 = sld [smem:[#allocation3]]  ;;  %v22_v0 = vld [vmem:[%s2609_s1] sm:$0xff]  ;;  %v1187_v1 = vld [vmem:[%s2609_s1 + $0x8] sm:$0xff] }
  0x11   :  { %s1184_s17 = sld [smem:[#allocation3 + $0x1]]  ;;  %s1185_s18 = sld [smem:[#allocation3 + $0x2]] }
  0x12   :  { %s1186_s19 = sld [smem:[#allocation3 + $0x3]]  ;;  %s1599_s23 = smov 0.0  }
  0x13   :  { %s1624_s27 = sld [smem:[#allocation3 + $0x5]]  ;;  %s1626_s1 = sld [smem:[#allocation3 + $0xa]] }
  0x14   :  { %s1628_s28 = sld [smem:[#allocation3 + $0xf]]  ;;  %s1630_s29 = sld [smem:[#allocation3 + $0x14]] }
  0x15   :  { %s1632_s30 = sld [smem:[#allocation3 + $0x19]]  ;;  %s1634_s3 = sld [smem:[#allocation3 + $0x1e]] }
  0x16   :  { %s16_s24 = smax.f32 %s1599_s23, %s1183_s15  ;;  %v26_v2 = vstv %s18_s16  ;;  %s1636_s4 = sld [smem:[#allocation3 + $0x6]] }
  0x17   :  { %s17_s25 = sadd.f32 1e-06, %s16_s24  ;;  %v29_v3 = vstv %s1184_s17  ;;  %v27_v4 = vsub.f32 %v22_v0, %v26_v2  ;;  %v33_v6 = vstv %s1185_s18  ;;  %s1638_s5 = sld [smem:[#allocation3 + $0xb]] }
  0x18   :  { %v30_v5 = vsub.f32 %v1187_v1, %v29_v3  ;;  %v36_v7 = vstv %s1186_s19  ;;  %v34_v8 = vsub.f32 %v22_v0, %v33_v6  ;;  %s1640_s6 = sld [smem:[#allocation3 + $0x10]]  ;;  %s1642_s7 = sld [smem:[#allocation3 + $0x15]] }
  0x19   :  { %v37_v9 = vsub.f32 %v1187_v1, %v36_v7  ;;  %s40_s26 = ssub.f32 0.0, %s17_s25  ;;  %v28_v10 = vmul.f32 %v27_v4, %v27_v4  ;;  %s1644_s8 = sld [smem:[#allocation3 + $0x1a]]  ;;  %v54_v21 = vstv %s1624_s27  ;;  %v57_v22 = vstv %s1626_s1 }
  0x1a   :  { %v31_v11 = vmul.f32 %v30_v5, %v30_v5  ;;  %v35_v12 = vmul.f32 %v34_v8, %v34_v8  ;;  %s1646_s9 = sld [smem:[#allocation3 + $0x1f]]  ;;  %s1650_s11 = sld [smem:[#allocation3 + $0xc]]  ;;  %v61_v23 = vstv %s1628_s28  ;;  %v65_v24 = vstv %s1630_s29 }
  0x1b   :  { %v38_v13 = vmul.f32 %v37_v9, %v37_v9  ;;  %v41_v14 = vstv %s40_s26  ;;  %s1648_s10 = sld [smem:[#allocation3 + $0x7]]  ;;  %s1652_s12 = sld [smem:[#allocation3 + $0x11]]  ;;  %v69_v25 = vstv %s1632_s30  ;;  %v73_v26 = vstv %s1634_s3 }
  0x1c   :  { %v32_v15 = vadd.f32 %v31_v11, %v28_v10  ;;  %s1654_s13 = sld [smem:[#allocation3 + $0x16]]  ;;  %s1656_s14 = sld [smem:[#allocation3 + $0x8]]  ;;  %v81_v27 = vstv %s1636_s4 }
  0x1d   :  { %v39_v16 = vadd.f32 %v38_v13, %v35_v12  ;;  %s1658_s15 = sld [smem:[#allocation3 + $0x1b]]  ;;  %s1660_s16 = sld [smem:[#allocation3 + $0xd]]  ;;  %v84_v28 = vstv %s1638_s5 }
  0x1e   :  { %v42_v17 = vmul.f32 %v41_v14, %v32_v15  ;;  %s1662_s17 = sld [smem:[#allocation3 + $0x9]]  ;;  %s1664_s18 = sld [smem:[#allocation3 + $0xe]]  ;;  %v88_v29 = vstv %s1640_s6  ;;  %v92_v30 = vstv %s1642_s7 }
  0x1f   :  { %v45_v18 = vmul.f32 %v41_v14, %v39_v16  ;;  %s1671_s19 = sld [smem:[#allocation3 + $0x12]]  ;;  %s1677_s0 = sld [smem:[#allocation3 + $0x17]]  ;;  %v96_v31 = vstv %s1644_s8 }
  0x20   :  { %v43_v19 = vmul.f32 1.442695, %v42_v17  ;;  %s1679_s20 = sld [smem:[#allocation3 + $0x1c]]  ;;  %s1685_s21 = sld [smem:[#allocation3 + $0x13]]  ;;  %v100_v34 = vstv %s1646_s9  ;;  %v111_v35 = vstv %s1650_s11 }
  0x21   :  { %v46_v20 = vmul.f32 1.442695, %v45_v18  ;;  %v108_v32 = vstv %s1648_s10  ;;  %s1687_s22 = sld [smem:[#allocation3 + $0x18]]  ;;  %v115_v36 = vstv %s1652_s12  ;;  %s1693_s23 = sld [smem:[#allocation3 + $0x1d]] }
  0x22   :  { %1452 = vpow2.f32 %v43_v19  ;;  %v135_v33 = vstv %s1656_s14  ;;  %v119_v37 = vstv %s1654_s13  ;;  %s1706_s26 = sld [smem:[#allocation3 + $0x20]]  ;;  %s1710_s27 = sld [smem:[#allocation3 + $0x21]] }
  0x23   :  { %1454 = vpow2.f32 %v46_v20  ;;  %v123_v39 = vstv %s1658_s15  ;;  %v138_v40 = vstv %s1660_s16  ;;  %s1716_s1 = sld [smem:[#allocation3 + $0x22]]  ;;  %s1722_s28 = sld [smem:[#allocation3 + $0x23]] }
  0x24   :  { %v162_v41 = vstv %s1662_s17  ;;  %v165_v42 = vstv %s1664_s18  ;;  %s1724_s29 = sld [smem:[#allocation3 + $0x28]]  ;;  %s1733_s4 = sld [smem:[#allocation3 + $0x2d]] }
  0x25   :  { %v142_v59 = vstv %s1671_s19  ;;  %v146_v62 = vstv %s1677_s0  ;;  %s1735_s5 = sld [smem:[#allocation3 + $0x32]]  ;;  %s1745_s10 = sld [smem:[#allocation3 + $0x37]] }
  0x26   :  { %v150_v63 = vstv %s1679_s20  ;;  %v169_v2 = vstv %s1685_s21  ;;  %s1747_s11 = sld [smem:[#allocation3 + $0x3c]]  ;;  %s1757_s13 = sld [smem:[#allocation3 + $0x29]] }
  0x27   :  { %v173_v3 = vstv %s1687_s22  ;;  %v177_v7 = vstv %s1693_s23  ;;  %s1755_s12 = sld [smem:[#allocation3 + $0x24]]  ;;  %s1765_s30 = sld [smem:[#allocation3 + $0x2e]] }
  0x28   :  { %s1767_s8 = sld [smem:[#allocation3 + $0x33]]  ;;  %s1770_s16 = sld [smem:[#allocation3 + $0x38]] }
  0x29   :  { %s1772_s17 = sld [smem:[#allocation3 + $0x25]]  ;;  %s1776_s18 = sld [smem:[#allocation3 + $0x2a]] }
  0x2a   :  { %s1778_s19 = sld [smem:[#allocation3 + $0x2f]]  ;;  %s1781_s0 = sld [smem:[#allocation3 + $0x34]] }
  0x2b   :  { %2623 = sst [smem:[#allocation5_spill]] %s1745_s10  ;;  %s1783_s20 = sld [smem:[#allocation3 + $0x39]] }
  0x2c   :  { %v1453_v38 = vpop.eup %1452  ;;  %2624 = sst [smem:[#allocation6_spill]] %s1747_s11  ;;  %s1789_s22 = sld [smem:[#allocation3 + $0x4b]] }
  0x2d   :  { %v1455_v43 = vpop.eup %1454  ;;  %v55_v44 = vmul.f32 %v1453_v38, %v54_v21  ;;  %v82_v45 = vmul.f32 %v1453_v38, %v81_v27  ;;  %v109_v46 = vmul.f32 %v1453_v38, %v108_v32  ;;  %v136_v47 = vmul.f32 %v1453_v38, %v135_v33  ;;  %s1787_s21 = sld [smem:[#allocation3 + $0x41]]  ;;  %s1796_s23 = sld [smem:[#allocation3 + $0x26]] }
  0x2e   :  { %v48_v48 = vsub.f32 %v1453_v38, %v1455_v43  ;;  %v1699_v49 = vsub.f32 1.0, %v1455_v43  ;;  %v58_v50 = vmul.f32 %v1455_v43, %v57_v22  ;;  %v85_v51 = vmul.f32 %v1455_v43, %v84_v28  ;;  %2625 = sst [smem:[#allocation7_spill]] %s1767_s8  ;;  %s1798_s24 = sld [smem:[#allocation3 + $0x55]] }
  0x2f   :  { %v112_v52 = vmul.f32 %v1455_v43, %v111_v35  ;;  %v139_v53 = vmul.f32 %v1455_v43, %v138_v40  ;;  %v163_v54 = vmul.f32 %v1453_v38, %v162_v41  ;;  %v166_v55 = vmul.f32 %v1455_v43, %v165_v42  ;;  %2626 = sst [smem:[#allocation8_spill]] %s1770_s16  ;;  %s1807_s3 = sld [smem:[#allocation3 + $0x4c]] }
  0x30   :  { %v49_v56 = vand.u32 2147483647, %v48_v48  ;;  %v59_v57 = vadd.f32 %v58_v50, %v55_v44  ;;  %v86_v58 = vadd.f32 %v85_v51, %v82_v45  ;;  %1448 = vst [vmem:[%s2610_s2 + $0x40] sm:$0xff] %v1699_v49  ;;  %v66_v4 = vmul.f32 %v65_v24, %v1699_v49  ;;  %2627 = sst [smem:[#allocation9_spill]] %s1781_s0  ;;  %s1802_s25 = sld [smem:[#allocation3 + $0x2b]] }
  0x31   :  { %v113_v60 = vadd.f32 %v112_v52, %v109_v46  ;;  %v140_v61 = vadd.f32 %v139_v53, %v136_v47  ;;  %v167_v1 = vadd.f32 %v166_v55, %v163_v54  ;;  %v93_v5 = vmul.f32 %v92_v30, %v1699_v49  ;;  %2628 = sst [smem:[#allocation10_spill]] %s1783_s20  ;;  %s1809_s9 = sld [smem:[#allocation3 + $0x56]] }
  0x32   :  { %v1712_v0 = vsub.f32 1.0, %v49_v56  ;;  %v120_v6 = vmul.f32 %v119_v37, %v1699_v49  ;;  %v147_v13 = vmul.f32 %v146_v62, %v1699_v49  ;;  %v174_v15 = vmul.f32 %v173_v3, %v1699_v49  ;;  %s1820_s6 = sld [smem:[#allocation3 + $0x57]]  ;;  %s1824_s7 = sld [smem:[#allocation3 + $0x44]] }
  0x33   :  { %v127_v30 = vstv %s1706_s26  ;;  %v154_v32 = vstv %s1710_s27  ;;  %v181_v37 = vstv %s1716_s1  ;;  %v189_v40 = vstv %s1722_s28  ;;  %s1804_s26 = sld [smem:[#allocation3 + $0x42]]  ;;  %s1813_s27 = sld [smem:[#allocation3 + $0x43]] }
  0x34   :  { %v1728_v8 = vmul.f32 %v1699_v49, %v1712_v0  ;;  %v62_v9 = vmul.f32 %v61_v23, %v1712_v0  ;;  %v89_v10 = vmul.f32 %v88_v29, %v1712_v0  ;;  %v116_v11 = vmul.f32 %v115_v36, %v1712_v0  ;;  %1447 = vst [vmem:[%s2610_s2 + $0x38] sm:$0xff] %v1712_v0  ;;  %s1815_s1 = sld [smem:[#allocation3 + $0x4d]]  ;;  %s1826_s14 = sld [smem:[#allocation3 + $0x4e]] }
  0x35   :  { %v143_v12 = vmul.f32 %v142_v59, %v1712_v0  ;;  %v170_v14 = vmul.f32 %v169_v2, %v1712_v0  ;;  %v192_v41 = vstv %s1724_s29  ;;  %v196_v45 = vstv %s1733_s4  ;;  %s1829_s15 = sld [smem:[#allocation3 + $0x30]]  ;;  %s2113_s28 = sld [smem:[#allocation3 + $0x6a]] }
  0x36   :  { %v63_v16 = vadd.f32 %v62_v9, %v59_v57  ;;  %v70_v17 = vmul.f32 %v69_v25, %v1728_v8  ;;  %v90_v18 = vadd.f32 %v89_v10, %v86_v58  ;;  %v97_v19 = vmul.f32 %v96_v31, %v1728_v8  ;;  %1449 = vst [vmem:[%s2610_s2 + $0x48] sm:$0xff] %v1728_v8  ;;  %s1831_s2 = sld [smem:[#allocation3 + $0x35]]  ;;  %s2115_s29 = sld [smem:[#allocation3 + $0x6f]] }
  0x37   :  { %v117_v20 = vadd.f32 %v116_v11, %v113_v60  ;;  %v124_v21 = vmul.f32 %v123_v39, %v1728_v8  ;;  %v144_v22 = vadd.f32 %v143_v12, %v140_v61  ;;  %v151_v23 = vmul.f32 %v150_v63, %v1728_v8  ;;  %s2125_s4 = sld [smem:[#allocation3 + $0x79]] }
  0x38   :  { %v67_v24 = vadd.f32 %v66_v4, %v63_v16  ;;  %v94_v25 = vadd.f32 %v93_v5, %v90_v18  ;;  %v171_v27 = vadd.f32 %v170_v14, %v167_v1  ;;  %v178_v28 = vmul.f32 %v177_v7, %v1728_v8 }
  0x39   :  { %v121_v29 = vadd.f32 %v120_v6, %v117_v20  ;;  %v148_v31 = vadd.f32 %v147_v13, %v144_v22  ;;  %v200_v48 = vstv %s1735_s5  ;;  %v204_v50 = vstv %s1745_s10  ;;  %s1843_s10 = sld [smem:[#allocation3 + $0x3a]]  ;;  %s1998_s5 = sld [smem:[#allocation3 + $0x64]] }
  0x3a   :  { %v71_v33 = vadd.f32 %v70_v17, %v67_v24  ;;  %v98_v35 = vadd.f32 %v97_v19, %v94_v25  ;;  %v175_v36 = vadd.f32 %v174_v15, %v171_v27  ;;  %v208_v52 = vstv %s1747_s11  ;;  %s1838_s11 = sld [smem:[#allocation3 + $0x58]] }
  0x3b   :  { %v125_v38 = vadd.f32 %v124_v21, %v121_v29  ;;  %v152_v39 = vadd.f32 %v151_v23, %v148_v31  ;;  %v216_v55 = vstv %s1755_s12  ;;  %v219_v56 = vstv %s1757_s13  ;;  %s1982_s12 = sld [smem:[#allocation3 + $0x5c]] }
  0x3c   :  { %v74_v42 = vadd.f32 %v73_v26, %v71_v33  ;;  %v101_v43 = vadd.f32 %v100_v34, %v98_v35  ;;  %v179_v44 = vadd.f32 %v178_v28, %v175_v36  ;;  %v223_v60 = vstv %s1765_s30  ;;  %2629 = sst [smem:[#allocation11_spill]] %s1831_s2  ;;  %s2121_s13 = sld [smem:[#allocation3 + $0x74]] }
  0x3d   :  { %v128_v46 = vadd.f32 %v127_v30, %v125_v38  ;;  %v155_v47 = vadd.f32 %v154_v32, %v152_v39  ;;  %v227_v63 = vstv %s1767_s8  ;;  %v231_v1 = vstv %s1770_s16  ;;  %s1840_s16 = sld [smem:[#allocation3 + $0x45]]  ;;  %s1900_s8 = sld [smem:[#allocation3 + $0x51]] }
  0x3e   :  { %v75_v26 = vsub.f32 0.0, %v74_v42  ;;  %v102_v51 = vsub.f32 0.0, %v101_v43  ;;  %v182_v34 = vadd.f32 %v181_v37, %v179_v44  ;;  %v243_v3 = vstv %s1772_s17  ;;  %s1988_s17 = sld [smem:[#allocation3 + $0x3d]]  ;;  %s2132_s30 = sld [smem:[#allocation3 + $0x83]] }
  0x3f   :  { %v129_v53 = vsub.f32 0.0, %v128_v46  ;;  %v156_v54 = vsub.f32 0.0, %v155_v47  ;;  %v246_v4 = vstv %s1776_s18  ;;  %v250_v5 = vstv %s1778_s19  ;;  %s1996_s18 = sld [smem:[#allocation3 + $0x3e]]  ;;  %s2002_s19 = sld [smem:[#allocation3 + $0x3f]] }
  0x40   :  { %v76_v57 = vmul.f32 1.442695, %v75_v26  ;;  %v103_v58 = vmul.f32 1.442695, %v102_v51  ;;  %v183_v59 = vsub.f32 0.0, %v182_v34  ;;  %v324_v6 = vstv %s1787_s21  ;;  %s1849_s21 = sld [smem:[#allocation3 + $0x4f]] }
  0x41   :  { %v130_v61 = vmul.f32 1.442695, %v129_v53  ;;  %v157_v62 = vmul.f32 1.442695, %v156_v54  ;;  %v327_v7 = vstv %s1789_s22  ;;  %v325_v9 = vmul.f32 %v324_v6, %v1712_v0  ;;  %s1852_s22 = sld [smem:[#allocation3 + $0x27]] }
  0x42   :  { %1456 = vpow2.f32 %v76_v57  ;;  %v184_v2 = vmul.f32 1.442695, %v183_v59  ;;  %v328_v10 = vmul.f32 %v327_v7, %v1699_v49  ;;  %v331_v11 = vstv %s1798_s24  ;;  %s1854_s24 = sld [smem:[#allocation3 + $0x2c]] }
  0x43   :  { %1458 = vpow2.f32 %v103_v58  ;;  %v254_v12 = vstv %s1781_s0  ;;  %v332_v13 = vmul.f32 %v331_v11, %v1728_v8  ;;  %v339_v14 = vstv %s1804_s26  ;;  %s1859_s26 = sld [smem:[#allocation3 + $0x31]] }
  0x44   :  { %1460 = vpow2.f32 %v130_v61  ;;  %v329_v15 = vadd.f32 %v328_v10, %v325_v9  ;;  %v340_v16 = vmul.f32 %v339_v14, %v1712_v0  ;;  %v342_v17 = vstv %s1807_s3  ;;  %s1867_s3 = sld [smem:[#allocation3 + $0x36]]  ;;  %s1891_s0 = sld [smem:[#allocation3 + $0x61]] }
  0x45   :  { %1462 = vpow2.f32 %v157_v62  ;;  %v258_v18 = vstv %s1783_s20  ;;  %v343_v19 = vmul.f32 %v342_v17, %v1699_v49  ;;  %v346_v20 = vstv %s1809_s9  ;;  %s1871_s9 = sld [smem:[#allocation3 + $0x59]]  ;;  %s1876_s20 = sld [smem:[#allocation3 + $0x60]] }
  0x46   :  { %1464 = vpow2.f32 %v184_v2  ;;  %v354_v21 = vstv %s1813_s27  ;;  %v1861_v22 = vadd.f32 %v332_v13, %v329_v15  ;;  %v347_v23 = vmul.f32 %v346_v20, %v1728_v8  ;;  %s1874_s27 = sld [smem:[#allocation3 + $0x5f]] }
  0x47   :  { %2630 = sst [smem:[#allocation12_spill]] %s1852_s22  ;;  %v355_v24 = vmul.f32 %v354_v21, %v1712_v0  ;;  %v357_v25 = vstv %s1815_s1  ;;  %v270_v27 = vstv %s1796_s23  ;;  %v344_v28 = vadd.f32 %v343_v19, %v340_v16  ;;  %s1885_s1 = sld [smem:[#allocation3 + $0x46]] }
  0x48   :  { %2631 = sst [smem:[#allocation13_spill]] %s1854_s24  ;;  %v358_v29 = vmul.f32 %v357_v25, %v1699_v49  ;;  %v361_v30 = vstv %s1820_s6  ;;  %v273_v31 = vstv %s1802_s25  ;;  %v369_v33 = vstv %s1824_s7  ;;  %s1895_s7 = sld [smem:[#allocation3 + $0x5a]] }
  0x49   :  { %v362_v32 = vmul.f32 %v361_v30, %v1728_v8  ;;  %v372_v35 = vstv %s1826_s14  ;;  %v1881_v36 = vadd.f32 %v347_v23, %v344_v28  ;;  %v370_v38 = vmul.f32 %v369_v33, %v1712_v0  ;;  %s1887_s6 = sld [smem:[#allocation3 + $0x50]]  ;;  %s1898_s14 = sld [smem:[#allocation3 + $0x47]] }
  0x4a   :  { %v359_v37 = vadd.f32 %v358_v29, %v355_v24  ;;  %v373_v39 = vmul.f32 %v372_v35, %v1699_v49  ;;  %v277_v43 = vstv %s1829_s15  ;;  %v281_v44 = vstv %s1831_s2  ;;  %s1902_s2 = sld [smem:[#allocation3 + $0x3b]]  ;;  %s2010_s23 = sld [smem:[#allocation3 + $0x49]] }
  0x4b   :  { %v376_v46 = vstv %s1838_s11  ;;  %v384_v47 = vstv %s1840_s16  ;;  %v285_v34 = vstv %s1843_s10  ;;  %v387_v62 = vstv %s1849_s21  ;;  %s1909_s11 = sld [smem:[#allocation3 + $0x62]]  ;;  %s1911_s16 = sld [smem:[#allocation3 + $0x5b]] }
  0x4c   :  { %v1457_v42 = vpop.eup %1456  ;;  %v363_v53 = vadd.f32 %v362_v32, %v359_v37  ;;  %v374_v54 = vadd.f32 %v373_v39, %v370_v38  ;;  %v377_v59 = vmul.f32 %v376_v46, %v1728_v8  ;;  %v385_v61 = vmul.f32 %v384_v47, %v1712_v0  ;;  %s1916_s21 = sld [smem:[#allocation3 + $0x63]]  ;;  %s2021_s15 = sld [smem:[#allocation3 + $0x65]] }
  0x4d   :  { %v1459_v26 = vpop.eup %1458  ;;  %v78_v51 = vadd.f32 1.0, %v1457_v42  ;;  %v297_v7 = vstv %s1852_s22  ;;  %v300_v9 = vstv %s1854_s24  ;;  %v388_v14 = vmul.f32 %v387_v62, %v1699_v49  ;;  %s1920_s24 = sld [smem:[#allocation3 + $0x48]]  ;;  %s1922_s22 = sld [smem:[#allocation3 + $0x52]] }
  0x4e   :  { %v1461_v57 = vpop.eup %1460  ;;  %v105_v58 = vadd.f32 1.0, %v1459_v26  ;;  %v1913_v13 = vadd.f32 %v377_v59, %v374_v54  ;;  %v304_v16 = vstv %s1859_s26  ;;  %v391_v17 = vstv %s1871_s9  ;;  %s2019_s10 = sld [smem:[#allocation3 + $0x53]]  ;;  %s2036_s26 = sld [smem:[#allocation3 + $0x4a]] }
  0x4f   :  { %v1463_v2 = vpop.eup %1462  ;;  %1466 = vrcp.f32 %v78_v51  ;;  %v132_v6 = vadd.f32 1.0, %v1461_v57  ;;  %v308_v19 = vstv %s1867_s3  ;;  %v389_v20 = vadd.f32 %v388_v14, %v385_v61  ;;  %s2038_s3 = sld [smem:[#allocation3 + $0x54]]  ;;  %s2057_s9 = sld [smem:[#allocation3 + $0x69]] }
  0x50   :  { %v1465_v10 = vpop.eup %1464  ;;  %1468 = vrcp.f32 %v105_v58  ;;  %v159_v11 = vadd.f32 1.0, %v1463_v2  ;;  %v392_v21 = vmul.f32 %v391_v17, %v1728_v8  ;;  %v335_v23 = vstv %s1874_s27  ;;  %s2059_s27 = sld [smem:[#allocation3 + $0x6e]]  ;;  %s2155_s25 = sld [smem:[#allocation3 + $0x6b]] }
  0x51   :  { %1470 = vrcp.f32 %v132_v6  ;;  %v186_v15 = vadd.f32 1.0, %v1465_v10  ;;  %v399_v24 = vstv %s1885_s1  ;;  %v402_v25 = vstv %s1887_s6  ;;  %s2067_s1 = sld [smem:[#allocation3 + $0x67]]  ;;  %s2071_s6 = sld [smem:[#allocation3 + $0x73]] }
  0x52   :  { %1472 = vrcp.f32 %v159_v11  ;;  %v350_v28 = vstv %s1876_s20  ;;  %v1930_v29 = vadd.f32 %v392_v21, %v389_v20  ;;  %v400_v30 = vmul.f32 %v399_v24, %v1712_v0  ;;  %s2107_s20 = sld [smem:[#allocation3 + $0x91]] }
  0x53   :  { %1474 = vrcp.f32 %v186_v15  ;;  %v403_v32 = vmul.f32 %v402_v25, %v1699_v49  ;;  %v365_v33 = vstv %s1891_s0  ;;  %v406_v35 = vstv %s1895_s7  ;;  %s2073_s7 = sld [smem:[#allocation3 + $0x78]]  ;;  %s2103_s0 = sld [smem:[#allocation3 + $0x8c]] }
  0x54   :  { %v414_v37 = vstv %s1898_s14  ;;  %v417_v38 = vstv %s1900_s8  ;;  %v312_v39 = vstv %s1902_s2  ;;  %v407_v46 = vmul.f32 %v406_v35, %v1728_v8  ;;  %s2047_s2 = sld [smem:[#allocation3 + $0x5e]]  ;;  %s2079_s14 = sld [smem:[#allocation3 + $0x68]] }
  0x55   :  { %v404_v42 = vadd.f32 %v403_v32, %v400_v30  ;;  %v415_v47 = vmul.f32 %v414_v37, %v1712_v0  ;;  %v1942_v26 = vadd.f32 %v335_v23, %v1861_v22  ;;  %v380_v51 = vstv %s1909_s11  ;;  %s2085_s11 = sld [smem:[#allocation3 + $0x7d]]  ;;  %s2096_s8 = sld [smem:[#allocation3 + $0x40]] }
  0x56   :  { %v418_v54 = vmul.f32 %v417_v38, %v1699_v49  ;;  %v421_v57 = vstv %s1911_s16  ;;  %v1948_v58 = vadd.f32 %v350_v28, %v1881_v36  ;;  %v1950_v59 = vadd.f32 %v365_v33, %v363_v53  ;;  %s2090_s16 = sld [smem:[#allocation3 + $0x82]] }
  0x57   :  { %v395_v61 = vstv %s1916_s21  ;;  %v1953_v62 = vadd.f32 %v407_v46, %v404_v42  ;;  %v422_v6 = vmul.f32 %v421_v57, %v1728_v8  ;;  %v429_v10 = vstv %s1920_s24  ;;  %s2027_s24 = sld [smem:[#allocation3 + $0x5d]]  ;;  %s2094_s21 = sld [smem:[#allocation3 + $0x87]] }
  0x58   :  { %v419_v2 = vadd.f32 %v418_v54, %v415_v47  ;;  %v432_v11 = vstv %s1922_s22  ;;  %s2025_s22 = sld [smem:[#allocation3 + $0x66]] }
  0x59   :  { %v1467_v22 = vpop.eup %1466 }
  0x5a   :  { %v1469_v36 = vpop.eup %1468  ;;  %v190_v14 = vmul.f32 %v1467_v22, %v189_v40  ;;  %v217_v53 = vmul.f32 %v1467_v22, %v216_v55  ;;  %v244_v15 = vmul.f32 %v1467_v22, %v243_v3  ;;  %v271_v17 = vmul.f32 %v1467_v22, %v270_v27 }
  0x5b   :  { %v1471_v20 = vpop.eup %1470  ;;  %v193_v21 = vmul.f32 %v1469_v36, %v192_v41  ;;  %v220_v23 = vmul.f32 %v1469_v36, %v219_v56  ;;  %v247_v24 = vmul.f32 %v1469_v36, %v246_v4  ;;  %v274_v25 = vmul.f32 %v1469_v36, %v273_v31 }
  0x5c   :  { %v1473_v40 = vpop.eup %1472  ;;  %v197_v55 = vmul.f32 %v1471_v20, %v196_v45  ;;  %v224_v3 = vmul.f32 %v1471_v20, %v223_v60  ;;  %v251_v27 = vmul.f32 %v1471_v20, %v250_v5  ;;  %v278_v28 = vmul.f32 %v1471_v20, %v277_v43 }
  0x5d   :  { %v1475_v41 = vpop.eup %1474  ;;  %v194_v56 = vadd.f32 %v193_v21, %v190_v14  ;;  %v201_v30 = vmul.f32 %v1473_v40, %v200_v48  ;;  %v221_v4 = vadd.f32 %v220_v23, %v217_v53  ;;  %v228_v31 = vmul.f32 %v1473_v40, %v227_v63 }
  0x5e   :  { %v205_v45 = vmul.f32 %v1475_v41, %v204_v50  ;;  %v232_v60 = vmul.f32 %v1475_v41, %v231_v1  ;;  %v248_v5 = vadd.f32 %v247_v24, %v244_v15  ;;  %v255_v43 = vmul.f32 %v1473_v40, %v254_v12 }
  0x5f   :  { %v198_v48 = vadd.f32 %v197_v55, %v194_v56  ;;  %v225_v32 = vadd.f32 %v224_v3, %v221_v4  ;;  %v259_v63 = vmul.f32 %v1475_v41, %v258_v18  ;;  %v275_v33 = vadd.f32 %v274_v25, %v271_v17 }
  0x60   :  { %v252_v50 = vadd.f32 %v251_v27, %v248_v5  ;;  %v282_v1 = vmul.f32 %v1473_v40, %v281_v44  ;;  %v286_v35 = vmul.f32 %v1475_v41, %v285_v34  ;;  %v298_v12 = vmul.f32 %v1467_v22, %v297_v7 }
  0x61   :  { %v202_v37 = vadd.f32 %v201_v30, %v198_v48  ;;  %v229_v38 = vadd.f32 %v228_v31, %v225_v32  ;;  %v279_v42 = vadd.f32 %v278_v28, %v275_v33  ;;  %v301_v46 = vmul.f32 %v1469_v36, %v300_v9 }
  0x62   :  { %v256_v47 = vadd.f32 %v255_v43, %v252_v50  ;;  %v305_v18 = vmul.f32 %v1471_v20, %v304_v16  ;;  %v309_v54 = vmul.f32 %v1473_v40, %v308_v19  ;;  %v430_v44 = vmul.f32 %v429_v10, %v1712_v0 }
  0x63   :  { %v206_v34 = vadd.f32 %v205_v45, %v202_v37  ;;  %v233_v7 = vadd.f32 %v232_v60, %v229_v38  ;;  %v283_v57 = vadd.f32 %v282_v1, %v279_v42  ;;  %v302_v22 = vadd.f32 %v301_v46, %v298_v12 }
  0x64   :  { %v260_v9 = vadd.f32 %v259_v63, %v256_v47  ;;  %v423_v36 = vadd.f32 %v422_v6, %v419_v2  ;;  %v433_v16 = vmul.f32 %v432_v11, %v1699_v49  ;;  %v436_v19 = vstv %s1982_s12  ;;  %s2119_s12 = sld [smem:[#allocation3 + $0x96]] }
  0x65   :  { %v209_v10 = vadd.f32 %v208_v52, %v206_v34  ;;  %v287_v14 = vadd.f32 %v286_v35, %v283_v57  ;;  %v306_v53 = vadd.f32 %v305_v18, %v302_v22  ;;  %v313_v15 = vmul.f32 %v1475_v41, %v312_v39 }
  0x66   :  { %v235_v17 = vstv %s1988_s17  ;;  %v262_v20 = vstv %s1996_s18  ;;  %v410_v21 = vstv %s1998_s5  ;;  %v434_v2 = vadd.f32 %v433_v16, %v430_v44  ;;  %s2127_s17 = sld [smem:[#allocation3 + $0x7e]]  ;;  %s2136_s18 = sld [smem:[#allocation3 + $0x88]] }
  0x67   :  { %v289_v6 = vstv %s2002_s19  ;;  %v310_v11 = vadd.f32 %v309_v54, %v306_v53  ;;  %v2042_v23 = vmax.f32 %v1942_v26, 0.0  ;;  %v381_v52 = vadd.f32 %v380_v51, %v1913_v13  ;;  %s2138_s5 = sld [smem:[#allocation3 + $0x8d]]  ;;  %s2145_s19 = sld [smem:[#allocation3 + $0x92]] }
  0x68   :  { %v2050_v39 = vmax.f32 %v1948_v58, 0.0  ;;  %v396_v24 = vadd.f32 %v395_v61, %v1930_v29  ;;  %v437_v25 = vmul.f32 %v436_v19, %v1728_v8  ;;  %v444_v40 = vstv %s2010_s23  ;;  %s2149_s23 = sld [smem:[#allocation3 + $0x9b]] }
  0x69   :  { %v210_v26 = vsub.f32 0.0, %v209_v10  ;;  %v2061_v55 = vadd.f32 %v313_v15, %v310_v11  ;;  %v2064_v13 = vmax.f32 %v1950_v59, 0.0  ;;  %v411_v51 = vadd.f32 %v410_v21, %v1953_v62 }
  0x6a   :  { %v236_v29 = vadd.f32 %v235_v17, %v233_v7  ;;  %v438_v58 = vadd.f32 %v437_v25, %v434_v2  ;;  %v445_v61 = vmul.f32 %v444_v40, %v1712_v0  ;;  %v447_v3 = vstv %s2019_s10  ;;  %s2161_s10 = sld [smem:[#allocation3 + $0x70]] }
  0x6b   :  { %v263_v27 = vadd.f32 %v262_v20, %v260_v9  ;;  %v2075_v28 = vmax.f32 %v381_v52, 0.0  ;;  %v425_v59 = vstv %s2021_s15  ;;  %v448_v62 = vmul.f32 %v447_v3, %v1699_v49  ;;  %s2167_s15 = sld [smem:[#allocation3 + $0x75]] }
  0x6c   :  { %v290_v41 = vadd.f32 %v289_v6, %v287_v14  ;;  %v2081_v56 = vmax.f32 %v396_v24, 0.0  ;;  %v440_v30 = vstv %s2025_s22  ;;  %v451_v4 = vstv %s2027_s24  ;;  %s2169_s22 = sld [smem:[#allocation3 + $0x7a]]  ;;  %s2174_s24 = sld [smem:[#allocation3 + $0x97]] }
  0x6d   :  { %v211_v31 = vmul.f32 1.442695, %v210_v26  ;;  %v2087_v45 = vmax.f32 %v411_v51, 0.0  ;;  %v449_v60 = vadd.f32 %v448_v62, %v445_v61  ;;  %v452_v5 = vmul.f32 %v451_v4, %v1728_v8 }
  0x6e   :  { %v237_v43 = vsub.f32 0.0, %v236_v29  ;;  %v426_v48 = vadd.f32 %v425_v59, %v423_v36  ;;  %v459_v32 = vstv %s2036_s26  ;;  %v462_v63 = vstv %s2038_s3  ;;  %s2176_s26 = sld [smem:[#allocation3 + $0x7f]]  ;;  %s2181_s3 = sld [smem:[#allocation3 + $0x9c]] }
  0x6f   :  { %v264_v33 = vsub.f32 0.0, %v263_v27  ;;  %v453_v50 = vadd.f32 %v452_v5, %v449_v60  ;;  %v460_v1 = vmul.f32 %v459_v32, %v1712_v0  ;;  %v463_v35 = vmul.f32 %v462_v63, %v1699_v49 }
  0x70   :  { %v291_v12 = vsub.f32 0.0, %v290_v41  ;;  %v466_v37 = vstv %s2047_s2  ;;  %v474_v38 = vstv %s2057_s9  ;;  %v477_v42 = vstv %s2059_s27  ;;  %s2183_s2 = sld [smem:[#allocation3 + $0x84]]  ;;  %s2189_s9 = sld [smem:[#allocation3 + $0x89]] }
  0x71   :  { %1476 = vpow2.f32 %v211_v31  ;;  %v455_v46 = vstv %s2067_s1  ;;  %v464_v47 = vadd.f32 %v463_v35, %v460_v1  ;;  %v467_v18 = vmul.f32 %v466_v37, %v1728_v8  ;;  %s2191_s27 = sld [smem:[#allocation3 + $0x8e]]  ;;  %s2199_s1 = sld [smem:[#allocation3 + $0x93]] }
  0x72   :  { %v475_v54 = vmul.f32 %v474_v38, %v2042_v23  ;;  %v478_v0 = vmul.f32 %v477_v42, %v2050_v39  ;;  %v481_v49 = vstv %s2071_s6  ;;  %v485_v44 = vstv %s2073_s7  ;;  %s2204_s6 = sld [smem:[#allocation3 + $0x98]]  ;;  %s2206_s7 = sld [smem:[#allocation3 + $0x6c]] }
  0x73   :  { %v441_v34 = vadd.f32 %v440_v30, %v438_v58  ;;  %v468_v7 = vadd.f32 %v467_v18, %v464_v47  ;;  %v470_v57 = vstv %s2079_s14  ;;  %v482_v22 = vmul.f32 %v481_v49, %v2064_v13  ;;  %s2213_s14 = sld [smem:[#allocation3 + $0x71]] }
  0x74   :  { %v238_v8 = vmul.f32 1.442695, %v237_v43  ;;  %v479_v9 = vadd.f32 %v478_v0, %v475_v54  ;;  %v486_v36 = vmul.f32 %v485_v44, %v2075_v28  ;;  %v489_v16 = vstv %s2085_s11  ;;  %s2215_s11 = sld [smem:[#allocation3 + $0x76]] }
  0x75   :  { %v265_v19 = vmul.f32 1.442695, %v264_v33  ;;  %v2129_v10 = vmax.f32 %v426_v48, 0.0  ;;  %v456_v14 = vadd.f32 %v455_v46, %v453_v50  ;;  %v493_v53 = vstv %s2090_s16  ;;  %s2225_s16 = sld [smem:[#allocation3 + $0x7b]] }
  0x76   :  { %v471_v15 = vadd.f32 %v470_v57, %v468_v7  ;;  %v483_v17 = vadd.f32 %v482_v22, %v479_v9  ;;  %v490_v20 = vmul.f32 %v489_v16, %v2081_v56  ;;  %v497_v21 = vstv %s2094_s21  ;;  %s2227_s21 = sld [smem:[#allocation3 + $0x80]] }
  0x77   :  { %v2140_v2 = vmul.f32 1.442695, %v291_v12  ;;  %v316_v6 = vstv %s2096_s8  ;;  %v2143_v11 = vmax.f32 %v441_v34, 0.0  ;;  %1478 = vpow2.f32 %v238_v8  ;;  %s2321_s8 = sld [smem:[#allocation3 + $0x9f]] }
  0x78   :  { %v487_v52 = vadd.f32 %v486_v36, %v483_v17  ;;  %v494_v24 = vmul.f32 %v493_v53, %v2087_v45  ;;  %v501_v25 = vstv %s2103_s0  ;;  %1480 = vpow2.f32 %v265_v19  ;;  %s2231_s0 = sld [smem:[#allocation3 + $0x85]] }
  0x79   :  { %v2151_v40 = vmax.f32 %v456_v14, 0.0  ;;  %v498_v26 = vmul.f32 %v497_v21, %v2129_v10  ;;  %v505_v51 = vstv %s2107_s20  ;;  %v2157_v29 = vmax.f32 %v471_v15, 0.0  ;;  %s2236_s20 = sld [smem:[#allocation3 + $0x8a]] }
  0x7a   :  { %v491_v58 = vadd.f32 %v490_v20, %v487_v52  ;;  %v521_v61 = vstv %s2113_s28  ;;  %v524_v3 = vstv %s2115_s29  ;;  %v502_v59 = vmul.f32 %v501_v25, %v2143_v11  ;;  %s2238_s28 = sld [smem:[#allocation3 + $0x8f]]  ;;  %s2245_s29 = sld [smem:[#allocation3 + $0x9d]] }
  0x7b   :  { %v1477_v27 = vpop.eup %1476  ;;  %v522_v62 = vmul.f32 %v521_v61, %v2042_v23  ;;  %v525_v41 = vmul.f32 %v524_v3, %v2050_v39  ;;  %v528_v30 = vstv %s2121_s13  ;;  %v509_v31 = vstv %s2119_s12  ;;  %s2249_s12 = sld [smem:[#allocation3 + $0x94]]  ;;  %s2251_s13 = sld [smem:[#allocation3 + $0x99]] }
  0x7c   :  { %v495_v4 = vadd.f32 %v494_v24, %v491_v58  ;;  %v529_v60 = vmul.f32 %v528_v30, %v2064_v13  ;;  %v532_v5 = vstv %s2125_s4  ;;  %v536_v32 = vstv %s2127_s17  ;;  %s2256_s4 = sld [smem:[#allocation3 + $0x6d]]  ;;  %s2258_s17 = sld [smem:[#allocation3 + $0x72]] }
  0x7d   :  { %v526_v43 = vadd.f32 %v525_v41, %v522_v62  ;;  %v533_v48 = vmul.f32 %v532_v5, %v2075_v28  ;;  %v540_v63 = vstv %s2132_s30  ;;  %v2185_v33 = vadd.f32 1.0, %v1477_v27  ;;  %s2262_s30 = sld [smem:[#allocation3 + $0x77]] }
  0x7e   :  { %v499_v50 = vadd.f32 %v498_v26, %v495_v4  ;;  %v506_v1 = vmul.f32 %v505_v51, %v2151_v40  ;;  %v537_v35 = vmul.f32 %v536_v32, %v2081_v56  ;;  %v544_v37 = vstv %s2136_s18  ;;  %s2267_s18 = sld [smem:[#allocation3 + $0x7c]] }
  0x7f   :  { %v530_v12 = vadd.f32 %v529_v60, %v526_v43  ;;  %v548_v38 = vstv %s2138_s5  ;;  %v552_v42 = vstv %s2145_s19  ;;  %v510_v47 = vmul.f32 %v509_v31, %v2157_v29  ;;  %s2269_s5 = sld [smem:[#allocation3 + $0x81]]  ;;  %s2277_s19 = sld [smem:[#allocation3 + $0x86]] }
  0x80   :  { %v503_v46 = vadd.f32 %v502_v59, %v499_v50  ;;  %v513_v18 = vstv %s2149_s23  ;;  %v541_v54 = vmul.f32 %v540_v63, %v2087_v45  ;;  %v545_v49 = vmul.f32 %v544_v37, %v2129_v10  ;;  %s2284_s23 = sld [smem:[#allocation3 + $0x8b]] }
  0x81   :  { %v534_v0 = vadd.f32 %v533_v48, %v530_v12  ;;  %v549_v44 = vmul.f32 %v548_v38, %v2143_v11  ;;  %v568_v34 = vstv %s2155_s25  ;;  %v2208_v7 = vpop.eup %1478  ;;  %v553_v22 = vmul.f32 %v552_v42, %v2151_v40  ;;  %s2291_s25 = sld [smem:[#allocation3 + $0x90]] }
  0x82   :  { %v507_v57 = vadd.f32 %v506_v1, %v503_v46  ;;  %v569_v8 = vmul.f32 %v568_v34, %v2042_v23  ;;  %v571_v9 = vstv %s2161_s10  ;;  %v2217_v36 = vpop.eup %1480  ;;  %v575_v14 = vstv %s2167_s15  ;;  %s2293_s10 = sld [smem:[#allocation3 + $0x9e]]  ;;  %s2300_s15 = sld [smem:[#allocation3 + $0x95]] }
  0x83   :  { %v538_v16 = vadd.f32 %v537_v35, %v534_v0  ;;  %v572_v19 = vmul.f32 %v571_v9, %v2050_v39  ;;  %v579_v53 = vstv %s2169_s22  ;;  %v556_v17 = vstv %s2174_s24  ;;  %s2306_s22 = sld [smem:[#allocation3 + $0x9a]]  ;;  %s2326_s24 = sld [smem:[#allocation3 + $0xa0]] }
  0x84   :  { %v511_v15 = vadd.f32 %v510_v47, %v507_v57  ;;  %v576_v20 = vmul.f32 %v575_v14, %v2064_v13  ;;  %v583_v21 = vstv %s2176_s26  ;;  %v580_v25 = vmul.f32 %v579_v53, %v2075_v28  ;;  %s2328_s26 = sld [smem:[#allocation3 + $0xa5]] }
  0x85   :  { %v542_v52 = vadd.f32 %v541_v54, %v538_v16  ;;  %v573_v24 = vadd.f32 %v572_v19, %v569_v8  ;;  %v587_v26 = vstv %s2183_s2  ;;  %v560_v58 = vstv %s2181_s3  ;;  %s2330_s3 = sld [smem:[#allocation3 + $0xa1]]  ;;  %s2332_s2 = sld [smem:[#allocation3 + $0xa6]] }
  0x86   :  { %v514_v51 = vadd.f32 %v513_v18, %v511_v15  ;;  %v591_v61 = vstv %s2189_s9  ;;  %v595_v3 = vstv %s2191_s27  ;;  %v557_v59 = vmul.f32 %v556_v17, %v2157_v29  ;;  %s2335_s9 = sld [smem:[#allocation3 + $0xa2]]  ;;  %s2337_s27 = sld [smem:[#allocation3 + $0xa3]] }
  0x87   :  { %v546_v27 = vadd.f32 %v545_v49, %v542_v52  ;;  %v577_v62 = vadd.f32 %v576_v20, %v573_v24  ;;  %v584_v41 = vmul.f32 %v583_v21, %v2081_v56  ;;  %v588_v4 = vmul.f32 %v587_v26, %v2087_v45 }
  0x88   :  { %v515_v30 = vsub.f32 0.0, %v514_v51  ;;  %v592_v31 = vmul.f32 %v591_v61, %v2129_v10  ;;  %v596_v60 = vmul.f32 %v595_v3, %v2143_v11  ;;  %v599_v48 = vstv %s2199_s1  ;;  %s2339_s1 = sld [smem:[#allocation3 + $0xa7]] }
  0x89   :  { %v550_v5 = vadd.f32 %v549_v44, %v546_v27  ;;  %v581_v43 = vadd.f32 %v580_v25, %v577_v62  ;;  %v603_v32 = vstv %s2204_s6  ;;  %v615_v50 = vstv %s2206_s7  ;;  %s2341_s6 = sld [smem:[#allocation3 + $0xa4]]  ;;  %s2344_s7 = sld [smem:[#allocation3 + $0xa8]] }
  0x8a   :  { %v516_v63 = vmul.f32 1.442695, %v515_v30  ;;  %v618_v1 = vstv %s2213_s14  ;;  %v622_v35 = vstv %s2215_s11  ;;  %v616_v38 = vmul.f32 %v615_v50, %v2042_v23  ;;  %s2346_s14 = sld [smem:[#allocation3 + $0xa9]]  ;;  %s2354_s11 = sld [smem:[#allocation3 + $0xaa]] }
  0x8b   :  { %v554_v12 = vadd.f32 %v553_v22, %v550_v5  ;;  %v585_v37 = vadd.f32 %v584_v41, %v581_v43  ;;  %v619_v42 = vmul.f32 %v618_v1, %v2050_v39  ;;  %v623_v46 = vmul.f32 %v622_v35, %v2064_v13 }
  0x8c   :  { %1482 = vpow2.f32 %v516_v63  ;;  %v626_v47 = vstv %s2225_s16  ;;  %v630_v18 = vstv %s2227_s21  ;;  %v600_v34 = vmul.f32 %v599_v48, %v2151_v40  ;;  %s2357_s16 = sld [smem:[#allocation3 + $0xab]]  ;;  %s2361_s21 = sld [smem:[#allocation3 + $0xac]] }
  0x8d   :  { %v558_v54 = vadd.f32 %v557_v59, %v554_v12  ;;  %v589_v0 = vadd.f32 %v588_v4, %v585_v37  ;;  %v620_v49 = vadd.f32 %v619_v42, %v616_v38  ;;  %v627_v44 = vmul.f32 %v626_v47, %v2075_v28 }
  0x8e   :  { %v634_v57 = vstv %s2231_s0  ;;  %v638_v22 = vstv %s2236_s20  ;;  %v642_v8 = vstv %s2238_s28  ;;  %v631_v14 = vmul.f32 %v630_v18, %v2081_v56  ;;  %s2364_s0 = sld [smem:[#allocation3 + $0xad]]  ;;  %s2367_s20 = sld [smem:[#allocation3 + $0xae]] }
  0x8f   :  { %v561_v9 = vadd.f32 %v560_v58, %v558_v54  ;;  %v593_v16 = vadd.f32 %v592_v31, %v589_v0  ;;  %v624_v19 = vadd.f32 %v623_v46, %v620_v49  ;;  %v604_v53 = vmul.f32 %v603_v32, %v2157_v29  ;;  %s2369_s28 = sld [smem:[#allocation3 + $0xaf]] }
  0x90   :  { %v607_v15 = vstv %s2245_s29  ;;  %v635_v17 = vmul.f32 %v634_v57, %v2087_v45  ;;  %v639_v20 = vmul.f32 %v638_v22, %v2129_v10  ;;  %v643_v25 = vmul.f32 %v642_v8, %v2143_v11  ;;  %s2371_s29 = sld [smem:[#allocation3 + $0xb0]] }
  0x91   :  { %v562_v21 = vsub.f32 0.0, %v561_v9  ;;  %v597_v52 = vadd.f32 %v596_v60, %v593_v16  ;;  %v628_v24 = vadd.f32 %v627_v44, %v624_v19  ;;  %v646_v26 = vstv %s2249_s12  ;;  %s2376_s12 = sld [smem:[#allocation3 + $0xb1]] }
  0x92   :  { %v650_v51 = vstv %s2251_s13  ;;  %v662_v58 = vstv %s2256_s4  ;;  %v665_v61 = vstv %s2258_s17  ;;  %v669_v30 = vstv %s2262_s30  ;;  %s2379_s13 = sld [smem:[#allocation3 + $0xb2]]  ;;  %s2382_s4 = sld [smem:[#allocation3 + $0xb3]] }
  0x93   :  { %v563_v3 = vmul.f32 1.442695, %v562_v21  ;;  %v601_v27 = vadd.f32 %v600_v34, %v597_v52  ;;  %v632_v59 = vadd.f32 %v631_v14, %v628_v24  ;;  %v663_v62 = vmul.f32 %v662_v58, %v2042_v23  ;;  %s2385_s17 = sld [smem:[#allocation3 + $0xb4]]  ;;  %s2388_s30 = sld [smem:[#allocation3 + $0xb5]] }
  0x94   :  { %v666_v41 = vmul.f32 %v665_v61, %v2050_v39  ;;  %v673_v4 = vstv %s2267_s18  ;;  %v677_v31 = vstv %s2269_s5  ;;  %v670_v43 = vmul.f32 %v669_v30, %v2064_v13  ;;  %s2392_s18 = sld [smem:[#allocation3 + $0xb6]]  ;;  %s2394_s5 = sld [smem:[#allocation3 + $0xb7]] }
  0x95   :  { %1484 = vpow2.f32 %v563_v3  ;;  %v605_v60 = vadd.f32 %v604_v53, %v601_v27  ;;  %v636_v5 = vadd.f32 %v635_v17, %v632_v59  ;;  %v647_v23 = vmul.f32 %v646_v26, %v2151_v40 }
  0x96   :  { %v1483_v48 = vpop.eup %1482  ;;  %1486 = vrcp.f32 %v2185_v33  ;;  %v667_v32 = vadd.f32 %v666_v41, %v663_v62  ;;  %v674_v39 = vmul.f32 %v673_v4, %v2075_v28  ;;  %v681_v35 = vstv %s2277_s19  ;;  %s2397_s19 = sld [smem:[#allocation3 + $0xb8]] }
  0x97   :  { %v518_v63 = vadd.f32 1.0, %v1483_v48  ;;  %v608_v50 = vadd.f32 %v607_v15, %v605_v60  ;;  %v640_v1 = vadd.f32 %v639_v20, %v636_v5  ;;  %v651_v13 = vmul.f32 %v650_v51, %v2157_v29 }
  0x98   :  { %v671_v12 = vadd.f32 %v670_v43, %v667_v32  ;;  %v678_v37 = vmul.f32 %v677_v31, %v2081_v56  ;;  %v685_v42 = vstv %s2284_s23  ;;  %v317_v28 = vadd.f32 %v316_v6, %v2061_v55  ;;  %s2399_s23 = sld [smem:[#allocation3 + $0xb9]] }
  0x99   :  { %1488 = vrcp.f32 %v518_v63  ;;  %v609_v33 = vsub.f32 0.0, %v608_v50  ;;  %v644_v38 = vadd.f32 %v643_v25, %v640_v1  ;;  %v682_v47 = vmul.f32 %v681_v35, %v2087_v45 }
  0x9a   :  { %v675_v46 = vadd.f32 %v674_v39, %v671_v12  ;;  %1490 = vpow2.f32 %v2140_v2  ;;  %v689_v0 = vstv %s2291_s25  ;;  %v240_v49 = vadd.f32 1.0, %v2208_v7  ;;  %s2401_s25 = sld [smem:[#allocation3 + $0xba]] }
  0x9b   :  { %v610_v18 = vmul.f32 1.442695, %v609_v33  ;;  %v648_v54 = vadd.f32 %v647_v23, %v644_v38  ;;  %v654_v56 = vstv %s2293_s10  ;;  %v686_v34 = vmul.f32 %v685_v42, %v2129_v10  ;;  %s2403_s10 = sld [smem:[#allocation3 + $0xbb]] }
  0x9c   :  { %v679_v44 = vadd.f32 %v678_v37, %v675_v46  ;;  %v693_v22 = vstv %s2300_s15  ;;  %v318_v55 = vsub.f32 0.0, %v317_v28  ;;  %v690_v45 = vmul.f32 %v689_v0, %v2143_v11  ;;  %s1366_s15 = sld [smem:[#allocation3 + $0xbc]] }
  0x9d   :  { %1492 = vpow2.f32 %v610_v18  ;;  %v652_v57 = vadd.f32 %v651_v13, %v648_v54  ;;  %v697_v9 = vstv %s2306_s22  ;;  %v694_v14 = vmul.f32 %v693_v22, %v2151_v40  ;;  %s1372_s22 = sld [smem:[#allocation3 + $0xbd]] }
  0x9e   :  { %v683_v6 = vadd.f32 %v682_v47, %v679_v44  ;;  %1494 = vrcp.f32 %v240_v49  ;;  %v319_v53 = vmul.f32 1.442695, %v318_v55  ;;  %v698_v15 = vmul.f32 %v697_v9, %v2157_v29 }
  0x9f   :  { %v1485_v2 = vpop.eup %1484  ;;  %v655_v8 = vadd.f32 %v654_v56, %v652_v57  ;;  %v267_v20 = vadd.f32 1.0, %v2217_v36  ;;  %v701_v24 = vstv %s2321_s8  ;;  %v714_v61 = vstv %s2326_s24  ;;  %s2413_s8 = sld [smem:[#allocation3 + $0xbe]]  ;;  %s2415_s24 = sld [smem:[#allocation3 + $0xc2]] }
  0xa0   :  { %v1487_v16 = vpop.eup %1486  ;;  %v565_v19 = vadd.f32 1.0, %v1485_v2  ;;  %v687_v7 = vadd.f32 %v686_v34, %v683_v6  ;;  %v741_v3 = vstv %s2330_s3  ;;  %v768_v62 = vstv %s2335_s9  ;;  %s2419_s3 = sld [smem:[#allocation3 + $0xca]]  ;;  %s2423_s9 = sld [smem:[#allocation3 + $0xbf]] }
  0xa1   :  { %v656_v10 = vsub.f32 0.0, %v655_v8  ;;  %v795_v41 = vstv %s2337_s27  ;;  %v717_v30 = vstv %s2328_s26  ;;  %v744_v4 = vstv %s2332_s2  ;;  %s2417_s26 = sld [smem:[#allocation3 + $0xc6]]  ;;  %s2425_s27 = sld [smem:[#allocation3 + $0xc3]] }
  0xa2   :  { %1496 = vrcp.f32 %v565_v19  ;;  %v691_v11 = vadd.f32 %v690_v45, %v687_v7  ;;  %v771_v31 = vstv %s2339_s1  ;;  %v822_v60 = vstv %s2341_s6  ;;  %s2421_s2 = sld [smem:[#allocation3 + $0xce]]  ;;  %s2427_s1 = sld [smem:[#allocation3 + $0xc7]] }
  0xa3   :  { %v1489_v40 = vpop.eup %1488  ;;  %v657_v17 = vmul.f32 1.442695, %v656_v10  ;;  %v798_v23 = vstv %s2344_s7  ;;  %v825_v32 = vstv %s2346_s14  ;;  %v721_v57 = vstv %s2354_s11  ;;  %s2429_s6 = sld [smem:[#allocation3 + $0xcb]]  ;;  %s2431_s7 = sld [smem:[#allocation3 + $0xcf]] }
  0xa4   :  { %v695_v21 = vadd.f32 %v694_v14, %v691_v11  ;;  %v708_v52 = vmul.f32 %v1489_v40, %v1487_v16  ;;  %v1491_v29 = vpop.eup %1490  ;;  %v748_v22 = vstv %s2357_s16  ;;  %v775_v55 = vstv %s2361_s21  ;;  %s2433_s14 = sld [smem:[#allocation3 + $0xc0]]  ;;  %s2435_s11 = sld [smem:[#allocation3 + $0xc4]] }
  0xa5   :  { %1498 = vpow2.f32 %v657_v17  ;;  %v294_v58 = vadd.f32 1.0, %v1491_v29  ;;  %v802_v6 = vstv %s2364_s0  ;;  %v829_v2 = vstv %s2367_s20  ;;  %s2437_s16 = sld [smem:[#allocation3 + $0xc8]]  ;;  %s2439_s21 = sld [smem:[#allocation3 + $0xcc]] }
  0xa6   :  { %1500 = vpow2.f32 %v319_v53  ;;  %v699_v25 = vadd.f32 %v698_v15, %v695_v21  ;;  %v715_v48 = vmul.f32 %v714_v61, %v708_v52  ;;  %v742_v63 = vmul.f32 %v741_v3, %v708_v52  ;;  %s2441_s0 = sld [smem:[#allocation3 + $0xc1]]  ;;  %s2443_s20 = sld [smem:[#allocation3 + $0xd0]] }
  0xa7   :  { %v1493_v26 = vpop.eup %1492  ;;  %1502 = vrcp.f32 %v267_v20  ;;  %v769_v50 = vmul.f32 %v768_v62, %v708_v52  ;;  %v796_v1 = vmul.f32 %v795_v41, %v708_v52  ;;  %v823_v35 = vmul.f32 %v822_v60, %v708_v52 }
  0xa8   :  { %v612_v36 = vadd.f32 1.0, %v1493_v26  ;;  %v702_v51 = vadd.f32 %v701_v24, %v699_v25  ;;  %v1495_v27 = vpop.eup %1494  ;;  %v725_v52 = vstv %s2369_s28  ;;  %v752_v29 = vstv %s2371_s29  ;;  %s2445_s28 = sld [smem:[#allocation3 + $0xc5]]  ;;  %s2447_s29 = sld [smem:[#allocation3 + $0xc9]] }
  0xa9   :  { %v779_v24 = vstv %s2376_s12  ;;  %v806_v25 = vstv %s2379_s13  ;;  %s2449_s12 = sld [smem:[#allocation3 + $0xcd]]  ;;  %s2458_s13 = sld [smem:[#allocation3 + $0xd1]] }
  0xaa   :  { %1504 = vrcp.f32 %v612_v36  ;;  %v703_v59 = vsub.f32 0.0, %v702_v51  ;;  %v833_v36 = vstv %s2382_s4  ;;  %s2472_s4 = sld [smem:[#allocation3 + $0xd2]] }
  0xac   :  { %v1497_v5 = vpop.eup %1496  ;;  %v704_v43 = vmul.f32 1.442695, %v703_v59 }
  0xad   :  { %v709_v39 = vmul.f32 %v1497_v5, %v1495_v27  ;;  %v729_v5 = vstv %s2385_s17  ;;  %s2474_s17 = sld [smem:[#allocation3 + $0xd3]] }
  0xae   :  { %1506 = vpow2.f32 %v704_v43  ;;  %v756_v43 = vstv %s2388_s30  ;;  %s2476_s30 = sld [smem:[#allocation3 + $0xd4]] }
  0xaf   :  { %v1499_v13 = vpop.eup %1498  ;;  %v718_v12 = vmul.f32 %v717_v30, %v709_v39  ;;  %v745_v37 = vmul.f32 %v744_v4, %v709_v39  ;;  %v772_v33 = vmul.f32 %v771_v31, %v709_v39  ;;  %v799_v38 = vmul.f32 %v798_v23, %v709_v39 }
  0xb0   :  { %v1501_v42 = vpop.eup %1500  ;;  %1508 = vrcp.f32 %v294_v58  ;;  %v659_v28 = vadd.f32 1.0, %v1499_v13  ;;  %v826_v46 = vmul.f32 %v825_v32, %v709_v39  ;;  %v810_v23 = vstv %s2394_s5  ;;  %s2485_s5 = sld [smem:[#allocation3 + $0xd6]] }
  0xb1   :  { %v719_v47 = vadd.f32 %v718_v12, %v715_v48  ;;  %v746_v18 = vadd.f32 %v745_v37, %v742_v63  ;;  %v773_v54 = vadd.f32 %v772_v33, %v769_v50  ;;  %v800_v0 = vadd.f32 %v799_v38, %v796_v1  ;;  %v1503_v49 = vpop.eup %1502 }
  0xb2   :  { %1510 = vrcp.f32 %v659_v28  ;;  %v827_v56 = vadd.f32 %v826_v46, %v823_v35  ;;  %v321_v44 = vadd.f32 1.0, %v1501_v42  ;;  %v783_v48 = vstv %s2392_s18  ;;  %s2478_s18 = sld [smem:[#allocation3 + $0xd5]] }
  0xb3   :  { %v837_v39 = vstv %s2397_s19  ;;  %v733_v63 = vstv %s2399_s23  ;;  %v760_v50 = vstv %s2401_s25  ;;  %v787_v37 = vstv %s2403_s10  ;;  %s2487_s19 = sld [smem:[#allocation3 + $0xd9]]  ;;  %s2489_s23 = sld [smem:[#allocation3 + $0xd7]] }
  0xb4   :  { %v1505_v34 = vpop.eup %1504  ;;  %1512 = vrcp.f32 %v321_v44  ;;  %v814_v33 = vstv %s1366_s15  ;;  %v841_v42 = vstv %s1372_s22  ;;  %s2491_s25 = sld [smem:[#allocation3 + $0xda]]  ;;  %s2493_s10 = sld [smem:[#allocation3 + $0xdc]] }
  0xb5   :  { %v710_v45 = vmul.f32 %v1505_v34, %v1503_v49  ;;  %s1407_s15 = sld [smem:[#allocation3 + $0xd8]]  ;;  %s2495_s22 = sld [smem:[#allocation3 + $0xdd]] }
  0xb7   :  { %v722_v8 = vmul.f32 %v721_v57, %v710_v45  ;;  %v749_v9 = vmul.f32 %v748_v22, %v710_v45  ;;  %v776_v16 = vmul.f32 %v775_v55, %v710_v45  ;;  %v803_v19 = vmul.f32 %v802_v6, %v710_v45 }
  0xb8   :  { %v1507_v7 = vpop.eup %1506  ;;  %v830_v14 = vmul.f32 %v829_v2, %v710_v45 }
  0xb9   :  { %v706_v10 = vadd.f32 1.0, %v1507_v7  ;;  %v723_v53 = vadd.f32 %v722_v8, %v719_v47  ;;  %v750_v11 = vadd.f32 %v749_v9, %v746_v18  ;;  %v777_v15 = vadd.f32 %v776_v16, %v773_v54 }
  0xba   :  { %v1509_v40 = vpop.eup %1508  ;;  %v804_v17 = vadd.f32 %v803_v19, %v800_v0  ;;  %v831_v20 = vadd.f32 %v830_v14, %v827_v56 }
  0xbb   :  { %1514 = vrcp.f32 %v706_v10 }
  0xbc   :  { %v1511_v21 = vpop.eup %1510 }
  0xbd   :  { %v711_v26 = vmul.f32 %v1511_v21, %v1509_v40 }
  0xbe   :  { %v1513_v4 = vpop.eup %1512 }
  0xbf   :  { %v726_v51 = vmul.f32 %v725_v52, %v711_v26  ;;  %v753_v58 = vmul.f32 %v752_v29, %v711_v26  ;;  %v780_v61 = vmul.f32 %v779_v24, %v711_v26  ;;  %v807_v3 = vmul.f32 %v806_v25, %v711_v26 }
  0xc0   :  { %v834_v27 = vmul.f32 %v833_v36, %v711_v26  ;;  %v849_v52 = vstv %s2413_s8  ;;  %v852_v29 = vstv %s2415_s24  ;;  %v856_v24 = vstv %s2417_s26  ;;  %s1408_s8 = sld [smem:[#allocation3 + $0xdb]]  ;;  %s2497_s24 = sld [smem:[#allocation3 + $0xdf]] }
  0xc1   :  { %v727_v59 = vadd.f32 %v726_v51, %v723_v53  ;;  %v754_v62 = vadd.f32 %v753_v58, %v750_v11  ;;  %v781_v41 = vadd.f32 %v780_v61, %v777_v15  ;;  %v808_v30 = vadd.f32 %v807_v3, %v804_v17  ;;  %s2499_s26 = sld [smem:[#allocation3 + $0xde]] }
  0xc2   :  { %v835_v31 = vadd.f32 %v834_v27, %v831_v20  ;;  %v860_v25 = vstv %s2419_s3  ;;  %v864_v26 = vstv %s2421_s2  ;;  %v876_v36 = vstv %s2423_s9  ;;  %s2501_s3 = sld [smem:[#allocation3 + $0xe0]]  ;;  %s2503_s2 = sld [smem:[#allocation3 + $0xe1]] }
  0xc3   :  { %v879_v51 = vstv %s2425_s27  ;;  %v883_v58 = vstv %s2427_s1  ;;  %v887_v61 = vstv %s2429_s6  ;;  %v903_v3 = vstv %s2433_s14  ;;  %s2508_s9 = sld [smem:[#allocation3 + $0xe2]]  ;;  %s2511_s27 = sld [smem:[#allocation3 + $0xe3]] }
  0xc4   :  { %v930_v27 = vstv %s2441_s0  ;;  %s2517_s1 = sld [smem:[#allocation3 + $0xe4]]  ;;  %s1412_s6 = sld [smem:[#allocation3 + $0xe5]] }
  0xc5   :  { %v1515_v60 = vpop.eup %1514  ;;  %s1413_s14 = sld [smem:[#allocation3 + $0xe7]]  ;;  %s1415_s0 = sld [smem:[#allocation3 + $0xeb]] }
  0xc6   :  { %v712_v32 = vmul.f32 %v1515_v60, %v1513_v4  ;;  %v918_v60 = vstv %s2443_s20  ;;  %s1419_s20 = sld [smem:[#allocation3 + $0xec]] }
  0xc8   :  { %v730_v1 = vmul.f32 %v729_v5, %v712_v32  ;;  %v757_v35 = vmul.f32 %v756_v43, %v712_v32  ;;  %v784_v13 = vmul.f32 %v783_v48, %v712_v32  ;;  %v811_v12 = vmul.f32 %v810_v23, %v712_v32 }
  0xc9   :  { %v838_v38 = vmul.f32 %v837_v39, %v712_v32  ;;  %v937_v5 = vstv %s2447_s29  ;;  %v941_v43 = vstv %s2449_s12  ;;  %s2526_s29 = sld [smem:[#allocation3 + $0xee]]  ;;  %s2528_s12 = sld [smem:[#allocation3 + $0xef]] }
  0xca   :  { %v731_v28 = vadd.f32 %v730_v1, %v727_v59  ;;  %v758_v46 = vadd.f32 %v757_v35, %v754_v62  ;;  %v785_v47 = vadd.f32 %v784_v13, %v781_v41  ;;  %v812_v18 = vadd.f32 %v811_v12, %v808_v30 }
  0xcb   :  { %v839_v54 = vadd.f32 %v838_v38, %v835_v31  ;;  %v891_v59 = vstv %s2431_s7  ;;  %v906_v62 = vstv %s2435_s11  ;;  %v910_v41 = vstv %s2437_s16  ;;  %s1416_s7 = sld [smem:[#allocation3 + $0xe6]]  ;;  %s1417_s11 = sld [smem:[#allocation3 + $0xe8]] }
  0xcc   :  { %v734_v0 = vadd.f32 %v733_v63, %v731_v28  ;;  %v761_v49 = vadd.f32 %v760_v50, %v758_v46  ;;  %v788_v56 = vadd.f32 %v787_v37, %v785_v47  ;;  %v815_v44 = vadd.f32 %v814_v33, %v812_v18  ;;  %s1414_s16 = sld [smem:[#allocation3 + $0xe9]] }
  0xcd   :  { %v842_v34 = vadd.f32 %v841_v42, %v839_v54  ;;  %v933_v30 = vstv %s2445_s28  ;;  %v914_v31 = vstv %s2439_s21  ;;  %s1418_s21 = sld [smem:[#allocation3 + $0xea]]  ;;  %s2524_s28 = sld [smem:[#allocation3 + $0xed]] }
  0xce   :  { %v735_v57 = vsub.f32 0.0, %v734_v0  ;;  %v762_v22 = vsub.f32 0.0, %v761_v49  ;;  %v789_v55 = vsub.f32 0.0, %v788_v56  ;;  %v816_v6 = vsub.f32 0.0, %v815_v44 }
  0xcf   :  { %v843_v45 = vsub.f32 0.0, %v842_v34  ;;  %v945_v34 = vstv %s2458_s13  ;;  %s2530_s13 = sld [smem:[#allocation3 + $0xf0]] }
  0xd0   :  { %v736_v2 = vmul.f32 1.442695, %v735_v57  ;;  %v763_v8 = vmul.f32 1.442695, %v762_v22  ;;  %v790_v9 = vmul.f32 1.442695, %v789_v55 }
  0xd1   :  { %v817_v16 = vmul.f32 1.442695, %v816_v6  ;;  %v844_v19 = vmul.f32 1.442695, %v843_v45 }
  0xd2   :  { %1516 = vpow2.f32 %v736_v2 }
  0xd3   :  { %1518 = vpow2.f32 %v763_v8 }
  0xd4   :  { %1520 = vpow2.f32 %v790_v9 }
  0xd5   :  { %1522 = vpow2.f32 %v817_v16 }
  0xd6   :  { %1524 = vpow2.f32 %v844_v19 }
  0xdc   :  { %v1517_v7 = vpop.eup %1516 }
  0xdd   :  { %v1519_v14 = vpop.eup %1518  ;;  %v738_v10 = vadd.f32 1.0, %v1517_v7 }
  0xde   :  { %v1521_v53 = vpop.eup %1520  ;;  %v765_v11 = vadd.f32 1.0, %v1519_v14  ;;  %v868_v14 = vstv %s2472_s4  ;;  %s2532_s4 = sld [smem:[#allocation3 + $0xf2]] }
  0xdf   :  { %v1523_v15 = vpop.eup %1522  ;;  %1526 = vrcp.f32 %v738_v10  ;;  %v792_v40 = vadd.f32 1.0, %v1521_v53  ;;  %v895_v10 = vstv %s2474_s17  ;;  %s2534_s17 = sld [smem:[#allocation3 + $0xf1]] }
  0xe0   :  { %v1525_v17 = vpop.eup %1524  ;;  %1528 = vrcp.f32 %v765_v11  ;;  %v819_v20 = vadd.f32 1.0, %v1523_v15 }
  0xe1   :  { %1530 = vrcp.f32 %v792_v40  ;;  %v846_v21 = vadd.f32 1.0, %v1525_v17  ;;  %v922_v40 = vstv %s2476_s30  ;;  %s2536_s30 = sld [smem:[#allocation3 + $0xf3]] }
  0xe2   :  { %1532 = vrcp.f32 %v819_v20 }
  0xe3   :  { %1534 = vrcp.f32 %v846_v21  ;;  %v949_v21 = vstv %s2478_s18  ;;  %s2538_s18 = sld [smem:[#allocation3 + $0xf6]] }
  0xe9   :  { %v1527_v4 = vpop.eup %1526 }
  0xea   :  { %v1529_v48 = vpop.eup %1528  ;;  %v850_v23 = vmul.f32 %v1527_v4, %v849_v52  ;;  %v877_v32 = vmul.f32 %v1527_v4, %v876_v36  ;;  %v904_v39 = vmul.f32 %v1527_v4, %v903_v3  ;;  %v931_v63 = vmul.f32 %v1527_v4, %v930_v27 }
  0xeb   :  { %v1531_v50 = vpop.eup %1530  ;;  %v853_v1 = vmul.f32 %v1529_v48, %v852_v29  ;;  %v880_v35 = vmul.f32 %v1529_v48, %v879_v51  ;;  %v907_v13 = vmul.f32 %v1529_v48, %v906_v62  ;;  %v934_v12 = vmul.f32 %v1529_v48, %v933_v30 }
  0xec   :  { %v1533_v37 = vpop.eup %1532  ;;  %v857_v33 = vmul.f32 %v1531_v50, %v856_v24  ;;  %v884_v38 = vmul.f32 %v1531_v50, %v883_v58  ;;  %v911_v42 = vmul.f32 %v1531_v50, %v910_v41  ;;  %v938_v28 = vmul.f32 %v1531_v50, %v937_v5 }
  0xed   :  { %v1535_v46 = vpop.eup %1534  ;;  %v854_v47 = vadd.f32 %v853_v1, %v850_v23  ;;  %v861_v18 = vmul.f32 %v1533_v37, %v860_v25  ;;  %v881_v54 = vadd.f32 %v880_v35, %v877_v32  ;;  %v888_v0 = vmul.f32 %v1533_v37, %v887_v61 }
  0xee   :  { %v865_v49 = vmul.f32 %v1535_v46, %v864_v26  ;;  %v908_v56 = vadd.f32 %v907_v13, %v904_v39  ;;  %v915_v44 = vmul.f32 %v1533_v37, %v914_v31  ;;  %v892_v55 = vmul.f32 %v1535_v46, %v891_v59 }
  0xef   :  { %v858_v57 = vadd.f32 %v857_v33, %v854_v47  ;;  %v885_v22 = vadd.f32 %v884_v38, %v881_v54  ;;  %v935_v6 = vadd.f32 %v934_v12, %v931_v63  ;;  %v919_v2 = vmul.f32 %v1535_v46, %v918_v60 }
  0xf0   :  { %v912_v45 = vadd.f32 %v911_v42, %v908_v56  ;;  %v942_v8 = vmul.f32 %v1533_v37, %v941_v43  ;;  %v946_v7 = vmul.f32 %v1535_v46, %v945_v34  ;;  %v957_v23 = vstv %s2485_s5  ;;  %s2540_s5 = sld [smem:[#allocation3 + $0xf8]] }
  0xf1   :  { %v862_v9 = vadd.f32 %v861_v18, %v858_v57  ;;  %v889_v16 = vadd.f32 %v888_v0, %v885_v22  ;;  %v939_v19 = vadd.f32 %v938_v28, %v935_v6  ;;  %v980_v32 = vstv %s2489_s23  ;;  %s2544_s23 = sld [smem:[#allocation3 + $0xf9]] }
  0xf2   :  { %v916_v53 = vadd.f32 %v915_v44, %v912_v45  ;;  %v1003_v39 = vstv %s1407_s15  ;;  %v960_v63 = vstv %s2487_s19  ;;  %v983_v50 = vstv %s2491_s25  ;;  %s2542_s19 = sld [smem:[#allocation3 + $0xf7]]  ;;  %s2546_s25 = sld [smem:[#allocation3 + $0xf4]] }
  0xf3   :  { %v866_v11 = vadd.f32 %v865_v49, %v862_v9  ;;  %v893_v15 = vadd.f32 %v892_v55, %v889_v16  ;;  %v943_v17 = vadd.f32 %v942_v8, %v939_v19  ;;  %v1006_v1 = vstv %s1408_s8  ;;  %s2550_s15 = sld [smem:[#allocation3 + $0xfa]]  ;;  %s2554_s8 = sld [smem:[#allocation3 + $0xfc]] }
  0xf4   :  { %v920_v20 = vadd.f32 %v919_v2, %v916_v53  ;;  %v964_v13 = vstv %s2493_s10  ;;  %v968_v12 = vstv %s2497_s24  ;;  %v987_v37 = vstv %s2495_s22  ;;  %s2548_s10 = sld [smem:[#allocation3 + $0xf5]]  ;;  %s2552_s22 = sld [smem:[#allocation3 + $0xfb]] }
  0xf5   :  { %v869_v52 = vadd.f32 %v868_v14, %v866_v11  ;;  %v896_v29 = vadd.f32 %v895_v10, %v893_v15  ;;  %v947_v24 = vadd.f32 %v946_v7, %v943_v17  ;;  %v1010_v33 = vstv %s2499_s26  ;;  %s2556_s24 = sld [smem:[#allocation3 + $0xfe]]  ;;  %s2558_s26 = sld [smem:[#allocation3 + $0xfd]] }
  0xf6   :  { %v923_v25 = vadd.f32 %v922_v40, %v920_v20  ;;  %v991_v46 = vstv %s2501_s3  ;;  %v1014_v56 = vstv %s2503_s2  ;;  %v972_v7 = vstv %s2508_s9  ;;  %s2560_s3 = sld [smem:[#allocation3 + $0xff]]  ;;  %s2562_s2 = sld [smem:[#allocation3 + $0x100]] }
  0xf7   :  { %v870_v26 = vsub.f32 0.0, %v869_v52  ;;  %v897_v36 = vsub.f32 0.0, %v896_v29  ;;  %v950_v51 = vadd.f32 %v949_v21, %v947_v24  ;;  %v995_v14 = vstv %s2511_s27  ;;  %s2564_s9 = sld [smem:[#allocation3 + $0x101]] }
  0xf8   :  { %v924_v58 = vsub.f32 0.0, %v923_v25  ;;  %v1018_v15 = vstv %s2517_s1 }
  0xf9   :  { %v871_v61 = vmul.f32 1.442695, %v870_v26  ;;  %v898_v3 = vmul.f32 1.442695, %v897_v36  ;;  %v951_v27 = vsub.f32 0.0, %v950_v51 }
  0xfa   :  { %v925_v59 = vmul.f32 1.442695, %v924_v58 }
  0xfb   :  { %1536 = vpow2.f32 %v871_v61  ;;  %v952_v62 = vmul.f32 1.442695, %v951_v27 }
  0xfc   :  { %1538 = vpow2.f32 %v898_v3 }
  0xfd   :  { %1540 = vpow2.f32 %v925_v59 }
  0xfe   :  { %1542 = vpow2.f32 %v952_v62  ;;  %v1026_v62 = vstv %s1412_s6  ;;  %s2641_s6 = sld [smem:[#allocation14_spill]] }
 0x105   :  { %v1537_v41 = vpop.eup %1536 }
 0x106   :  { %v1539_v30 = vpop.eup %1538  ;;  %v873_v4 = vadd.f32 1.0, %v1537_v41  ;;  %v1045_v41 = vstv %s1416_s7 }
 0x107   :  { %v1541_v31 = vpop.eup %1540  ;;  %v900_v60 = vadd.f32 1.0, %v1539_v30  ;;  %v1029_v30 = vstv %s1413_s14 }
 0x108   :  { %v1543_v5 = vpop.eup %1542  ;;  %1544 = vrcp.f32 %v873_v4  ;;  %v927_v43 = vadd.f32 1.0, %v1541_v31  ;;  %v1048_v4 = vstv %s1417_s11 }
 0x109   :  { %1546 = vrcp.f32 %v900_v60  ;;  %v954_v48 = vadd.f32 1.0, %v1543_v5  ;;  %v1033_v60 = vstv %s1414_s16  ;;  %v1052_v5 = vstv %s1418_s21 }
 0x10a   :  { %1548 = vrcp.f32 %v927_v43 }
 0x10b   :  { %1550 = vrcp.f32 %v954_v48 }
 0x112   :  { %v1545_v35 = vpop.eup %1544 }
 0x113   :  { %v1547_v38 = vpop.eup %1546  ;;  %v958_v42 = vmul.f32 %v1545_v35, %v957_v23  ;;  %v981_v28 = vmul.f32 %v1545_v35, %v980_v32  ;;  %v1004_v47 = vmul.f32 %v1545_v35, %v1003_v39 }
 0x114   :  { %v1549_v18 = vpop.eup %1548  ;;  %v961_v54 = vmul.f32 %v1547_v38, %v960_v63  ;;  %v984_v0 = vmul.f32 %v1547_v38, %v983_v50  ;;  %v1007_v49 = vmul.f32 %v1547_v38, %v1006_v1 }
 0x115   :  { %v1551_v44 = vpop.eup %1550  ;;  %v965_v34 = vmul.f32 %v1549_v18, %v964_v13  ;;  %v988_v57 = vmul.f32 %v1549_v18, %v987_v37  ;;  %v1011_v22 = vmul.f32 %v1549_v18, %v1010_v33  ;;  %v1056_v37 = vstv %s1419_s20 }
 0x116   :  { %v962_v55 = vadd.f32 %v961_v54, %v958_v42  ;;  %v969_v6 = vmul.f32 %v1551_v44, %v968_v12  ;;  %v985_v45 = vadd.f32 %v984_v0, %v981_v28  ;;  %v992_v2 = vmul.f32 %v1551_v44, %v991_v46 }
 0x117   :  { %v1008_v8 = vadd.f32 %v1007_v49, %v1004_v47  ;;  %v1015_v9 = vmul.f32 %v1551_v44, %v1014_v56  ;;  %v1037_v12 = vstv %s1415_s0 }
 0x118   :  { %v966_v16 = vadd.f32 %v965_v34, %v962_v55  ;;  %v989_v19 = vadd.f32 %v988_v57, %v985_v45  ;;  %v1064_v34 = vstv %s2524_s28  ;;  %v1067_v57 = vstv %s2526_s29 }
 0x119   :  { %v1012_v10 = vadd.f32 %v1011_v22, %v1008_v8  ;;  %v1071_v22 = vstv %s2528_s12  ;;  %v1079_v55 = vstv %s2530_s13  ;;  %v1090_v45 = vstv %s2534_s17 }
 0x11a   :  { %v970_v53 = vadd.f32 %v969_v6, %v966_v16  ;;  %v993_v11 = vadd.f32 %v992_v2, %v989_v19  ;;  %v1082_v6 = vstv %s2532_s4  ;;  %v1093_v2 = vstv %s2536_s30 }
 0x11b   :  { %v1016_v40 = vadd.f32 %v1015_v9, %v1012_v10  ;;  %v1101_v8 = vstv %s2538_s18  ;;  %v1104_v9 = vstv %s2540_s5  ;;  %v1086_v16 = vstv %s2546_s25 }
 0x11c   :  { %v973_v17 = vadd.f32 %v972_v7, %v970_v53  ;;  %v996_v20 = vadd.f32 %v995_v14, %v993_v11  ;;  %v1097_v19 = vstv %s2548_s10  ;;  %v1108_v7 = vstv %s2550_s15 }
 0x11d   :  { %v1019_v21 = vadd.f32 %v1018_v15, %v1016_v40  ;;  %v1112_v14 = vstv %s2542_s19  ;;  %v1115_v10 = vstv %s2544_s23  ;;  %v1119_v53 = vstv %s2552_s22 }
 0x11e   :  { %v974_v52 = vsub.f32 0.0, %v973_v17  ;;  %v997_v29 = vsub.f32 0.0, %v996_v20  ;;  %v1123_v11 = vstv %s2554_s8  ;;  %v1126_v15 = vstv %s2556_s24 }
 0x11f   :  { %v1020_v24 = vsub.f32 0.0, %v1019_v21  ;;  %v1130_v17 = vstv %s2562_s2  ;;  %v1133_v20 = vstv %s2558_s26  ;;  %v1136_v21 = vstv %s2560_s3 }
 0x120   :  { %v975_v25 = vmul.f32 1.442695, %v974_v52  ;;  %v998_v26 = vmul.f32 1.442695, %v997_v29  ;;  %v1140_v52 = vstv %s2564_s9 }
 0x121   :  { %v1021_v36 = vmul.f32 1.442695, %v1020_v24 }
 0x122   :  { %1552 = vpow2.f32 %v975_v25 }
 0x123   :  { %1554 = vpow2.f32 %v998_v26 }
 0x124   :  { %1556 = vpow2.f32 %v1021_v36 }
 0x12c   :  { %v1553_v51 = vpop.eup %1552 }
 0x12d   :  { %v1555_v58 = vpop.eup %1554  ;;  %v977_v61 = vadd.f32 1.0, %v1553_v51 }
 0x12e   :  { %v1557_v3 = vpop.eup %1556  ;;  %v1000_v27 = vadd.f32 1.0, %v1555_v58 }
 0x12f   :  { %1558 = vrcp.f32 %v977_v61  ;;  %v1023_v59 = vadd.f32 1.0, %v1557_v3 }
 0x130   :  { %1560 = vrcp.f32 %v1000_v27 }
 0x131   :  { %1562 = vrcp.f32 %v1023_v59 }
 0x139   :  { %v1559_v31 = vpop.eup %1558 }
 0x13a   :  { %v1561_v43 = vpop.eup %1560  ;;  %v1027_v48 = vmul.f32 %v1559_v31, %v1026_v62  ;;  %v1046_v23 = vmul.f32 %v1559_v31, %v1045_v41 }
 0x13b   :  { %v1563_v32 = vpop.eup %1562  ;;  %v1030_v39 = vmul.f32 %v1561_v43, %v1029_v30  ;;  %v1049_v63 = vmul.f32 %v1561_v43, %v1048_v4 }
 0x13c   :  { %v1034_v50 = vmul.f32 %v1563_v32, %v1033_v60  ;;  %v1053_v1 = vmul.f32 %v1563_v32, %v1052_v5 }
 0x13d   :  { %v1031_v35 = vadd.f32 %v1030_v39, %v1027_v48  ;;  %v1050_v13 = vadd.f32 %v1049_v63, %v1046_v23 }
 0x13f   :  { %v1035_v33 = vadd.f32 %v1034_v50, %v1031_v35  ;;  %v1054_v38 = vadd.f32 %v1053_v1, %v1050_v13 }
 0x141   :  { %v1038_v42 = vadd.f32 %v1037_v12, %v1035_v33  ;;  %v1057_v28 = vadd.f32 %v1056_v37, %v1054_v38 }
 0x143   :  { %v1039_v46 = vsub.f32 0.0, %v1038_v42  ;;  %v1058_v47 = vsub.f32 0.0, %v1057_v28 }
 0x145   :  { %v1040_v18 = vmul.f32 1.442695, %v1039_v46  ;;  %v1059_v54 = vmul.f32 1.442695, %v1058_v47 }
 0x147   :  { %1564 = vpow2.f32 %v1040_v18 }
 0x148   :  { %1566 = vpow2.f32 %v1059_v54 }
 0x151   :  { %v1565_v0 = vpop.eup %1564 }
 0x152   :  { %v1567_v49 = vpop.eup %1566  ;;  %v1042_v56 = vadd.f32 1.0, %v1565_v0 }
 0x153   :  { %v1061_v44 = vadd.f32 1.0, %v1567_v49 }
 0x154   :  { %1568 = vrcp.f32 %v1042_v56 }
 0x155   :  { %1570 = vrcp.f32 %v1061_v44 }
 0x15e   :  { %v1569_v40 = vpop.eup %1568 }
 0x15f   :  { %v1571_v29 = vpop.eup %1570  ;;  %v1065_v24 = vmul.f32 %v1569_v40, %v1064_v34  ;;  %v1080_v25 = vmul.f32 %v1569_v40, %v1079_v55  ;;  %v1091_v26 = vmul.f32 %v1569_v40, %v1090_v45  ;;  %v1102_v36 = vmul.f32 %v1569_v40, %v1101_v8 }
 0x160   :  { %v1068_v51 = vmul.f32 %v1571_v29, %v1067_v57  ;;  %v1083_v58 = vmul.f32 %v1571_v29, %v1082_v6  ;;  %v1094_v61 = vmul.f32 %v1571_v29, %v1093_v2  ;;  %v1105_v3 = vmul.f32 %v1571_v29, %v1104_v9 }
 0x161   :  { %v1113_v27 = vmul.f32 %v1569_v40, %v1112_v14  ;;  %v1116_v59 = vmul.f32 %v1571_v29, %v1115_v10  ;;  %v1124_v62 = vmul.f32 %v1569_v40, %v1123_v11  ;;  %v1127_v41 = vmul.f32 %v1571_v29, %v1126_v15 }
 0x162   :  { %v1069_v30 = vadd.f32 %v1068_v51, %v1065_v24  ;;  %v1084_v4 = vadd.f32 %v1083_v58, %v1080_v25  ;;  %v1095_v31 = vadd.f32 %v1094_v61, %v1091_v26  ;;  %v1106_v60 = vadd.f32 %v1105_v3, %v1102_v36 }
 0x163   :  { %v1117_v5 = vadd.f32 %v1116_v59, %v1113_v27  ;;  %v1128_v43 = vadd.f32 %v1127_v41, %v1124_v62  ;;  %v1134_v48 = vmul.f32 %v1569_v40, %v1133_v20  ;;  %v1137_v23 = vmul.f32 %v1571_v29, %v1136_v21 }
 0x164   :  { %v1072_v32 = vadd.f32 %v1071_v22, %v1069_v30  ;;  %v1087_v39 = vadd.f32 %v1086_v16, %v1084_v4  ;;  %v1098_v63 = vadd.f32 %v1097_v19, %v1095_v31  ;;  %v1109_v50 = vadd.f32 %v1108_v7, %v1106_v60 }
 0x165   :  { %v1120_v1 = vadd.f32 %v1119_v53, %v1117_v5  ;;  %v1131_v35 = vadd.f32 %v1130_v17, %v1128_v43  ;;  %v1138_v13 = vadd.f32 %v1137_v23, %v1134_v48 }
 0x166   :  { %v1073_v12 = vsub.f32 0.0, %v1072_v32  ;;  %1572 = vtanh.f32 %v1087_v39 }
 0x167   :  { %1574 = vtanh.f32 %v1098_v63  ;;  %v1141_v37 = vadd.f32 %v1140_v52, %v1138_v13  ;;  %1441 = vst [vmem:[%s2641_s6 + $0x8] sm:$0xff] %v1131_v35 }
 0x168   :  { %v1074_v33 = vmul.f32 1.442695, %v1073_v12  ;;  %1576 = vtanh.f32 %v1109_v50 }
 0x169   :  { %1578 = vtanh.f32 %v1120_v1  ;;  %1442 = vst [vmem:[%s2641_s6 + $0x10] sm:$0xff] %v1141_v37 }
 0x16a   :  { %1580 = vpow2.f32 %v1074_v33 }
 0x170   :  { %v1573_v38 = vpop.eup %1572 }
 0x171   :  { %v1575_v42 = vpop.eup %1574  ;;  %1443 = vst [vmem:[%s2641_s6 + $0x18] sm:$0xff] %v1573_v38 }
 0x172   :  { %v1577_v28 = vpop.eup %1576  ;;  %1444 = vst [vmem:[%s2641_s6 + $0x20] sm:$0xff] %v1575_v42 }
 0x173   :  { %v1579_v46 = vpop.eup %1578  ;;  %1445 = vst [vmem:[%s2641_s6 + $0x28] sm:$0xff] %v1577_v28 }
 0x174   :  { %v1581_v47 = vpop.eup %1580  ;;  %1446 = vst [vmem:[%s2641_s6 + $0x30] sm:$0xff] %v1579_v46 }
 0x175   :  { %v1076_v18 = vadd.f32 1.0, %v1581_v47 }
 0x177   :  { %1582 = vrcp.f32 %v1076_v18 }
 0x181   :  { %v1583_v54 = vpop.eup %1582 }
 0x182   :  { %1142 = vst [vmem:[%s2641_s6] sm:$0xff] %v1583_v54 }

</bundles_post_ra>
